<compile_context>
chip_gen: v6e
topology: v6e:2x2x1
jax: 0.10.0
libtpu: 0.0.40
codegen_flags: <defaults>
</compile_context>

<pallas_src>
import functools

import jax
import jax.numpy as jnp
import numpy as np
from jax import lax
from jax.experimental import pallas as pl
from jax.experimental.pallas import tpu as pltpu

EPS = 1e-5
PADF = 3                              # depth halo planes in padded-flat layout (>=3 keeps reads in range)
VMEM_LIMIT = 32 * 1024 * 1024         # explicit scoped-VMEM cap; safe on v5e/v6e/v7x


def _cparams():
    return pltpu.CompilerParams(dimension_semantics=("parallel",),
                                vmem_limit_bytes=VMEM_LIMIT)


# ------------------------------ Pallas kernels ------------------------------ #

def _down_conv_kernel(a_ref, w_ref, z_ref, st_ref):
    # a_ref: (1, 8*Cin, Q) bf16, zero at H/W-halo columns; w_ref: (C2, 8*Cin) bf16
    z = jnp.dot(w_ref[...], a_ref[0], preferred_element_type=jnp.float32)     # (C2, Q) f32
    z_ref[0] = z
    # fused BN statistics (halo columns are exactly zero -> contribute nothing)
    st_ref[0] = jnp.concatenate(
        [jnp.sum(z, axis=1, keepdims=True),
         jnp.sum(z * z, axis=1, keepdims=True)], axis=1)


def _conv5_kernel(a_ref, w_ref, m_ref, z_ref, st_ref, *, tap_offs, q):
    # a_ref: (1, C2, DHW) bf16 padded-flat; w_ref: (5, C2, 25*C2) bf16; m_ref: (1, Q) f32
    win = a_ref[0]                                      # (C2, DHW), resident in VMEM
    c2 = win.shape[0]
    acc = jnp.zeros((c2, q), jnp.float32)
    for kd in range(5):                                 # taps grouped into K = 25*C2 slabs
        xg = jnp.concatenate([win[:, a:a + q] for a in tap_offs[kd]], axis=0)  # (25*C2, Q)
        acc = acc + jnp.dot(w_ref[kd], xg, preferred_element_type=jnp.float32)
    z_ref[0] = acc                                      # lane-dense (C2, Q) store
    zm = acc * m_ref[...]                               # mask out H/W-halo columns for stats
    st_ref[0] = jnp.concatenate(
        [jnp.sum(zm, axis=1, keepdims=True),
         jnp.sum(zm * zm, axis=1, keepdims=True)], axis=1)


def _affine_prelu(z, sc, sh, al):
    t = z * sc + sh
    return jnp.where(t > 0, t, al * t)


def _store_pf(ypf_ref, y, m, front, back):
    # write the bf16 padded-flat activation (zero depth halo + masked H/W halo)
    c2, q = y.shape
    ypf_ref[0, :, 0:front] = jnp.zeros((c2, front), jnp.bfloat16)
    ypf_ref[0, :, front:front + q] = jnp.where(m > 0, y, 0.0).astype(jnp.bfloat16)
    ypf_ref[0, :, front + q:front + q + back] = jnp.zeros((c2, back), jnp.bfloat16)


def _bn_prelu_to_pf_kernel(z_ref, sc_ref, sh_ref, al_ref, m_ref, ypf_ref, *, front, back):
    y = _affine_prelu(z_ref[0], sc_ref[...], sh_ref[...], al_ref[...])        # (C2, Q) f32
    _store_pf(ypf_ref, y, m_ref[...], front, back)


def _bn_prelu_dual_kernel(z_ref, sc_ref, sh_ref, al_ref, m_ref, ypf_ref, yres_ref, *,
                          front, back):
    y = _affine_prelu(z_ref[0], sc_ref[...], sh_ref[...], al_ref[...])
    yres_ref[0] = y                                     # f32 residual copy
    _store_pf(ypf_ref, y, m_ref[...], front, back)      # bf16 input of the next conv


def _bn_prelu_residual_kernel(z_ref, y_ref, sc_ref, sh_ref, ai_ref, ao_ref, o_ref):
    # last conv: BN + inner PReLU + residual add + outer PReLU, all fused
    t = _affine_prelu(z_ref[0], sc_ref[...], sh_ref[...], ai_ref[...])
    s = t + y_ref[0]
    o_ref[0] = jnp.where(s > 0, s, ao_ref[...] * s)


# --------------------------- pallas_call wrappers --------------------------- #

def _pallas_down_conv(a_pad, w_mat):
    n, k0, q = a_pad.shape
    c2 = w_mat.shape[0]
    return pl.pallas_call(
        _down_conv_kernel,
        grid=(n,),
        in_specs=[pl.BlockSpec((1, k0, q), lambda i: (i, 0, 0)),
                  pl.BlockSpec((c2, k0), lambda i: (0, 0))],
        out_specs=(pl.BlockSpec((1, c2, q), lambda i: (i, 0, 0)),
                   pl.BlockSpec((1, c2, 2), lambda i: (i, 0, 0))),
        out_shape=(jax.ShapeDtypeStruct((n, c2, q), jnp.float32),
                   jax.ShapeDtypeStruct((n, c2, 2), jnp.float32)),
        compiler_params=_cparams(),
    )(a_pad, w_mat)


def _pallas_conv5(a_pf, w_grp, mask, tap_offs, q):
    n, c2, dhw = a_pf.shape
    kern = functools.partial(_conv5_kernel, tap_offs=tap_offs, q=q)
    return pl.pallas_call(
        kern,
        grid=(n,),
        in_specs=[pl.BlockSpec((1, c2, dhw), lambda i: (i, 0, 0)),
                  pl.BlockSpec(w_grp.shape, lambda i: (0, 0, 0)),
                  pl.BlockSpec((1, q), lambda i: (0, 0))],
        out_specs=(pl.BlockSpec((1, c2, q), lambda i: (i, 0, 0)),
                   pl.BlockSpec((1, c2, 2), lambda i: (i, 0, 0))),
        out_shape=(jax.ShapeDtypeStruct((n, c2, q), jnp.float32),
                   jax.ShapeDtypeStruct((n, c2, 2), jnp.float32)),
        compiler_params=_cparams(),
    )(a_pf, w_grp, mask)


def _pallas_bn_prelu_pf(z, sc, sh, al, mask, front, back, dhw, want_res):
    n, c2, q = z.shape
    if want_res:
        kern = functools.partial(_bn_prelu_dual_kernel, front=front, back=back)
        out_shape = (jax.ShapeDtypeStruct((n, c2, dhw), jnp.bfloat16),
                     jax.ShapeDtypeStruct((n, c2, q), jnp.float32))
        out_specs = (pl.BlockSpec((1, c2, dhw), lambda i: (i, 0, 0)),
                     pl.BlockSpec((1, c2, q), lambda i: (i, 0, 0)))
    else:
        kern = functools.partial(_bn_prelu_to_pf_kernel, front=front, back=back)
        out_shape = jax.ShapeDtypeStruct((n, c2, dhw), jnp.bfloat16)
        out_specs = pl.BlockSpec((1, c2, dhw), lambda i: (i, 0, 0))
    return pl.pallas_call(
        kern,
        grid=(n,),
        in_specs=[pl.BlockSpec((1, c2, q), lambda i: (i, 0, 0)),
                  pl.BlockSpec((c2, 1), lambda i: (0, 0)),
                  pl.BlockSpec((c2, 1), lambda i: (0, 0)),
                  pl.BlockSpec((c2, 1), lambda i: (0, 0)),
                  pl.BlockSpec((1, q), lambda i: (0, 0))],
        out_specs=out_specs,
        out_shape=out_shape,
        compiler_params=_cparams(),
    )(z, sc, sh, al, mask)


def _pallas_bn_prelu_residual(z, y_res, sc, sh, a_in, a_out):
    n, c2, q = z.shape
    return pl.pallas_call(
        _bn_prelu_residual_kernel,
        grid=(n,),
        in_specs=[pl.BlockSpec((1, c2, q), lambda i: (i, 0, 0)),
                  pl.BlockSpec((1, c2, q), lambda i: (i, 0, 0)),
                  pl.BlockSpec((c2, 1), lambda i: (0, 0)),
                  pl.BlockSpec((c2, 1), lambda i: (0, 0)),
                  pl.BlockSpec((c2, 1), lambda i: (0, 0)),
                  pl.BlockSpec((c2, 1), lambda i: (0, 0))],
        out_specs=pl.BlockSpec((1, c2, q), lambda i: (i, 0, 0)),
        out_shape=jax.ShapeDtypeStruct((n, c2, q), jnp.float32),
        compiler_params=_cparams(),
    )(z, y_res, sc, sh, a_in, a_out)


# ------------------------------- JAX-side glue ------------------------------- #

def _col(v):
    return v.reshape(-1, 1).astype(jnp.float32)


def _bn_scale_shift(stats, gamma, beta, count):
    # finalize the fused per-block (sum, sumsq) partials -> BN affine (training mode)
    tot = stats.sum(axis=0)                      # (C2, 2)
    mean = tot[:, 0] / count
    var = jnp.maximum(tot[:, 1] / count - mean * mean, 0.0)
    scale = gamma * lax.rsqrt(var + EPS)
    shift = beta - mean * scale
    return _col(scale), _col(shift)


def _space_to_depth_pad(x):
    # (N, Cin, D, H, W) -> (N, 8*Cin, Dp*Hpad*Wpad) bf16; rows ordered (kd, kh, kw, cin),
    # H/W halo columns are exactly zero so the down-conv output is zero there too.
    # TODO(synk): fold this stride-2 gather into the down-conv kernel via a BlockSpec
    # index_map to remove the one remaining XLA repack pass over x.
    n, cin, d, h, w = x.shape
    dp, hp, wp = d // 2, h // 2, w // 2
    x = x[:, :, :2 * dp, :2 * hp, :2 * wp]
    p = x.reshape(n, cin, dp, 2, hp, 2, wp, 2).transpose(0, 3, 5, 7, 1, 2, 4, 6)
    p = p.reshape(n, 8 * cin, dp, hp, wp)
    p = jnp.pad(p, ((0, 0), (0, 0), (0, 0), (2, 2), (2, 2)))
    return p.reshape(n, 8 * cin, dp * (hp + 4) * (wp + 4)).astype(jnp.bfloat16)


def down_transition_forward(x, params):
    n, cin, d, h, w = x.shape
    c2 = 2 * cin
    dp, hp, wp = d // 2, h // 2, w // 2
    hpad, wpad = hp + 4, wp + 4
    hw = hpad * wpad
    q = dp * hw                       # "interior-compact" flat length (keeps H/W halo cols)
    front = PADF * hw
    back = PADF * hw
    dhw = (dp + 2 * PADF) * hw        # "padded-flat" length (adds zero depth halo planes)
    count = float(n * dp * hp * wp)

    # 0/1 mask of valid (non H/W-halo) columns of the interior-compact layout
    idx = jnp.arange(q, dtype=jnp.int32)
    hh = (idx % hw) // wpad
    ww = idx % wpad
    mask = (((hh >= 2) & (hh < 2 + hp) & (ww >= 2) & (ww < 2 + wp))
            .astype(jnp.float32).reshape(1, q))

    # static tap offsets into the padded-flat volume, grouped by kd
    tap_offs = tuple(
        tuple(front + (kd - 2) * hw + (kh - 2) * wpad + (kw - 2)
              for kh in range(5) for kw in range(5))
        for kd in range(5))

    # ---- down_conv (k=2, s=2, bias=False) with fused BN statistics ----
    a_pad = _space_to_depth_pad(x.astype(jnp.float32))
    w_down = (jnp.transpose(params["w_down"], (0, 2, 3, 4, 1))
              .reshape(c2, 8 * cin).astype(jnp.bfloat16))
    z1, st1 = _pallas_down_conv(a_pad, w_down)
    sc1, sh1 = _bn_scale_shift(st1, params["bn1_gamma"], params["bn1_beta"], count)

    # ---- BN + outer PReLU (fused); emits bf16 padded-flat conv input + f32 residual ----
    alpha_out = _col(params["alpha_out"])
    y_pf, y_res = _pallas_bn_prelu_pf(z1, sc1, sh1, alpha_out, mask,
                                      front, back, dhw, want_res=True)

    # ---- dropout: dropout_prob=None -> nn.Identity ----

    # ---- self.ops: nconvs x (Conv3d k=5 'same' -> BN -> PReLU) ----
    # TODO(synk): for large volumes add a depth-tile grid axis; blocks are whole
    # per-sample volumes here, sized for small/medium feature maps in VMEM.
    cur_pf = y_pf
    out_q = None
    nops = len(params["ops"])
    for i, (w5, g, b, a_in) in enumerate(params["ops"]):
        w_grp = (jnp.transpose(w5, (2, 0, 3, 4, 1))
                 .reshape(5, c2, 25 * c2).astype(jnp.bfloat16))
        z, st = _pallas_conv5(cur_pf, w_grp, mask, tap_offs, q)
        sc, sh = _bn_scale_shift(st, g, b, count)
        if i + 1 < nops:
            cur_pf = _pallas_bn_prelu_pf(z, sc, sh, _col(a_in), mask,
                                         front, back, dhw, want_res=False)
        else:
            out_q = _pallas_bn_prelu_residual(z, y_res, sc, sh, _col(a_in), alpha_out)
    if out_q is None:                                   # nconvs == 0: out = PReLU_outer(y + y)
        s = y_res + y_res
        out_q = jnp.where(s > 0, s, alpha_out * s)

    # interior-compact -> NCDHW: drop the H/W halo columns (pure slice, no transpose)
    out = out_q.reshape(n, c2, dp, hpad, wpad)[:, :, :, 2:2 + hp, 2:2 + wp]
    return out


# ---------------------------- pure-XLA reference ----------------------------- #

def reference_forward(x, params):
    # Conv operands are cast to bf16 (f32 accumulation) to mirror the kernel's
    # documented MXU precision choice; everything else is f32.
    xt = jnp.transpose(x, (0, 2, 3, 4, 1)).astype(jnp.float32)
    dn = ("NDHWC", "DHWIO", "NDHWC")

    def conv(v, wt, strides, padding):
        w_d = jnp.transpose(wt, (2, 3, 4, 1, 0)).astype(jnp.bfloat16)
        return lax.conv_general_dilated(v.astype(jnp.bfloat16), w_d, strides, padding,
                                        dimension_numbers=dn,
                                        preferred_element_type=jnp.float32)

    def bn_prelu(v, gamma, beta, alpha):
        mean = v.mean(axis=(0, 1, 2, 3))
        var = ((v - mean) ** 2).mean(axis=(0, 1, 2, 3))
        t = (v - mean) * lax.rsqrt(var + EPS) * gamma + beta
        return jnp.where(t > 0, t, alpha * t)

    y = conv(xt, params["w_down"], (2, 2, 2), "VALID")
    y = bn_prelu(y, params["bn1_gamma"], params["bn1_beta"], params["alpha_out"])
    cur = y
    for (w5, g, b, a_in) in params["ops"]:
        z = conv(cur, w5, (1, 1, 1), "SAME")
        cur = bn_prelu(z, g, b, a_in)
    s = cur + y
    out = jnp.where(s > 0, s, params["alpha_out"] * s)
    return jnp.transpose(out, (0, 4, 1, 2, 3))


# ------------------------------------ main ------------------------------------ #

if __name__ == "__main__":
    # DownTransition(spatial_dims=3, in_channels=4, nconvs=2, act='prelu',
    #                dropout_prob=None, bias=False), training mode.
    cin, nconvs = 4, 2
    c2 = 2 * cin
    n, d, h, w = 2, 8, 8, 8

    key = jax.random.PRNGKey(0)
    ks = jax.random.split(key, 4 + 3 * nconvs)

    params = {
        # down_conv.weight: (2*Cin, Cin, 2, 2, 2)
        "w_down": 0.2 * jax.random.normal(ks[0], (c2, cin, 2, 2, 2), jnp.float32),
        # BatchNorm3d(2*Cin) affine params
        "bn1_gamma": 1.0 + 0.1 * jax.random.normal(ks[1], (c2,), jnp.float32),
        "bn1_beta": 0.1 * jax.random.normal(ks[2], (c2,), jnp.float32),
        # nn.PReLU(num_parameters=2*Cin), default 0.25 (shared by first & last activation)
        "alpha_out": jnp.full((c2,), 0.25, jnp.float32),
        "ops": [],
    }
    for i in range(nconvs):
        w5 = 0.05 * jax.random.normal(ks[3 + 3 * i], (c2, c2, 5, 5, 5), jnp.float32)
        g = 1.0 + 0.1 * jax.random.normal(ks[4 + 3 * i], (c2,), jnp.float32)
        b = 0.1 * jax.random.normal(ks[5 + 3 * i], (c2,), jnp.float32)
        a_in = jnp.full((c2,), 0.25, jnp.float32)   # inner nn.PReLU() scalar, broadcast
        params["ops"].append((w5, g, b, a_in))

    x = jax.random.normal(jax.random.PRNGKey(1), (n, cin, d, h, w), jnp.float32)

    out = jax.block_until_ready(jax.jit(down_transition_forward)(x, params))
    ref = jax.block_until_ready(jax.jit(reference_forward)(x, params))

    # Both paths use bf16 MXU operands (per perf review) with f32 accumulation,
    # so the comparison stays tight.
    np.testing.assert_allclose(np.asarray(out), np.asarray(ref), rtol=5e-3, atol=5e-3)
    assert out.shape == (n, c2, d // 2, h // 2, w // 2)

    print("KERNEL_OK")
</pallas_src>

<mosaic_0001>
module attributes {stable_mosaic.version = 11 : i64} {
  func.func @_down_conv_kernel(%arg0: i32, %arg1: memref<1x32x256xbf16, #tpu.memory_space<vmem>>, %arg2: memref<8x32xbf16, #tpu.memory_space<vmem>>, %arg3: memref<1x8x256xf32, #tpu.memory_space<vmem>>, %arg4: memref<1x8x2xf32, #tpu.memory_space<vmem>>) attributes {dimension_semantics = [#tpu.dimension_semantics<parallel>], iteration_bounds = array<i64: 2>, scalar_prefetch = 0 : i64, scratch_operands = 0 : i64, tpu.core_type = #tpu.core_type<tc>, window_params = [{transform_indices = @transform_0, window_bounds = array<i64: 1, 32, 256>}, {pipeline_mode = #tpu.pipeline_mode<synchronous>, transform_indices = @transform_1, window_bounds = array<i64: 8, 32>}, {transform_indices = @transform_2, window_bounds = array<i64: 1, 8, 256>}, {transform_indices = @transform_3, window_bounds = array<i64: 1, 8, 2>}]} {
    %c0 = arith.constant 0 : index
    %c0_0 = arith.constant 0 : index
    %0 = vector.load %arg2[%c0, %c0_0] : memref<8x32xbf16, #tpu.memory_space<vmem>>, vector<8x32xbf16>
    %c0_1 = arith.constant 0 : index
    %c0_2 = arith.constant 0 : index
    %c0_3 = arith.constant 0 : index
    %1 = vector.load %arg1[%c0_1, %c0_2, %c0_3] : memref<1x32x256xbf16, #tpu.memory_space<vmem>>, vector<1x32x256xbf16>
    %2 = vector.shape_cast %1 : vector<1x32x256xbf16> to vector<32x256xbf16>
    %cst = arith.constant dense<0.000000e+00> : vector<8x256xf32>
    %3 = tpu.matmul %0, %2, %cst {dimension_numbers = #tpu.dot_dimension_numbers<[1], [0], [0], [1], [0, 0, 1, 1], [], []>} : vector<8x32xbf16>, vector<32x256xbf16>, vector<8x256xf32> -> vector<8x256xf32>
    %c0_4 = arith.constant 0 : index
    %c0_5 = arith.constant 0 : index
    %c0_6 = arith.constant 0 : index
    %4 = vector.load %arg3[%c0_4, %c0_5, %c0_6] : memref<1x8x256xf32, #tpu.memory_space<vmem>>, vector<1x8x256xf32>
    %5 = vector.shape_cast %4 : vector<1x8x256xf32> to vector<8x256xf32>
    %6 = vector.shape_cast %3 : vector<8x256xf32> to vector<1x8x256xf32>
    tpu.vector_store %arg3[%c0_4, %c0_5, %c0_6], %6 {strides = array<i32>} : memref<1x8x256xf32, #tpu.memory_space<vmem>>, vector<1x8x256xf32>,
    %cst_7 = arith.constant dense<0.000000e+00> : vector<8xf32>
    %7 = vector.multi_reduction <add>, %3, %cst_7 [1] : vector<8x256xf32> to vector<8xf32>
    %8 = vector.shape_cast %7 : vector<8xf32> to vector<8x1xf32>
    %9 = arith.mulf %3, %3 : vector<8x256xf32>
    %cst_8 = arith.constant dense<0.000000e+00> : vector<8xf32>
    %10 = vector.multi_reduction <add>, %9, %cst_8 [1] : vector<8x256xf32> to vector<8xf32>
    %11 = vector.shape_cast %10 : vector<8xf32> to vector<8x1xf32>
    %12 = tpu.concatenate %8, %11 in 1 : vector<8x1xf32>, vector<8x1xf32> -> vector<8x2xf32>
    %c0_9 = arith.constant 0 : index
    %c0_10 = arith.constant 0 : index
    %c0_11 = arith.constant 0 : index
    %13 = vector.load %arg4[%c0_9, %c0_10, %c0_11] : memref<1x8x2xf32, #tpu.memory_space<vmem>>, vector<1x8x2xf32>
    %14 = vector.shape_cast %13 : vector<1x8x2xf32> to vector<8x2xf32>
    %15 = vector.shape_cast %12 : vector<8x2xf32> to vector<1x8x2xf32>
    tpu.vector_store %arg4[%c0_9, %c0_10, %c0_11], %15 {strides = array<i32>} : memref<1x8x2xf32, #tpu.memory_space<vmem>>, vector<1x8x2xf32>,
    return
  }
  func.func @transform_0(%arg0: i32) -> (i32, i32, i32) {
    %c0_i32 = arith.constant 0 : i32
    %c0_i32_0 = arith.constant 0 : i32
    %c0_i32_1 = arith.constant 0 : i32
    return %arg0, %c0_i32, %c0_i32_0 : i32, i32, i32
  }
  func.func @transform_1(%arg0: i32) -> (i32, i32) {
    %c0_i32 = arith.constant 0 : i32
    %c0_i32_0 = arith.constant 0 : i32
    %c0_i32_1 = arith.constant 0 : i32
    return %c0_i32, %c0_i32_0 : i32, i32
  }
  func.func @transform_2(%arg0: i32) -> (i32, i32, i32) {
    %c0_i32 = arith.constant 0 : i32
    %c0_i32_0 = arith.constant 0 : i32
    %c0_i32_1 = arith.constant 0 : i32
    return %arg0, %c0_i32, %c0_i32_0 : i32, i32, i32
  }
  func.func @transform_3(%arg0: i32) -> (i32, i32, i32) {
    %c0_i32 = arith.constant 0 : i32
    %c0_i32_0 = arith.constant 0 : i32
    %c0_i32_1 = arith.constant 0 : i32
    return %arg0, %c0_i32, %c0_i32_0 : i32, i32, i32
  }
}

module attributes {stable_mosaic.version = 11 : i64} {
  func.func @_conv5_kernel(%arg0: i32, %arg1: memref<1x8x640xbf16, #tpu.memory_space<vmem>>, %arg2: memref<5x8x200xbf16, #tpu.memory_space<vmem>>, %arg3: memref<1x256xf32, #tpu.memory_space<vmem>>, %arg4: memref<1x8x256xf32, #tpu.memory_space<vmem>>, %arg5: memref<1x8x2xf32, #tpu.memory_space<vmem>>) attributes {dimension_semantics = [#tpu.dimension_semantics<parallel>], iteration_bounds = array<i64: 2>, scalar_prefetch = 0 : i64, scratch_operands = 0 : i64, tpu.core_type = #tpu.core_type<tc>, window_params = [{transform_indices = @transform_0, window_bounds = array<i64: 1, 8, 640>}, {pipeline_mode = #tpu.pipeline_mode<synchronous>, transform_indices = @transform_1, window_bounds = array<i64: 5, 8, 200>}, {pipeline_mode = #tpu.pipeline_mode<synchronous>, transform_indices = @transform_2, window_bounds = array<i64: 1, 256>}, {transform_indices = @transform_3, window_bounds = array<i64: 1, 8, 256>}, {transform_indices = @transform_4, window_bounds = array<i64: 1, 8, 2>}]} {
    %c0 = arith.constant 0 : index
    %c0_0 = arith.constant 0 : index
    %c0_1 = arith.constant 0 : index
    %0 = vector.load %arg1[%c0, %c0_0, %c0_1] : memref<1x8x640xbf16, #tpu.memory_space<vmem>>, vector<1x8x640xbf16>
    %1 = vector.shape_cast %0 : vector<1x8x640xbf16> to vector<8x640xbf16>
    %cst = arith.constant 0.000000e+00 : f32
    %2 = vector.broadcast %cst : f32 to vector<8x256xf32>
    %3 = vector.extract_strided_slice %1 {offsets = [0, 46], sizes = [8, 256], strides = [1, 1]} : vector<8x640xbf16> to vector<8x256xbf16>
    %4 = vector.extract_strided_slice %1 {offsets = [0, 47], sizes = [8, 256], strides = [1, 1]} : vector<8x640xbf16> to vector<8x256xbf16>
    %5 = vector.extract_strided_slice %1 {offsets = [0, 48], sizes = [8, 256], strides = [1, 1]} : vector<8x640xbf16> to vector<8x256xbf16>
    %6 = vector.extract_strided_slice %1 {offsets = [0, 49], sizes = [8, 256], strides = [1, 1]} : vector<8x640xbf16> to vector<8x256xbf16>
    %7 = vector.extract_strided_slice %1 {offsets = [0, 50], sizes = [8, 256], strides = [1, 1]} : vector<8x640xbf16> to vector<8x256xbf16>
    %8 = vector.extract_strided_slice %1 {offsets = [0, 54], sizes = [8, 256], strides = [1, 1]} : vector<8x640xbf16> to vector<8x256xbf16>
    %9 = vector.extract_strided_slice %1 {offsets = [0, 55], sizes = [8, 256], strides = [1, 1]} : vector<8x640xbf16> to vector<8x256xbf16>
    %10 = vector.extract_strided_slice %1 {offsets = [0, 56], sizes = [8, 256], strides = [1, 1]} : vector<8x640xbf16> to vector<8x256xbf16>
    %11 = vector.extract_strided_slice %1 {offsets = [0, 57], sizes = [8, 256], strides = [1, 1]} : vector<8x640xbf16> to vector<8x256xbf16>
    %12 = vector.extract_strided_slice %1 {offsets = [0, 58], sizes = [8, 256], strides = [1, 1]} : vector<8x640xbf16> to vector<8x256xbf16>
    %13 = vector.extract_strided_slice %1 {offsets = [0, 62], sizes = [8, 256], strides = [1, 1]} : vector<8x640xbf16> to vector<8x256xbf16>
    %14 = vector.extract_strided_slice %1 {offsets = [0, 63], sizes = [8, 256], strides = [1, 1]} : vector<8x640xbf16> to vector<8x256xbf16>
    %15 = vector.extract_strided_slice %1 {offsets = [0, 64], sizes = [8, 256], strides = [1, 1]} : vector<8x640xbf16> to vector<8x256xbf16>
    %16 = vector.extract_strided_slice %1 {offsets = [0, 65], sizes = [8, 256], strides = [1, 1]} : vector<8x640xbf16> to vector<8x256xbf16>
    %17 = vector.extract_strided_slice %1 {offsets = [0, 66], sizes = [8, 256], strides = [1, 1]} : vector<8x640xbf16> to vector<8x256xbf16>
    %18 = vector.extract_strided_slice %1 {offsets = [0, 70], sizes = [8, 256], strides = [1, 1]} : vector<8x640xbf16> to vector<8x256xbf16>
    %19 = vector.extract_strided_slice %1 {offsets = [0, 71], sizes = [8, 256], strides = [1, 1]} : vector<8x640xbf16> to vector<8x256xbf16>
    %20 = vector.extract_strided_slice %1 {offsets = [0, 72], sizes = [8, 256], strides = [1, 1]} : vector<8x640xbf16> to vector<8x256xbf16>
    %21 = vector.extract_strided_slice %1 {offsets = [0, 73], sizes = [8, 256], strides = [1, 1]} : vector<8x640xbf16> to vector<8x256xbf16>
    %22 = vector.extract_strided_slice %1 {offsets = [0, 74], sizes = [8, 256], strides = [1, 1]} : vector<8x640xbf16> to vector<8x256xbf16>
    %23 = vector.extract_strided_slice %1 {offsets = [0, 78], sizes = [8, 256], strides = [1, 1]} : vector<8x640xbf16> to vector<8x256xbf16>
    %24 = vector.extract_strided_slice %1 {offsets = [0, 79], sizes = [8, 256], strides = [1, 1]} : vector<8x640xbf16> to vector<8x256xbf16>
    %25 = vector.extract_strided_slice %1 {offsets = [0, 80], sizes = [8, 256], strides = [1, 1]} : vector<8x640xbf16> to vector<8x256xbf16>
    %26 = vector.extract_strided_slice %1 {offsets = [0, 81], sizes = [8, 256], strides = [1, 1]} : vector<8x640xbf16> to vector<8x256xbf16>
    %27 = vector.extract_strided_slice %1 {offsets = [0, 82], sizes = [8, 256], strides = [1, 1]} : vector<8x640xbf16> to vector<8x256xbf16>
    %28 = tpu.concatenate %3, %4, %5, %6, %7, %8, %9, %10, %11, %12, %13, %14, %15, %16, %17, %18 in 0 : vector<8x256xbf16>, vector<8x256xbf16>, vector<8x256xbf16>, vector<8x256xbf16>, vector<8x256xbf16>, vector<8x256xbf16>, vector<8x256xbf16>, vector<8x256xbf16>, vector<8x256xbf16>, vector<8x256xbf16>, vector<8x256xbf16>, vector<8x256xbf16>, vector<8x256xbf16>, vector<8x256xbf16>, vector<8x256xbf16>, vector<8x256xbf16> -> vector<128x256xbf16>
    %29 = tpu.concatenate %19, %20, %21, %22, %23, %24, %25, %26, %27 in 0 : vector<8x256xbf16>, vector<8x256xbf16>, vector<8x256xbf16>, vector<8x256xbf16>, vector<8x256xbf16>, vector<8x256xbf16>, vector<8x256xbf16>, vector<8x256xbf16>, vector<8x256xbf16> -> vector<72x256xbf16>
    %30 = tpu.concatenate %28, %29 in 0 : vector<128x256xbf16>, vector<72x256xbf16> -> vector<200x256xbf16>
    %c0_2 = arith.constant 0 : index
    %c0_3 = arith.constant 0 : index
    %c0_4 = arith.constant 0 : index
    %31 = vector.load %arg2[%c0_2, %c0_3, %c0_4] : memref<5x8x200xbf16, #tpu.memory_space<vmem>>, vector<1x8x200xbf16>
    %32 = vector.shape_cast %31 : vector<1x8x200xbf16> to vector<8x200xbf16>
    %cst_5 = arith.constant dense<0.000000e+00> : vector<8x256xf32>
    %33 = tpu.matmul %32, %30, %cst_5 {dimension_numbers = #tpu.dot_dimension_numbers<[1], [0], [0], [1], [0, 0, 1, 1], [], []>} : vector<8x200xbf16>, vector<200x256xbf16>, vector<8x256xf32> -> vector<8x256xf32>
    %34 = arith.addf %2, %33 : vector<8x256xf32>
    %35 = vector.extract_strided_slice %1 {offsets = [0, 110], sizes = [8, 256], strides = [1, 1]} : vector<8x640xbf16> to vector<8x256xbf16>
    %36 = vector.extract_strided_slice %1 {offsets = [0, 111], sizes = [8, 256], strides = [1, 1]} : vector<8x640xbf16> to vector<8x256xbf16>
    %37 = vector.extract_strided_slice %1 {offsets = [0, 112], sizes = [8, 256], strides = [1, 1]} : vector<8x640xbf16> to vector<8x256xbf16>
    %38 = vector.extract_strided_slice %1 {offsets = [0, 113], sizes = [8, 256], strides = [1, 1]} : vector<8x640xbf16> to vector<8x256xbf16>
    %39 = vector.extract_strided_slice %1 {offsets = [0, 114], sizes = [8, 256], strides = [1, 1]} : vector<8x640xbf16> to vector<8x256xbf16>
    %40 = vector.extract_strided_slice %1 {offsets = [0, 118], sizes = [8, 256], strides = [1, 1]} : vector<8x640xbf16> to vector<8x256xbf16>
    %41 = vector.extract_strided_slice %1 {offsets = [0, 119], sizes = [8, 256], strides = [1, 1]} : vector<8x640xbf16> to vector<8x256xbf16>
    %42 = vector.extract_strided_slice %1 {offsets = [0, 120], sizes = [8, 256], strides = [1, 1]} : vector<8x640xbf16> to vector<8x256xbf16>
    %43 = vector.extract_strided_slice %1 {offsets = [0, 121], sizes = [8, 256], strides = [1, 1]} : vector<8x640xbf16> to vector<8x256xbf16>
    %44 = vector.extract_strided_slice %1 {offsets = [0, 122], sizes = [8, 256], strides = [1, 1]} : vector<8x640xbf16> to vector<8x256xbf16>
    %45 = vector.extract_strided_slice %1 {offsets = [0, 126], sizes = [8, 256], strides = [1, 1]} : vector<8x640xbf16> to vector<8x256xbf16>
    %46 = vector.extract_strided_slice %1 {offsets = [0, 127], sizes = [8, 256], strides = [1, 1]} : vector<8x640xbf16> to vector<8x256xbf16>
    %47 = vector.extract_strided_slice %1 {offsets = [0, 128], sizes = [8, 256], strides = [1, 1]} : vector<8x640xbf16> to vector<8x256xbf16>
    %48 = vector.extract_strided_slice %1 {offsets = [0, 129], sizes = [8, 256], strides = [1, 1]} : vector<8x640xbf16> to vector<8x256xbf16>
    %49 = vector.extract_strided_slice %1 {offsets = [0, 130], sizes = [8, 256], strides = [1, 1]} : vector<8x640xbf16> to vector<8x256xbf16>
    %50 = vector.extract_strided_slice %1 {offsets = [0, 134], sizes = [8, 256], strides = [1, 1]} : vector<8x640xbf16> to vector<8x256xbf16>
    %51 = vector.extract_strided_slice %1 {offsets = [0, 135], sizes = [8, 256], strides = [1, 1]} : vector<8x640xbf16> to vector<8x256xbf16>
    %52 = vector.extract_strided_slice %1 {offsets = [0, 136], sizes = [8, 256], strides = [1, 1]} : vector<8x640xbf16> to vector<8x256xbf16>
    %53 = vector.extract_strided_slice %1 {offsets = [0, 137], sizes = [8, 256], strides = [1, 1]} : vector<8x640xbf16> to vector<8x256xbf16>
    %54 = vector.extract_strided_slice %1 {offsets = [0, 138], sizes = [8, 256], strides = [1, 1]} : vector<8x640xbf16> to vector<8x256xbf16>
    %55 = vector.extract_strided_slice %1 {offsets = [0, 142], sizes = [8, 256], strides = [1, 1]} : vector<8x640xbf16> to vector<8x256xbf16>
    %56 = vector.extract_strided_slice %1 {offsets = [0, 143], sizes = [8, 256], strides = [1, 1]} : vector<8x640xbf16> to vector<8x256xbf16>
    %57 = vector.extract_strided_slice %1 {offsets = [0, 144], sizes = [8, 256], strides = [1, 1]} : vector<8x640xbf16> to vector<8x256xbf16>
    %58 = vector.extract_strided_slice %1 {offsets = [0, 145], sizes = [8, 256], strides = [1, 1]} : vector<8x640xbf16> to vector<8x256xbf16>
    %59 = vector.extract_strided_slice %1 {offsets = [0, 146], sizes = [8, 256], strides = [1, 1]} : vector<8x640xbf16> to vector<8x256xbf16>
    %60 = tpu.concatenate %35, %36, %37, %38, %39, %40, %41, %42, %43, %44, %45, %46, %47, %48, %49, %50 in 0 : vector<8x256xbf16>, vector<8x256xbf16>, vector<8x256xbf16>, vector<8x256xbf16>, vector<8x256xbf16>, vector<8x256xbf16>, vector<8x256xbf16>, vector<8x256xbf16>, vector<8x256xbf16>, vector<8x256xbf16>, vector<8x256xbf16>, vector<8x256xbf16>, vector<8x256xbf16>, vector<8x256xbf16>, vector<8x256xbf16>, vector<8x256xbf16> -> vector<128x256xbf16>
    %61 = tpu.concatenate %51, %52, %53, %54, %55, %56, %57, %58, %59 in 0 : vector<8x256xbf16>, vector<8x256xbf16>, vector<8x256xbf16>, vector<8x256xbf16>, vector<8x256xbf16>, vector<8x256xbf16>, vector<8x256xbf16>, vector<8x256xbf16>, vector<8x256xbf16> -> vector<72x256xbf16>
    %62 = tpu.concatenate %60, %61 in 0 : vector<128x256xbf16>, vector<72x256xbf16> -> vector<200x256xbf16>
    %c1 = arith.constant 1 : index
    %c0_6 = arith.constant 0 : index
    %c0_7 = arith.constant 0 : index
    %63 = vector.load %arg2[%c1, %c0_6, %c0_7] : memref<5x8x200xbf16, #tpu.memory_space<vmem>>, vector<1x8x200xbf16>
    %64 = vector.shape_cast %63 : vector<1x8x200xbf16> to vector<8x200xbf16>
    %cst_8 = arith.constant dense<0.000000e+00> : vector<8x256xf32>
    %65 = tpu.matmul %64, %62, %cst_8 {dimension_numbers = #tpu.dot_dimension_numbers<[1], [0], [0], [1], [0, 0, 1, 1], [], []>} : vector<8x200xbf16>, vector<200x256xbf16>, vector<8x256xf32> -> vector<8x256xf32>
    %66 = arith.addf %34, %65 : vector<8x256xf32>
    %67 = vector.extract_strided_slice %1 {offsets = [0, 174], sizes = [8, 256], strides = [1, 1]} : vector<8x640xbf16> to vector<8x256xbf16>
    %68 = vector.extract_strided_slice %1 {offsets = [0, 175], sizes = [8, 256], strides = [1, 1]} : vector<8x640xbf16> to vector<8x256xbf16>
    %69 = vector.extract_strided_slice %1 {offsets = [0, 176], sizes = [8, 256], strides = [1, 1]} : vector<8x640xbf16> to vector<8x256xbf16>
    %70 = vector.extract_strided_slice %1 {offsets = [0, 177], sizes = [8, 256], strides = [1, 1]} : vector<8x640xbf16> to vector<8x256xbf16>
    %71 = vector.extract_strided_slice %1 {offsets = [0, 178], sizes = [8, 256], strides = [1, 1]} : vector<8x640xbf16> to vector<8x256xbf16>
    %72 = vector.extract_strided_slice %1 {offsets = [0, 182], sizes = [8, 256], strides = [1, 1]} : vector<8x640xbf16> to vector<8x256xbf16>
    %73 = vector.extract_strided_slice %1 {offsets = [0, 183], sizes = [8, 256], strides = [1, 1]} : vector<8x640xbf16> to vector<8x256xbf16>
    %74 = vector.extract_strided_slice %1 {offsets = [0, 184], sizes = [8, 256], strides = [1, 1]} : vector<8x640xbf16> to vector<8x256xbf16>
    %75 = vector.extract_strided_slice %1 {offsets = [0, 185], sizes = [8, 256], strides = [1, 1]} : vector<8x640xbf16> to vector<8x256xbf16>
    %76 = vector.extract_strided_slice %1 {offsets = [0, 186], sizes = [8, 256], strides = [1, 1]} : vector<8x640xbf16> to vector<8x256xbf16>
    %77 = vector.extract_strided_slice %1 {offsets = [0, 190], sizes = [8, 256], strides = [1, 1]} : vector<8x640xbf16> to vector<8x256xbf16>
    %78 = vector.extract_strided_slice %1 {offsets = [0, 191], sizes = [8, 256], strides = [1, 1]} : vector<8x640xbf16> to vector<8x256xbf16>
    %79 = vector.extract_strided_slice %1 {offsets = [0, 192], sizes = [8, 256], strides = [1, 1]} : vector<8x640xbf16> to vector<8x256xbf16>
    %80 = vector.extract_strided_slice %1 {offsets = [0, 193], sizes = [8, 256], strides = [1, 1]} : vector<8x640xbf16> to vector<8x256xbf16>
    %81 = vector.extract_strided_slice %1 {offsets = [0, 194], sizes = [8, 256], strides = [1, 1]} : vector<8x640xbf16> to vector<8x256xbf16>
    %82 = vector.extract_strided_slice %1 {offsets = [0, 198], sizes = [8, 256], strides = [1, 1]} : vector<8x640xbf16> to vector<8x256xbf16>
    %83 = vector.extract_strided_slice %1 {offsets = [0, 199], sizes = [8, 256], strides = [1, 1]} : vector<8x640xbf16> to vector<8x256xbf16>
    %84 = vector.extract_strided_slice %1 {offsets = [0, 200], sizes = [8, 256], strides = [1, 1]} : vector<8x640xbf16> to vector<8x256xbf16>
    %85 = vector.extract_strided_slice %1 {offsets = [0, 201], sizes = [8, 256], strides = [1, 1]} : vector<8x640xbf16> to vector<8x256xbf16>
    %86 = vector.extract_strided_slice %1 {offsets = [0, 202], sizes = [8, 256], strides = [1, 1]} : vector<8x640xbf16> to vector<8x256xbf16>
    %87 = vector.extract_strided_slice %1 {offsets = [0, 206], sizes = [8, 256], strides = [1, 1]} : vector<8x640xbf16> to vector<8x256xbf16>
    %88 = vector.extract_strided_slice %1 {offsets = [0, 207], sizes = [8, 256], strides = [1, 1]} : vector<8x640xbf16> to vector<8x256xbf16>
    %89 = vector.extract_strided_slice %1 {offsets = [0, 208], sizes = [8, 256], strides = [1, 1]} : vector<8x640xbf16> to vector<8x256xbf16>
    %90 = vector.extract_strided_slice %1 {offsets = [0, 209], sizes = [8, 256], strides = [1, 1]} : vector<8x640xbf16> to vector<8x256xbf16>
    %91 = vector.extract_strided_slice %1 {offsets = [0, 210], sizes = [8, 256], strides = [1, 1]} : vector<8x640xbf16> to vector<8x256xbf16>
    %92 = tpu.concatenate %67, %68, %69, %70, %71, %72, %73, %74, %75, %76, %77, %78, %79, %80, %81, %82 in 0 : vector<8x256xbf16>, vector<8x256xbf16>, vector<8x256xbf16>, vector<8x256xbf16>, vector<8x256xbf16>, vector<8x256xbf16>, vector<8x256xbf16>, vector<8x256xbf16>, vector<8x256xbf16>, vector<8x256xbf16>, vector<8x256xbf16>, vector<8x256xbf16>, vector<8x256xbf16>, vector<8x256xbf16>, vector<8x256xbf16>, vector<8x256xbf16> -> vector<128x256xbf16>
    %93 = tpu.concatenate %83, %84, %85, %86, %87, %88, %89, %90, %91 in 0 : vector<8x256xbf16>, vector<8x256xbf16>, vector<8x256xbf16>, vector<8x256xbf16>, vector<8x256xbf16>, vector<8x256xbf16>, vector<8x256xbf16>, vector<8x256xbf16>, vector<8x256xbf16> -> vector<72x256xbf16>
    %94 = tpu.concatenate %92, %93 in 0 : vector<128x256xbf16>, vector<72x256xbf16> -> vector<200x256xbf16>
    %c2 = arith.constant 2 : index
    %c0_9 = arith.constant 0 : index
    %c0_10 = arith.constant 0 : index
    %95 = vector.load %arg2[%c2, %c0_9, %c0_10] : memref<5x8x200xbf16, #tpu.memory_space<vmem>>, vector<1x8x200xbf16>
    %96 = vector.shape_cast %95 : vector<1x8x200xbf16> to vector<8x200xbf16>
    %cst_11 = arith.constant dense<0.000000e+00> : vector<8x256xf32>
    %97 = tpu.matmul %96, %94, %cst_11 {dimension_numbers = #tpu.dot_dimension_numbers<[1], [0], [0], [1], [0, 0, 1, 1], [], []>} : vector<8x200xbf16>, vector<200x256xbf16>, vector<8x256xf32> -> vector<8x256xf32>
    %98 = arith.addf %66, %97 : vector<8x256xf32>
    %99 = vector.extract_strided_slice %1 {offsets = [0, 238], sizes = [8, 256], strides = [1, 1]} : vector<8x640xbf16> to vector<8x256xbf16>
    %100 = vector.extract_strided_slice %1 {offsets = [0, 239], sizes = [8, 256], strides = [1, 1]} : vector<8x640xbf16> to vector<8x256xbf16>
    %101 = vector.extract_strided_slice %1 {offsets = [0, 240], sizes = [8, 256], strides = [1, 1]} : vector<8x640xbf16> to vector<8x256xbf16>
    %102 = vector.extract_strided_slice %1 {offsets = [0, 241], sizes = [8, 256], strides = [1, 1]} : vector<8x640xbf16> to vector<8x256xbf16>
    %103 = vector.extract_strided_slice %1 {offsets = [0, 242], sizes = [8, 256], strides = [1, 1]} : vector<8x640xbf16> to vector<8x256xbf16>
    %104 = vector.extract_strided_slice %1 {offsets = [0, 246], sizes = [8, 256], strides = [1, 1]} : vector<8x640xbf16> to vector<8x256xbf16>
    %105 = vector.extract_strided_slice %1 {offsets = [0, 247], sizes = [8, 256], strides = [1, 1]} : vector<8x640xbf16> to vector<8x256xbf16>
    %106 = vector.extract_strided_slice %1 {offsets = [0, 248], sizes = [8, 256], strides = [1, 1]} : vector<8x640xbf16> to vector<8x256xbf16>
    %107 = vector.extract_strided_slice %1 {offsets = [0, 249], sizes = [8, 256], strides = [1, 1]} : vector<8x640xbf16> to vector<8x256xbf16>
    %108 = vector.extract_strided_slice %1 {offsets = [0, 250], sizes = [8, 256], strides = [1, 1]} : vector<8x640xbf16> to vector<8x256xbf16>
    %109 = vector.extract_strided_slice %1 {offsets = [0, 254], sizes = [8, 256], strides = [1, 1]} : vector<8x640xbf16> to vector<8x256xbf16>
    %110 = vector.extract_strided_slice %1 {offsets = [0, 255], sizes = [8, 256], strides = [1, 1]} : vector<8x640xbf16> to vector<8x256xbf16>
    %111 = vector.extract_strided_slice %1 {offsets = [0, 256], sizes = [8, 256], strides = [1, 1]} : vector<8x640xbf16> to vector<8x256xbf16>
    %112 = vector.extract_strided_slice %1 {offsets = [0, 257], sizes = [8, 256], strides = [1, 1]} : vector<8x640xbf16> to vector<8x256xbf16>
    %113 = vector.extract_strided_slice %1 {offsets = [0, 258], sizes = [8, 256], strides = [1, 1]} : vector<8x640xbf16> to vector<8x256xbf16>
    %114 = vector.extract_strided_slice %1 {offsets = [0, 262], sizes = [8, 256], strides = [1, 1]} : vector<8x640xbf16> to vector<8x256xbf16>
    %115 = vector.extract_strided_slice %1 {offsets = [0, 263], sizes = [8, 256], strides = [1, 1]} : vector<8x640xbf16> to vector<8x256xbf16>
    %116 = vector.extract_strided_slice %1 {offsets = [0, 264], sizes = [8, 256], strides = [1, 1]} : vector<8x640xbf16> to vector<8x256xbf16>
    %117 = vector.extract_strided_slice %1 {offsets = [0, 265], sizes = [8, 256], strides = [1, 1]} : vector<8x640xbf16> to vector<8x256xbf16>
    %118 = vector.extract_strided_slice %1 {offsets = [0, 266], sizes = [8, 256], strides = [1, 1]} : vector<8x640xbf16> to vector<8x256xbf16>
    %119 = vector.extract_strided_slice %1 {offsets = [0, 270], sizes = [8, 256], strides = [1, 1]} : vector<8x640xbf16> to vector<8x256xbf16>
    %120 = vector.extract_strided_slice %1 {offsets = [0, 271], sizes = [8, 256], strides = [1, 1]} : vector<8x640xbf16> to vector<8x256xbf16>
    %121 = vector.extract_strided_slice %1 {offsets = [0, 272], sizes = [8, 256], strides = [1, 1]} : vector<8x640xbf16> to vector<8x256xbf16>
    %122 = vector.extract_strided_slice %1 {offsets = [0, 273], sizes = [8, 256], strides = [1, 1]} : vector<8x640xbf16> to vector<8x256xbf16>
    %123 = vector.extract_strided_slice %1 {offsets = [0, 274], sizes = [8, 256], strides = [1, 1]} : vector<8x640xbf16> to vector<8x256xbf16>
    %124 = tpu.concatenate %99, %100, %101, %102, %103, %104, %105, %106, %107, %108, %109, %110, %111, %112, %113, %114 in 0 : vector<8x256xbf16>, vector<8x256xbf16>, vector<8x256xbf16>, vector<8x256xbf16>, vector<8x256xbf16>, vector<8x256xbf16>, vector<8x256xbf16>, vector<8x256xbf16>, vector<8x256xbf16>, vector<8x256xbf16>, vector<8x256xbf16>, vector<8x256xbf16>, vector<8x256xbf16>, vector<8x256xbf16>, vector<8x256xbf16>, vector<8x256xbf16> -> vector<128x256xbf16>
    %125 = tpu.concatenate %115, %116, %117, %118, %119, %120, %121, %122, %123 in 0 : vector<8x256xbf16>, vector<8x256xbf16>, vector<8x256xbf16>, vector<8x256xbf16>, vector<8x256xbf16>, vector<8x256xbf16>, vector<8x256xbf16>, vector<8x256xbf16>, vector<8x256xbf16> -> vector<72x256xbf16>
    %126 = tpu.concatenate %124, %125 in 0 : vector<128x256xbf16>, vector<72x256xbf16> -> vector<200x256xbf16>
    %c3 = arith.constant 3 : index
    %c0_12 = arith.constant 0 : index
    %c0_13 = arith.constant 0 : index
    %127 = vector.load %arg2[%c3, %c0_12, %c0_13] : memref<5x8x200xbf16, #tpu.memory_space<vmem>>, vector<1x8x200xbf16>
    %128 = vector.shape_cast %127 : vector<1x8x200xbf16> to vector<8x200xbf16>
    %cst_14 = arith.constant dense<0.000000e+00> : vector<8x256xf32>
    %129 = tpu.matmul %128, %126, %cst_14 {dimension_numbers = #tpu.dot_dimension_numbers<[1], [0], [0], [1], [0, 0, 1, 1], [], []>} : vector<8x200xbf16>, vector<200x256xbf16>, vector<8x256xf32> -> vector<8x256xf32>
    %130 = arith.addf %98, %129 : vector<8x256xf32>
    %131 = vector.extract_strided_slice %1 {offsets = [0, 302], sizes = [8, 256], strides = [1, 1]} : vector<8x640xbf16> to vector<8x256xbf16>
    %132 = vector.extract_strided_slice %1 {offsets = [0, 303], sizes = [8, 256], strides = [1, 1]} : vector<8x640xbf16> to vector<8x256xbf16>
    %133 = vector.extract_strided_slice %1 {offsets = [0, 304], sizes = [8, 256], strides = [1, 1]} : vector<8x640xbf16> to vector<8x256xbf16>
    %134 = vector.extract_strided_slice %1 {offsets = [0, 305], sizes = [8, 256], strides = [1, 1]} : vector<8x640xbf16> to vector<8x256xbf16>
    %135 = vector.extract_strided_slice %1 {offsets = [0, 306], sizes = [8, 256], strides = [1, 1]} : vector<8x640xbf16> to vector<8x256xbf16>
    %136 = vector.extract_strided_slice %1 {offsets = [0, 310], sizes = [8, 256], strides = [1, 1]} : vector<8x640xbf16> to vector<8x256xbf16>
    %137 = vector.extract_strided_slice %1 {offsets = [0, 311], sizes = [8, 256], strides = [1, 1]} : vector<8x640xbf16> to vector<8x256xbf16>
    %138 = vector.extract_strided_slice %1 {offsets = [0, 312], sizes = [8, 256], strides = [1, 1]} : vector<8x640xbf16> to vector<8x256xbf16>
    %139 = vector.extract_strided_slice %1 {offsets = [0, 313], sizes = [8, 256], strides = [1, 1]} : vector<8x640xbf16> to vector<8x256xbf16>
    %140 = vector.extract_strided_slice %1 {offsets = [0, 314], sizes = [8, 256], strides = [1, 1]} : vector<8x640xbf16> to vector<8x256xbf16>
    %141 = vector.extract_strided_slice %1 {offsets = [0, 318], sizes = [8, 256], strides = [1, 1]} : vector<8x640xbf16> to vector<8x256xbf16>
    %142 = vector.extract_strided_slice %1 {offsets = [0, 319], sizes = [8, 256], strides = [1, 1]} : vector<8x640xbf16> to vector<8x256xbf16>
    %143 = vector.extract_strided_slice %1 {offsets = [0, 320], sizes = [8, 256], strides = [1, 1]} : vector<8x640xbf16> to vector<8x256xbf16>
    %144 = vector.extract_strided_slice %1 {offsets = [0, 321], sizes = [8, 256], strides = [1, 1]} : vector<8x640xbf16> to vector<8x256xbf16>
    %145 = vector.extract_strided_slice %1 {offsets = [0, 322], sizes = [8, 256], strides = [1, 1]} : vector<8x640xbf16> to vector<8x256xbf16>
    %146 = vector.extract_strided_slice %1 {offsets = [0, 326], sizes = [8, 256], strides = [1, 1]} : vector<8x640xbf16> to vector<8x256xbf16>
    %147 = vector.extract_strided_slice %1 {offsets = [0, 327], sizes = [8, 256], strides = [1, 1]} : vector<8x640xbf16> to vector<8x256xbf16>
    %148 = vector.extract_strided_slice %1 {offsets = [0, 328], sizes = [8, 256], strides = [1, 1]} : vector<8x640xbf16> to vector<8x256xbf16>
    %149 = vector.extract_strided_slice %1 {offsets = [0, 329], sizes = [8, 256], strides = [1, 1]} : vector<8x640xbf16> to vector<8x256xbf16>
    %150 = vector.extract_strided_slice %1 {offsets = [0, 330], sizes = [8, 256], strides = [1, 1]} : vector<8x640xbf16> to vector<8x256xbf16>
    %151 = vector.extract_strided_slice %1 {offsets = [0, 334], sizes = [8, 256], strides = [1, 1]} : vector<8x640xbf16> to vector<8x256xbf16>
    %152 = vector.extract_strided_slice %1 {offsets = [0, 335], sizes = [8, 256], strides = [1, 1]} : vector<8x640xbf16> to vector<8x256xbf16>
    %153 = vector.extract_strided_slice %1 {offsets = [0, 336], sizes = [8, 256], strides = [1, 1]} : vector<8x640xbf16> to vector<8x256xbf16>
    %154 = vector.extract_strided_slice %1 {offsets = [0, 337], sizes = [8, 256], strides = [1, 1]} : vector<8x640xbf16> to vector<8x256xbf16>
    %155 = vector.extract_strided_slice %1 {offsets = [0, 338], sizes = [8, 256], strides = [1, 1]} : vector<8x640xbf16> to vector<8x256xbf16>
    %156 = tpu.concatenate %131, %132, %133, %134, %135, %136, %137, %138, %139, %140, %141, %142, %143, %144, %145, %146 in 0 : vector<8x256xbf16>, vector<8x256xbf16>, vector<8x256xbf16>, vector<8x256xbf16>, vector<8x256xbf16>, vector<8x256xbf16>, vector<8x256xbf16>, vector<8x256xbf16>, vector<8x256xbf16>, vector<8x256xbf16>, vector<8x256xbf16>, vector<8x256xbf16>, vector<8x256xbf16>, vector<8x256xbf16>, vector<8x256xbf16>, vector<8x256xbf16> -> vector<128x256xbf16>
    %157 = tpu.concatenate %147, %148, %149, %150, %151, %152, %153, %154, %155 in 0 : vector<8x256xbf16>, vector<8x256xbf16>, vector<8x256xbf16>, vector<8x256xbf16>, vector<8x256xbf16>, vector<8x256xbf16>, vector<8x256xbf16>, vector<8x256xbf16>, vector<8x256xbf16> -> vector<72x256xbf16>
    %158 = tpu.concatenate %156, %157 in 0 : vector<128x256xbf16>, vector<72x256xbf16> -> vector<200x256xbf16>
    %c4 = arith.constant 4 : index
    %c0_15 = arith.constant 0 : index
    %c0_16 = arith.constant 0 : index
    %159 = vector.load %arg2[%c4, %c0_15, %c0_16] : memref<5x8x200xbf16, #tpu.memory_space<vmem>>, vector<1x8x200xbf16>
    %160 = vector.shape_cast %159 : vector<1x8x200xbf16> to vector<8x200xbf16>
    %cst_17 = arith.constant dense<0.000000e+00> : vector<8x256xf32>
    %161 = tpu.matmul %160, %158, %cst_17 {dimension_numbers = #tpu.dot_dimension_numbers<[1], [0], [0], [1], [0, 0, 1, 1], [], []>} : vector<8x200xbf16>, vector<200x256xbf16>, vector<8x256xf32> -> vector<8x256xf32>
    %162 = arith.addf %130, %161 : vector<8x256xf32>
    %c0_18 = arith.constant 0 : index
    %c0_19 = arith.constant 0 : index
    %c0_20 = arith.constant 0 : index
    %163 = vector.load %arg4[%c0_18, %c0_19, %c0_20] : memref<1x8x256xf32, #tpu.memory_space<vmem>>, vector<1x8x256xf32>
    %164 = vector.shape_cast %163 : vector<1x8x256xf32> to vector<8x256xf32>
    %165 = vector.shape_cast %162 : vector<8x256xf32> to vector<1x8x256xf32>
    tpu.vector_store %arg4[%c0_18, %c0_19, %c0_20], %165 {strides = array<i32>} : memref<1x8x256xf32, #tpu.memory_space<vmem>>, vector<1x8x256xf32>,
    %c0_21 = arith.constant 0 : index
    %c0_22 = arith.constant 0 : index
    %166 = vector.load %arg3[%c0_21, %c0_22] : memref<1x256xf32, #tpu.memory_space<vmem>>, vector<1x256xf32>
    %167 = vector.broadcast %166 : vector<1x256xf32> to vector<8x256xf32>
    %168 = arith.mulf %162, %167 : vector<8x256xf32>
    %cst_23 = arith.constant dense<0.000000e+00> : vector<8xf32>
    %169 = vector.multi_reduction <add>, %168, %cst_23 [1] : vector<8x256xf32> to vector<8xf32>
    %170 = vector.shape_cast %169 : vector<8xf32> to vector<8x1xf32>
    %171 = arith.mulf %168, %168 : vector<8x256xf32>
    %cst_24 = arith.constant dense<0.000000e+00> : vector<8xf32>
    %172 = vector.multi_reduction <add>, %171, %cst_24 [1] : vector<8x256xf32> to vector<8xf32>
    %173 = vector.shape_cast %172 : vector<8xf32> to vector<8x1xf32>
    %174 = tpu.concatenate %170, %173 in 1 : vector<8x1xf32>, vector<8x1xf32> -> vector<8x2xf32>
    %c0_25 = arith.constant 0 : index
    %c0_26 = arith.constant 0 : index
    %c0_27 = arith.constant 0 : index
    %175 = vector.load %arg5[%c0_25, %c0_26, %c0_27] : memref<1x8x2xf32, #tpu.memory_space<vmem>>, vector<1x8x2xf32>
    %176 = vector.shape_cast %175 : vector<1x8x2xf32> to vector<8x2xf32>
    %177 = vector.shape_cast %174 : vector<8x2xf32> to vector<1x8x2xf32>
    tpu.vector_store %arg5[%c0_25, %c0_26, %c0_27], %177 {strides = array<i32>} : memref<1x8x2xf32, #tpu.memory_space<vmem>>, vector<1x8x2xf32>,
    return
  }
  func.func @transform_0(%arg0: i32) -> (i32, i32, i32) {
    %c0_i32 = arith.constant 0 : i32
    %c0_i32_0 = arith.constant 0 : i32
    %c0_i32_1 = arith.constant 0 : i32
    return %arg0, %c0_i32, %c0_i32_0 : i32, i32, i32
  }
  func.func @transform_1(%arg0: i32) -> (i32, i32, i32) {
    %c0_i32 = arith.constant 0 : i32
    %c0_i32_0 = arith.constant 0 : i32
    %c0_i32_1 = arith.constant 0 : i32
    %c0_i32_2 = arith.constant 0 : i32
    return %c0_i32, %c0_i32_0, %c0_i32_1 : i32, i32, i32
  }
  func.func @transform_2(%arg0: i32) -> (i32, i32) {
    %c0_i32 = arith.constant 0 : i32
    %c0_i32_0 = arith.constant 0 : i32
    %c0_i32_1 = arith.constant 0 : i32
    return %c0_i32, %c0_i32_0 : i32, i32
  }
  func.func @transform_3(%arg0: i32) -> (i32, i32, i32) {
    %c0_i32 = arith.constant 0 : i32
    %c0_i32_0 = arith.constant 0 : i32
    %c0_i32_1 = arith.constant 0 : i32
    return %arg0, %c0_i32, %c0_i32_0 : i32, i32, i32
  }
  func.func @transform_4(%arg0: i32) -> (i32, i32, i32) {
    %c0_i32 = arith.constant 0 : i32
    %c0_i32_0 = arith.constant 0 : i32
    %c0_i32_1 = arith.constant 0 : i32
    return %arg0, %c0_i32, %c0_i32_0 : i32, i32, i32
  }
}

module attributes {stable_mosaic.version = 11 : i64} {
  func.func @_bn_prelu_dual_kernel(%arg0: i32, %arg1: memref<1x8x256xf32, #tpu.memory_space<vmem>>, %arg2: memref<8x1xf32, #tpu.memory_space<vmem>>, %arg3: memref<8x1xf32, #tpu.memory_space<vmem>>, %arg4: memref<8x1xf32, #tpu.memory_space<vmem>>, %arg5: memref<1x256xf32, #tpu.memory_space<vmem>>, %arg6: memref<1x8x640xbf16, #tpu.memory_space<vmem>>, %arg7: memref<1x8x256xf32, #tpu.memory_space<vmem>>) attributes {dimension_semantics = [#tpu.dimension_semantics<parallel>], iteration_bounds = array<i64: 2>, scalar_prefetch = 0 : i64, scratch_operands = 0 : i64, tpu.core_type = #tpu.core_type<tc>, window_params = [{transform_indices = @transform_0, window_bounds = array<i64: 1, 8, 256>}, {pipeline_mode = #tpu.pipeline_mode<synchronous>, transform_indices = @transform_1, window_bounds = array<i64: 8, 1>}, {pipeline_mode = #tpu.pipeline_mode<synchronous>, transform_indices = @transform_2, window_bounds = array<i64: 8, 1>}, {pipeline_mode = #tpu.pipeline_mode<synchronous>, transform_indices = @transform_3, window_bounds = array<i64: 8, 1>}, {pipeline_mode = #tpu.pipeline_mode<synchronous>, transform_indices = @transform_4, window_bounds = array<i64: 1, 256>}, {transform_indices = @transform_5, window_bounds = array<i64: 1, 8, 640>}, {transform_indices = @transform_6, window_bounds = array<i64: 1, 8, 256>}]} {
    %c0 = arith.constant 0 : index
    %c0_0 = arith.constant 0 : index
    %c0_1 = arith.constant 0 : index
    %0 = vector.load %arg1[%c0, %c0_0, %c0_1] : memref<1x8x256xf32, #tpu.memory_space<vmem>>, vector<1x8x256xf32>
    %1 = vector.shape_cast %0 : vector<1x8x256xf32> to vector<8x256xf32>
    %c0_2 = arith.constant 0 : index
    %c0_3 = arith.constant 0 : index
    %2 = vector.load %arg2[%c0_2, %c0_3] : memref<8x1xf32, #tpu.memory_space<vmem>>, vector<8x1xf32>
    %c0_4 = arith.constant 0 : index
    %c0_5 = arith.constant 0 : index
    %3 = vector.load %arg3[%c0_4, %c0_5] : memref<8x1xf32, #tpu.memory_space<vmem>>, vector<8x1xf32>
    %c0_6 = arith.constant 0 : index
    %c0_7 = arith.constant 0 : index
    %4 = vector.load %arg4[%c0_6, %c0_7] : memref<8x1xf32, #tpu.memory_space<vmem>>, vector<8x1xf32>
    %5 = vector.broadcast %2 : vector<8x1xf32> to vector<8x256xf32>
    %6 = arith.mulf %1, %5 : vector<8x256xf32>
    %7 = vector.broadcast %3 : vector<8x1xf32> to vector<8x256xf32>
    %8 = arith.addf %6, %7 : vector<8x256xf32>
    %cst = arith.constant 0.000000e+00 : f32
    %9 = vector.broadcast %cst : f32 to vector<8x256xf32>
    %10 = arith.cmpf ogt, %8, %9 : vector<8x256xf32>
    %11 = vector.broadcast %4 : vector<8x1xf32> to vector<8x256xf32>
    %12 = arith.mulf %11, %8 : vector<8x256xf32>
    %13 = arith.select %10, %8, %12 : vector<8x256xi1>, vector<8x256xf32>
    %c0_8 = arith.constant 0 : index
    %c0_9 = arith.constant 0 : index
    %c0_10 = arith.constant 0 : index
    %14 = vector.load %arg7[%c0_8, %c0_9, %c0_10] : memref<1x8x256xf32, #tpu.memory_space<vmem>>, vector<1x8x256xf32>
    %15 = vector.shape_cast %14 : vector<1x8x256xf32> to vector<8x256xf32>
    %16 = vector.shape_cast %13 : vector<8x256xf32> to vector<1x8x256xf32>
    tpu.vector_store %arg7[%c0_8, %c0_9, %c0_10], %16 {strides = array<i32>} : memref<1x8x256xf32, #tpu.memory_space<vmem>>, vector<1x8x256xf32>,
    %c0_11 = arith.constant 0 : index
    %c0_12 = arith.constant 0 : index
    %17 = vector.load %arg5[%c0_11, %c0_12] : memref<1x256xf32, #tpu.memory_space<vmem>>, vector<1x256xf32>
    %cst_13 = arith.constant 0.000000e+00 : bf16
    %18 = vector.broadcast %cst_13 : bf16 to vector<8x192xbf16>
    %c0_14 = arith.constant 0 : index
    %c0_15 = arith.constant 0 : index
    %c0_16 = arith.constant 0 : index
    %19 = vector.load %arg6[%c0_14, %c0_15, %c0_16] : memref<1x8x640xbf16, #tpu.memory_space<vmem>>, vector<1x8x192xbf16>
    %20 = vector.shape_cast %19 : vector<1x8x192xbf16> to vector<8x192xbf16>
    %21 = vector.shape_cast %18 : vector<8x192xbf16> to vector<1x8x192xbf16>
    tpu.vector_store %arg6[%c0_14, %c0_15, %c0_16], %21 {strides = array<i32>} : memref<1x8x640xbf16, #tpu.memory_space<vmem>>, vector<1x8x192xbf16>,
    %cst_17 = arith.constant 0.000000e+00 : f32
    %22 = vector.broadcast %cst_17 : f32 to vector<1x256xf32>
    %23 = arith.cmpf ogt, %17, %22 : vector<1x256xf32>
    %cst_18 = arith.constant 0.000000e+00 : f32
    %24 = vector.shape_cast %23 : vector<1x256xi1> to vector<1x256xi1>
    %25 = vector.broadcast %24 : vector<1x256xi1> to vector<8x256xi1>
    %26 = vector.broadcast %cst_18 : f32 to vector<8x256xf32>
    %27 = arith.select %25, %13, %26 : vector<8x256xi1>, vector<8x256xf32>
    %28 = arith.truncf %27 : vector<8x256xf32> to vector<8x256xbf16>
    %c0_19 = arith.constant 0 : index
    %c0_20 = arith.constant 0 : index
    %c192 = arith.constant 192 : index
    %29 = vector.load %arg6[%c0_19, %c0_20, %c192] : memref<1x8x640xbf16, #tpu.memory_space<vmem>>, vector<1x8x256xbf16>
    %30 = vector.shape_cast %29 : vector<1x8x256xbf16> to vector<8x256xbf16>
    %31 = vector.shape_cast %28 : vector<8x256xbf16> to vector<1x8x256xbf16>
    tpu.vector_store %arg6[%c0_19, %c0_20, %c192], %31 {strides = array<i32>} : memref<1x8x640xbf16, #tpu.memory_space<vmem>>, vector<1x8x256xbf16>,
    %cst_21 = arith.constant 0.000000e+00 : bf16
    %32 = vector.broadcast %cst_21 : bf16 to vector<8x192xbf16>
    %c0_22 = arith.constant 0 : index
    %c0_23 = arith.constant 0 : index
    %c448 = arith.constant 448 : index
    %33 = vector.load %arg6[%c0_22, %c0_23, %c448] : memref<1x8x640xbf16, #tpu.memory_space<vmem>>, vector<1x8x192xbf16>
    %34 = vector.shape_cast %33 : vector<1x8x192xbf16> to vector<8x192xbf16>
    %35 = vector.shape_cast %32 : vector<8x192xbf16> to vector<1x8x192xbf16>
    tpu.vector_store %arg6[%c0_22, %c0_23, %c448], %35 {strides = array<i32>} : memref<1x8x640xbf16, #tpu.memory_space<vmem>>, vector<1x8x192xbf16>,
    return
  }
  func.func @transform_0(%arg0: i32) -> (i32, i32, i32) {
    %c0_i32 = arith.constant 0 : i32
    %c0_i32_0 = arith.constant 0 : i32
    %c0_i32_1 = arith.constant 0 : i32
    return %arg0, %c0_i32, %c0_i32_0 : i32, i32, i32
  }
  func.func @transform_1(%arg0: i32) -> (i32, i32) {
    %c0_i32 = arith.constant 0 : i32
    %c0_i32_0 = arith.constant 0 : i32
    %c0_i32_1 = arith.constant 0 : i32
    return %c0_i32, %c0_i32_0 : i32, i32
  }
  func.func @transform_2(%arg0: i32) -> (i32, i32) {
    %c0_i32 = arith.constant 0 : i32
    %c0_i32_0 = arith.constant 0 : i32
    %c0_i32_1 = arith.constant 0 : i32
    return %c0_i32, %c0_i32_0 : i32, i32
  }
  func.func @transform_3(%arg0: i32) -> (i32, i32) {
    %c0_i32 = arith.constant 0 : i32
    %c0_i32_0 = arith.constant 0 : i32
    %c0_i32_1 = arith.constant 0 : i32
    return %c0_i32, %c0_i32_0 : i32, i32
  }
  func.func @transform_4(%arg0: i32) -> (i32, i32) {
    %c0_i32 = arith.constant 0 : i32
    %c0_i32_0 = arith.constant 0 : i32
    %c0_i32_1 = arith.constant 0 : i32
    return %c0_i32, %c0_i32_0 : i32, i32
  }
  func.func @transform_5(%arg0: i32) -> (i32, i32, i32) {
    %c0_i32 = arith.constant 0 : i32
    %c0_i32_0 = arith.constant 0 : i32
    %c0_i32_1 = arith.constant 0 : i32
    return %arg0, %c0_i32, %c0_i32_0 : i32, i32, i32
  }
  func.func @transform_6(%arg0: i32) -> (i32, i32, i32) {
    %c0_i32 = arith.constant 0 : i32
    %c0_i32_0 = arith.constant 0 : i32
    %c0_i32_1 = arith.constant 0 : i32
    return %arg0, %c0_i32, %c0_i32_0 : i32, i32, i32
  }
}

module attributes {stable_mosaic.version = 11 : i64} {
  func.func @_bn_prelu_to_pf_kernel(%arg0: i32, %arg1: memref<1x8x256xf32, #tpu.memory_space<vmem>>, %arg2: memref<8x1xf32, #tpu.memory_space<vmem>>, %arg3: memref<8x1xf32, #tpu.memory_space<vmem>>, %arg4: memref<8x1xf32, #tpu.memory_space<vmem>>, %arg5: memref<1x256xf32, #tpu.memory_space<vmem>>, %arg6: memref<1x8x640xbf16, #tpu.memory_space<vmem>>) attributes {dimension_semantics = [#tpu.dimension_semantics<parallel>], iteration_bounds = array<i64: 2>, scalar_prefetch = 0 : i64, scratch_operands = 0 : i64, tpu.core_type = #tpu.core_type<tc>, window_params = [{transform_indices = @transform_0, window_bounds = array<i64: 1, 8, 256>}, {pipeline_mode = #tpu.pipeline_mode<synchronous>, transform_indices = @transform_1, window_bounds = array<i64: 8, 1>}, {pipeline_mode = #tpu.pipeline_mode<synchronous>, transform_indices = @transform_2, window_bounds = array<i64: 8, 1>}, {pipeline_mode = #tpu.pipeline_mode<synchronous>, transform_indices = @transform_3, window_bounds = array<i64: 8, 1>}, {pipeline_mode = #tpu.pipeline_mode<synchronous>, transform_indices = @transform_4, window_bounds = array<i64: 1, 256>}, {transform_indices = @transform_5, window_bounds = array<i64: 1, 8, 640>}]} {
    %c0 = arith.constant 0 : index
    %c0_0 = arith.constant 0 : index
    %c0_1 = arith.constant 0 : index
    %0 = vector.load %arg1[%c0, %c0_0, %c0_1] : memref<1x8x256xf32, #tpu.memory_space<vmem>>, vector<1x8x256xf32>
    %1 = vector.shape_cast %0 : vector<1x8x256xf32> to vector<8x256xf32>
    %c0_2 = arith.constant 0 : index
    %c0_3 = arith.constant 0 : index
    %2 = vector.load %arg2[%c0_2, %c0_3] : memref<8x1xf32, #tpu.memory_space<vmem>>, vector<8x1xf32>
    %c0_4 = arith.constant 0 : index
    %c0_5 = arith.constant 0 : index
    %3 = vector.load %arg3[%c0_4, %c0_5] : memref<8x1xf32, #tpu.memory_space<vmem>>, vector<8x1xf32>
    %c0_6 = arith.constant 0 : index
    %c0_7 = arith.constant 0 : index
    %4 = vector.load %arg4[%c0_6, %c0_7] : memref<8x1xf32, #tpu.memory_space<vmem>>, vector<8x1xf32>
    %5 = vector.broadcast %2 : vector<8x1xf32> to vector<8x256xf32>
    %6 = arith.mulf %1, %5 : vector<8x256xf32>
    %7 = vector.broadcast %3 : vector<8x1xf32> to vector<8x256xf32>
    %8 = arith.addf %6, %7 : vector<8x256xf32>
    %cst = arith.constant 0.000000e+00 : f32
    %9 = vector.broadcast %cst : f32 to vector<8x256xf32>
    %10 = arith.cmpf ogt, %8, %9 : vector<8x256xf32>
    %11 = vector.broadcast %4 : vector<8x1xf32> to vector<8x256xf32>
    %12 = arith.mulf %11, %8 : vector<8x256xf32>
    %13 = arith.select %10, %8, %12 : vector<8x256xi1>, vector<8x256xf32>
    %c0_8 = arith.constant 0 : index
    %c0_9 = arith.constant 0 : index
    %14 = vector.load %arg5[%c0_8, %c0_9] : memref<1x256xf32, #tpu.memory_space<vmem>>, vector<1x256xf32>
    %cst_10 = arith.constant 0.000000e+00 : bf16
    %15 = vector.broadcast %cst_10 : bf16 to vector<8x192xbf16>
    %c0_11 = arith.constant 0 : index
    %c0_12 = arith.constant 0 : index
    %c0_13 = arith.constant 0 : index
    %16 = vector.load %arg6[%c0_11, %c0_12, %c0_13] : memref<1x8x640xbf16, #tpu.memory_space<vmem>>, vector<1x8x192xbf16>
    %17 = vector.shape_cast %16 : vector<1x8x192xbf16> to vector<8x192xbf16>
    %18 = vector.shape_cast %15 : vector<8x192xbf16> to vector<1x8x192xbf16>
    tpu.vector_store %arg6[%c0_11, %c0_12, %c0_13], %18 {strides = array<i32>} : memref<1x8x640xbf16, #tpu.memory_space<vmem>>, vector<1x8x192xbf16>,
    %cst_14 = arith.constant 0.000000e+00 : f32
    %19 = vector.broadcast %cst_14 : f32 to vector<1x256xf32>
    %20 = arith.cmpf ogt, %14, %19 : vector<1x256xf32>
    %cst_15 = arith.constant 0.000000e+00 : f32
    %21 = vector.shape_cast %20 : vector<1x256xi1> to vector<1x256xi1>
    %22 = vector.broadcast %21 : vector<1x256xi1> to vector<8x256xi1>
    %23 = vector.broadcast %cst_15 : f32 to vector<8x256xf32>
    %24 = arith.select %22, %13, %23 : vector<8x256xi1>, vector<8x256xf32>
    %25 = arith.truncf %24 : vector<8x256xf32> to vector<8x256xbf16>
    %c0_16 = arith.constant 0 : index
    %c0_17 = arith.constant 0 : index
    %c192 = arith.constant 192 : index
    %26 = vector.load %arg6[%c0_16, %c0_17, %c192] : memref<1x8x640xbf16, #tpu.memory_space<vmem>>, vector<1x8x256xbf16>
    %27 = vector.shape_cast %26 : vector<1x8x256xbf16> to vector<8x256xbf16>
    %28 = vector.shape_cast %25 : vector<8x256xbf16> to vector<1x8x256xbf16>
    tpu.vector_store %arg6[%c0_16, %c0_17, %c192], %28 {strides = array<i32>} : memref<1x8x640xbf16, #tpu.memory_space<vmem>>, vector<1x8x256xbf16>,
    %cst_18 = arith.constant 0.000000e+00 : bf16
    %29 = vector.broadcast %cst_18 : bf16 to vector<8x192xbf16>
    %c0_19 = arith.constant 0 : index
    %c0_20 = arith.constant 0 : index
    %c448 = arith.constant 448 : index
    %30 = vector.load %arg6[%c0_19, %c0_20, %c448] : memref<1x8x640xbf16, #tpu.memory_space<vmem>>, vector<1x8x192xbf16>
    %31 = vector.shape_cast %30 : vector<1x8x192xbf16> to vector<8x192xbf16>
    %32 = vector.shape_cast %29 : vector<8x192xbf16> to vector<1x8x192xbf16>
    tpu.vector_store %arg6[%c0_19, %c0_20, %c448], %32 {strides = array<i32>} : memref<1x8x640xbf16, #tpu.memory_space<vmem>>, vector<1x8x192xbf16>,
    return
  }
  func.func @transform_0(%arg0: i32) -> (i32, i32, i32) {
    %c0_i32 = arith.constant 0 : i32
    %c0_i32_0 = arith.constant 0 : i32
    %c0_i32_1 = arith.constant 0 : i32
    return %arg0, %c0_i32, %c0_i32_0 : i32, i32, i32
  }
  func.func @transform_1(%arg0: i32) -> (i32, i32) {
    %c0_i32 = arith.constant 0 : i32
    %c0_i32_0 = arith.constant 0 : i32
    %c0_i32_1 = arith.constant 0 : i32
    return %c0_i32, %c0_i32_0 : i32, i32
  }
  func.func @transform_2(%arg0: i32) -> (i32, i32) {
    %c0_i32 = arith.constant 0 : i32
    %c0_i32_0 = arith.constant 0 : i32
    %c0_i32_1 = arith.constant 0 : i32
    return %c0_i32, %c0_i32_0 : i32, i32
  }
  func.func @transform_3(%arg0: i32) -> (i32, i32) {
    %c0_i32 = arith.constant 0 : i32
    %c0_i32_0 = arith.constant 0 : i32
    %c0_i32_1 = arith.constant 0 : i32
    return %c0_i32, %c0_i32_0 : i32, i32
  }
  func.func @transform_4(%arg0: i32) -> (i32, i32) {
    %c0_i32 = arith.constant 0 : i32
    %c0_i32_0 = arith.constant 0 : i32
    %c0_i32_1 = arith.constant 0 : i32
    return %c0_i32, %c0_i32_0 : i32, i32
  }
  func.func @transform_5(%arg0: i32) -> (i32, i32, i32) {
    %c0_i32 = arith.constant 0 : i32
    %c0_i32_0 = arith.constant 0 : i32
    %c0_i32_1 = arith.constant 0 : i32
    return %arg0, %c0_i32, %c0_i32_0 : i32, i32, i32
  }
}

module attributes {stable_mosaic.version = 11 : i64} {
  func.func @_bn_prelu_residual_kernel(%arg0: i32, %arg1: memref<1x8x256xf32, #tpu.memory_space<vmem>>, %arg2: memref<1x8x256xf32, #tpu.memory_space<vmem>>, %arg3: memref<8x1xf32, #tpu.memory_space<vmem>>, %arg4: memref<8x1xf32, #tpu.memory_space<vmem>>, %arg5: memref<8x1xf32, #tpu.memory_space<vmem>>, %arg6: memref<8x1xf32, #tpu.memory_space<vmem>>, %arg7: memref<1x8x256xf32, #tpu.memory_space<vmem>>) attributes {dimension_semantics = [#tpu.dimension_semantics<parallel>], iteration_bounds = array<i64: 2>, scalar_prefetch = 0 : i64, scratch_operands = 0 : i64, tpu.core_type = #tpu.core_type<tc>, window_params = [{transform_indices = @transform_0, window_bounds = array<i64: 1, 8, 256>}, {transform_indices = @transform_1, window_bounds = array<i64: 1, 8, 256>}, {pipeline_mode = #tpu.pipeline_mode<synchronous>, transform_indices = @transform_2, window_bounds = array<i64: 8, 1>}, {pipeline_mode = #tpu.pipeline_mode<synchronous>, transform_indices = @transform_3, window_bounds = array<i64: 8, 1>}, {pipeline_mode = #tpu.pipeline_mode<synchronous>, transform_indices = @transform_4, window_bounds = array<i64: 8, 1>}, {pipeline_mode = #tpu.pipeline_mode<synchronous>, transform_indices = @transform_5, window_bounds = array<i64: 8, 1>}, {transform_indices = @transform_6, window_bounds = array<i64: 1, 8, 256>}]} {
    %c0 = arith.constant 0 : index
    %c0_0 = arith.constant 0 : index
    %c0_1 = arith.constant 0 : index
    %0 = vector.load %arg1[%c0, %c0_0, %c0_1] : memref<1x8x256xf32, #tpu.memory_space<vmem>>, vector<1x8x256xf32>
    %1 = vector.shape_cast %0 : vector<1x8x256xf32> to vector<8x256xf32>
    %c0_2 = arith.constant 0 : index
    %c0_3 = arith.constant 0 : index
    %2 = vector.load %arg3[%c0_2, %c0_3] : memref<8x1xf32, #tpu.memory_space<vmem>>, vector<8x1xf32>
    %c0_4 = arith.constant 0 : index
    %c0_5 = arith.constant 0 : index
    %3 = vector.load %arg4[%c0_4, %c0_5] : memref<8x1xf32, #tpu.memory_space<vmem>>, vector<8x1xf32>
    %c0_6 = arith.constant 0 : index
    %c0_7 = arith.constant 0 : index
    %4 = vector.load %arg5[%c0_6, %c0_7] : memref<8x1xf32, #tpu.memory_space<vmem>>, vector<8x1xf32>
    %5 = vector.broadcast %2 : vector<8x1xf32> to vector<8x256xf32>
    %6 = arith.mulf %1, %5 : vector<8x256xf32>
    %7 = vector.broadcast %3 : vector<8x1xf32> to vector<8x256xf32>
    %8 = arith.addf %6, %7 : vector<8x256xf32>
    %cst = arith.constant 0.000000e+00 : f32
    %9 = vector.broadcast %cst : f32 to vector<8x256xf32>
    %10 = arith.cmpf ogt, %8, %9 : vector<8x256xf32>
    %11 = vector.broadcast %4 : vector<8x1xf32> to vector<8x256xf32>
    %12 = arith.mulf %11, %8 : vector<8x256xf32>
    %13 = arith.select %10, %8, %12 : vector<8x256xi1>, vector<8x256xf32>
    %c0_8 = arith.constant 0 : index
    %c0_9 = arith.constant 0 : index
    %c0_10 = arith.constant 0 : index
    %14 = vector.load %arg2[%c0_8, %c0_9, %c0_10] : memref<1x8x256xf32, #tpu.memory_space<vmem>>, vector<1x8x256xf32>
    %15 = vector.shape_cast %14 : vector<1x8x256xf32> to vector<8x256xf32>
    %16 = arith.addf %13, %15 : vector<8x256xf32>
    %cst_11 = arith.constant 0.000000e+00 : f32
    %17 = vector.broadcast %cst_11 : f32 to vector<8x256xf32>
    %18 = arith.cmpf ogt, %16, %17 : vector<8x256xf32>
    %c0_12 = arith.constant 0 : index
    %c0_13 = arith.constant 0 : index
    %19 = vector.load %arg6[%c0_12, %c0_13] : memref<8x1xf32, #tpu.memory_space<vmem>>, vector<8x1xf32>
    %20 = vector.broadcast %19 : vector<8x1xf32> to vector<8x256xf32>
    %21 = arith.mulf %20, %16 : vector<8x256xf32>
    %22 = arith.select %18, %16, %21 : vector<8x256xi1>, vector<8x256xf32>
    %c0_14 = arith.constant 0 : index
    %c0_15 = arith.constant 0 : index
    %c0_16 = arith.constant 0 : index
    %23 = vector.load %arg7[%c0_14, %c0_15, %c0_16] : memref<1x8x256xf32, #tpu.memory_space<vmem>>, vector<1x8x256xf32>
    %24 = vector.shape_cast %23 : vector<1x8x256xf32> to vector<8x256xf32>
    %25 = vector.shape_cast %22 : vector<8x256xf32> to vector<1x8x256xf32>
    tpu.vector_store %arg7[%c0_14, %c0_15, %c0_16], %25 {strides = array<i32>} : memref<1x8x256xf32, #tpu.memory_space<vmem>>, vector<1x8x256xf32>,
    return
  }
  func.func @transform_0(%arg0: i32) -> (i32, i32, i32) {
    %c0_i32 = arith.constant 0 : i32
    %c0_i32_0 = arith.constant 0 : i32
    %c0_i32_1 = arith.constant 0 : i32
    return %arg0, %c0_i32, %c0_i32_0 : i32, i32, i32
  }
  func.func @transform_1(%arg0: i32) -> (i32, i32, i32) {
    %c0_i32 = arith.constant 0 : i32
    %c0_i32_0 = arith.constant 0 : i32
    %c0_i32_1 = arith.constant 0 : i32
    return %arg0, %c0_i32, %c0_i32_0 : i32, i32, i32
  }
  func.func @transform_2(%arg0: i32) -> (i32, i32) {
    %c0_i32 = arith.constant 0 : i32
    %c0_i32_0 = arith.constant 0 : i32
    %c0_i32_1 = arith.constant 0 : i32
    return %c0_i32, %c0_i32_0 : i32, i32
  }
  func.func @transform_3(%arg0: i32) -> (i32, i32) {
    %c0_i32 = arith.constant 0 : i32
    %c0_i32_0 = arith.constant 0 : i32
    %c0_i32_1 = arith.constant 0 : i32
    return %c0_i32, %c0_i32_0 : i32, i32
  }
  func.func @transform_4(%arg0: i32) -> (i32, i32) {
    %c0_i32 = arith.constant 0 : i32
    %c0_i32_0 = arith.constant 0 : i32
    %c0_i32_1 = arith.constant 0 : i32
    return %c0_i32, %c0_i32_0 : i32, i32
  }
  func.func @transform_5(%arg0: i32) -> (i32, i32) {
    %c0_i32 = arith.constant 0 : i32
    %c0_i32_0 = arith.constant 0 : i32
    %c0_i32_1 = arith.constant 0 : i32
    return %c0_i32, %c0_i32_0 : i32, i32
  }
  func.func @transform_6(%arg0: i32) -> (i32, i32, i32) {
    %c0_i32 = arith.constant 0 : i32
    %c0_i32_0 = arith.constant 0 : i32
    %c0_i32_1 = arith.constant 0 : i32
    return %arg0, %c0_i32, %c0_i32_0 : i32, i32, i32
  }
}

</mosaic_0001>

<bundles_post_ra>
// kernel: down_transition_forward.6
= control target key start
LH: loop header
LB: loop body
LE: loop exit
PB: predicated region body
PF: predicated region fallthrough
CT: control target
= control target key end

     0   :  { %s416_s12 = smov 0   ;;  %s444_s0 = inlined_call_operand.vmem [shape: bf16[2,32,256], index: 0, kind: input, shape index: {}]   ;;  %s445_s1 = inlined_call_operand.vmem [shape: bf16[8,32], index: 1, kind: input, shape index: {}]   ;;  %s446_s2 = inlined_call_operand.vmem [shape: f32[2,8,256], index: 2, kind: output, shape index: {0}]   ;;  %s447_s3 = inlined_call_operand.vmem [shape: f32[2,8,2], index: 3, kind: output, shape index: {1}]  }
   0x1 LB: > { %s353_s13 = sadd.s32 4294967295, %s393_s12   ;;  %p357_p0 = scmp.ge.s32.totalorder %s393_s12, 1  ;;  %s393_s12 = sphi %s416_s12, %s14_s12  }
   0x2   : > { %p140_p1 = scmp.lt.s32.totalorder %s393_s12, 3 }
   0x4   : > { %p141_p2 = pnand %p357_p0, %p140_p1 }
   0x5   : > { %p168_p3 = scmp.lt.s32.totalorder (!%p141_p2), %s353_s13, 1 }
   0x6   : > { %144 = sbr.rel (%p141_p2) target bundleno = 364 (0x16c), region = 28 }
   0xb   : > { %v395_v0 = vmov 0   ;;  %s449_s13 = smov (!%p168_p3, %s353_s13), 1  ;;  %v183_v5 = vld [vmem:[%s445_s1] sm:$0xf]  ;;  %vm208_vm0 = vcmask 261120   ;;  %vm263_vm1 = vcmask 7168  }
   0xc   : > { %244 = vmatprep.mubr.bf16.mxu0 %v395_v0  ;;  %s370_s14 = sshll.u32 %s449_s13, 5  ;;  %s371_s20 = sshll.u32 %s449_s13, 4  ;;  %vm265_vm2 = vcmask 15360  }
   0xd   : > { %s172_s17 = scalar_lea.vmem %s444_s0, %s370_s14  ;;  %s177_s23 = scalar_lea.vmem %s446_s2, %s371_s20 }
   0xe   : > { %v381_v1 = vld [vmem:[%s172_s17 + $0x14] ss:$8 sps:$4 sm:$0xff]   ;;  %v383_v2 = vld [vmem:[%s172_s17 + $0x10] ss:$8 sps:$4 sm:$0xff]   ;;  %v384_v3 = vld [vmem:[%s172_s17 + $0x4] ss:$8 sps:$4 sm:$0xff]  }
   0xf   : > { %224 = vmatprep.subr.bf16.mxu0 %v381_v1  ;;  %v386_v4 = vld [vmem:[%s172_s17] ss:$8 sps:$4 sm:$0xff]   ;;  %s362_s24 = sshll.u32 %s449_s13, 3 }
  0x10   : > { %225 = vmatpush1.bf16.msra.mxu0 %v383_v2  ;;  %s181_s27 = scalar_lea.vmem %s447_s3, %s362_s24 }
  0x11   : > { %226 = vmatprep.subr.bf16.mxu0 %v384_v3 }
  0x14   : > { %227 = vmatpush1.bf16.msra.mxu0 %v386_v4 }
  0x17   : > { %367 = vmatmul.mubr.msk.bf16.vlgmr.msra.gmra.mxu0 %vm208_vm0, %v183_v5 }
  0xd7   : > { %v246_v6 = vpop.f32.mrf.mxu0 }
  0xd8   : > { %253 = vst [vmem:[%s177_s23] sm:$0xff] %v246_v6  ;;  %v258_v11 = vmul.f32 %v246_v6, %v246_v6 }
  0xd9   : > { %v248_v7 = vpop.f32.mrf.mxu0 }
  0xda   : > { %254 = vst [vmem:[%s177_s23 + $0x8] sm:$0xff] %v248_v7  ;;  %v255_v8 = vadd.f32 %v248_v7, %v246_v6  ;;  %v259_v9 = vmul.f32 %v248_v7, %v248_v7 }
  0xdb   : > { %v250_v10 = vpop.f32.mrf.mxu0 }
  0xdc   : > { %256 = vadd.xlane.f32.xlu0 %v255_v8  ;;  %v260_v13 = vadd.f32 %v259_v9, %v258_v11 }
  0xdd   : > { %v251_v12 = vpop.f32.mrf.mxu0 }
  0xe0   : > { %261 = vadd.xlane.f32.xlu0 %v260_v13 }
 0x165   : > { %v257_v14 = vpop.xlane.xlu0 %256 }
 0x169   : > { %v262_v15 = vpop.xlane.xlu0 %261 }
 0x16a   : > { %v264_v16 = vsel %vm263_vm1, %v257_v14, %v262_v15 }
 0x16b   : > { %266 = vst.msk [vmem:[%s181_s27] sm:$0xff] %vm265_vm2, %v264_v16 }
 0x16c PF: > { %s14_s12 = sadd.s32 1, %s393_s12  }
 0x16d   : > { %p11_p4 = scmp.ge.s32.totalorder %s14_s12, 4  }
 0x16f   :  { %13 = sbr.rel (!%p11_p4) target bundleno = 1 (0x1), region = 70 }

// kernel: down_transition_forward.7
= control target key start
LH: loop header
LB: loop body
LE: loop exit
PB: predicated region body
PF: predicated region fallthrough
CT: control target
= control target key end

     0   :  { %s500_s21 = smov 0   ;;  %s542_s0 = inlined_call_operand.vmem [shape: f32[2,8,256], index: 0, kind: input, shape index: {}]   ;;  %s543_s1 = inlined_call_operand.vmem [shape: f32[8,1], index: 1, kind: input, shape index: {}]   ;;  %s544_s2 = inlined_call_operand.vmem [shape: f32[8,1], index: 2, kind: input, shape index: {}]   ;;  %s545_s3 = inlined_call_operand.vmem [shape: f32[8,1], index: 3, kind: input, shape index: {}]   ;;  %s546_s4 = inlined_call_operand.vmem [shape: f32[1,256], index: 4, kind: input, shape index: {}]   ;;  %s547_s5 = inlined_call_operand.vmem [shape: bf16[2,8,640], index: 5, kind: output, shape index: {0}]   ;;  %s548_s6 = inlined_call_operand.vmem [shape: f32[2,8,256], index: 6, kind: output, shape index: {1}]  }
   0x1 LB: > { %s426_s22 = sadd.s32 4294967295, %s461_s21   ;;  %p430_p0 = scmp.ge.s32.totalorder %s461_s21, 1  ;;  %s461_s21 = sphi %s500_s21, %s17_s21  }
   0x2   : > { %p215_p1 = scmp.lt.s32.totalorder %s461_s21, 3 }
   0x4   : > { %p216_p2 = pnand %p430_p0, %p215_p1 }
   0x5   : > { %p250_p3 = scmp.lt.s32.totalorder (!%p216_p2), %s426_s22, 1  ;;  %s464_s18 = smov (!%p216_p2), 64  }
   0x6   : > { %219 = sbr.rel (%p216_p2) target bundleno = 268 (0x10c), region = 40 }
   0xb   : > { %v268_v0 = vld [vmem:[%s543_s1] sm:$0xff]  ;;  %v463_v2 = vmov 0   ;;  %s550_s22 = smov (!%p250_p3, %s426_s22), 1  ;;  %vm299_vm0 = vcmask 1043456   ;;  %vm300_vm1 = vcmask 523268   ;;  %v305_v4 = vlaneseq }
   0xc   : > { %v270_v1 = vld [vmem:[%s545_s3] sm:$0xff]  ;;  %453 = vset.pattern.permute.xlu0 %v463_v2  ;;  %454 = vset.pattern.permute.xlu1 %v463_v2  ;;  %s442_s29 = smul.u32 20, %s550_s22  ;;  %vm301_vm2 = vmor %vm300_vm1, %vm299_vm0  ;;  %s439_s11 = sshll.u32 %s550_s22, 4  ;;  %vm331_vm8 = vcmask 1043968   ;;  %vm332_vm9 = vcmask 1047556   ;;  %vm327_vm10 = vcmask 523264  }
   0xd   : > { %273 = vperm.xlu0 %453, %v268_v0   ;;  %289 = vperm.xlu1 %454, %v270_v1   ;;  %v269_v3 = vld [vmem:[%s544_s2] sm:$0xff]  ;;  %v306_v6 = vshrl.u32 %v305_v4, 7  ;;  %s254_s14 = scalar_lea.vmem %s542_s0, %s439_s11  ;;  %s264_s17 = scalar_lea.vmem %s548_s6, %s439_s11  ;;  %vm335_vm11 = vcmask 519168   ;;  %vm333_vm12 = vmor %vm332_vm9, %vm331_vm8 }
   0xe   : > { %s523_s8 = scalar_lea.vmem %s547_s5, %s442_s29  ;;  %v298_v5 = vld [vmem:[%s546_s4] sm:$0x3]  ;;  %v267_v12 = vld [vmem:[%s254_s14 + $0x8] sm:$0xff] }
   0xf   : > { %302 = vst.msk [vmem:[%s523_s8] sm:$0xff] %vm301_vm2, %v463_v2  ;;  %vm303_vm3 = vcmp.gt.f32.partialorder %v298_v5, 0.0  ;;  %v307_v7 = vsub.s32 0, %v306_v6  ;;  %v311_v8 = vsub.s32 1, %v306_v6  ;;  %v266_v11 = vld [vmem:[%s254_s14] sm:$0xff] }
  0x10   : > { %v304_v9 = vsel %vm303_vm3, 1, %v463_v2 }
  0x11   : > { %280 = vperm.xlu0 %453, %v269_v3   ;;  %v308_v13 = vrot.slane %v304_v9, %v307_v7  ;;  %v312_v14 = vrot.slane %v304_v9, %v311_v8 }
  0x13   : > { %vm313_vm4 = vcmp.eq.s32.totalorder %v308_v13, 1  ;;  %vm314_vm5 = vcmp.eq.s32.totalorder %v312_v14, 1 }
  0x88   : > { %v274_v10 = vpop.permute.xlu0 %273  ;;  %v290_v18 = vpop.permute.xlu1 %289 }
  0x89   : > { %v276_v15 = vmul.f32 %v274_v10, %v266_v11  ;;  %v277_v16 = vmul.f32 %v274_v10, %v267_v12 }
  0x8c   : > { %v281_v17 = vpop.permute.xlu0 %280 }
  0x8d   : > { %v283_v19 = vadd.f32 %v281_v17, %v276_v15  ;;  %v284_v20 = vadd.f32 %v281_v17, %v277_v16 }
  0x8f   : > { %vm285_vm6 = vcmp.gt.f32.partialorder %v283_v19, 0.0  ;;  %vm286_vm7 = vcmp.gt.f32.partialorder %v284_v20, 0.0  ;;  %v292_v21 = vmul.f32 %v290_v18, %v283_v19  ;;  %v293_v22 = vmul.f32 %v290_v18, %v284_v20 }
  0x91   : > { %v294_v23 = vsel %vm285_vm6, %v283_v19, %v292_v21  ;;  %v295_v24 = vsel %vm286_vm7, %v284_v20, %v293_v22 }
  0x92   : > { %297 = vst [vmem:[%s264_s17 + $0x8] sm:$0xff] %v295_v24  ;;  %v315_v25 = vsel %vm313_vm4, %v294_v23, 0.0  ;;  %v316_v26 = vsel %vm314_vm5, %v295_v24, 0.0  ;;  %296 = vst [vmem:[%s264_s17] sm:$0xff] %v294_v23 }
  0x93   : > { %v441_v27 = vpack.c.bf16 %v316_v26, %v315_v25 }
  0x95   : > { %324 = vrot.lane.b32.xlu1 %v441_v27, %s464_s18 }
 0x107   : > { %v325_v28 = vpop.permute.xlu1 %324 }
 0x108   : > { %v326_v29 = vrot.slane %v325_v28, 4 }
 0x10a   : > { %v328_v30 = vsel %vm327_vm10, %v326_v29, %v325_v28  ;;  %336 = vst.msk [vmem:[%s523_s8 + $0xc] sm:$0xf] %vm335_vm11, %v326_v29 }
 0x10b   : > { %334 = vst.msk [vmem:[%s523_s8 + $0x4] sm:$0xff] %vm333_vm12, %v328_v30  ;;  %337 = vst.msk [vmem:[%s523_s8 + $0xc] sm:$0xff] %vm333_vm12, %v463_v2 }
 0x10c PF: > { %s17_s21 = sadd.s32 1, %s461_s21  }
 0x10d   : > { %p14_p4 = scmp.ge.s32.totalorder %s17_s21, 4  }
 0x10f   :  { %16 = sbr.rel (!%p14_p4) target bundleno = 1 (0x1), region = 82 }

// kernel: down_transition_forward.9
= control target key start
LH: loop header
LB: loop body
LE: loop exit
PB: predicated region body
PF: predicated region fallthrough
CT: control target
= control target key end

     0   :  { %s417_s18 = smov 0   ;;  %s452_s0 = inlined_call_operand.vmem [shape: f32[2,8,256], index: 0, kind: input, shape index: {}]   ;;  %s453_s1 = inlined_call_operand.vmem [shape: f32[8,1], index: 1, kind: input, shape index: {}]   ;;  %s454_s2 = inlined_call_operand.vmem [shape: f32[8,1], index: 2, kind: input, shape index: {}]   ;;  %s455_s3 = inlined_call_operand.vmem [shape: f32[8,1], index: 3, kind: input, shape index: {}]   ;;  %s456_s4 = inlined_call_operand.vmem [shape: f32[1,256], index: 4, kind: input, shape index: {}]   ;;  %s457_s5 = inlined_call_operand.vmem [shape: bf16[2,8,640], index: 5, kind: output, shape index: {}]  }
   0x1 LB: > { %s351_s19 = sadd.s32 4294967295, %s383_s18   ;;  %p355_p0 = scmp.ge.s32.totalorder %s383_s18, 1  ;;  %s383_s18 = sphi %s417_s18, %s15_s18  }
   0x2   : > { %p187_p1 = scmp.lt.s32.totalorder %s383_s18, 3 }
   0x4   : > { %p188_p2 = pnand %p355_p0, %p187_p1 }
   0x5   : > { %p215_p3 = scmp.lt.s32.totalorder (!%p188_p2), %s351_s19, 1  ;;  %s386_s11 = smov (!%p188_p2), 64  }
   0x6   : > { %191 = sbr.rel (%p188_p2) target bundleno = 268 (0x10c), region = 40 }
   0xb   : > { %v228_v0 = vld [vmem:[%s453_s1] sm:$0xff]  ;;  %v385_v2 = vmov 0   ;;  %s459_s19 = smov (!%p215_p3, %s351_s19), 1  ;;  %vm257_vm0 = vcmask 1043456   ;;  %vm258_vm1 = vcmask 523268   ;;  %v263_v4 = vlaneseq }
   0xc   : > { %v230_v1 = vld [vmem:[%s455_s3] sm:$0xff]  ;;  %375 = vset.pattern.permute.xlu0 %v385_v2  ;;  %376 = vset.pattern.permute.xlu1 %v385_v2  ;;  %s364_s26 = smul.u32 20, %s459_s19  ;;  %vm259_vm2 = vmor %vm258_vm1, %vm257_vm0  ;;  %s362_s7 = sshll.u32 %s459_s19, 4  ;;  %vm289_vm8 = vcmask 1043968   ;;  %vm290_vm9 = vcmask 1047556   ;;  %vm285_vm10 = vcmask 523264  }
   0xd   : > { %233 = vperm.xlu0 %375, %v228_v0   ;;  %249 = vperm.xlu1 %376, %v230_v1   ;;  %v229_v3 = vld [vmem:[%s454_s2] sm:$0xff]  ;;  %v264_v6 = vshrl.u32 %v263_v4, 7  ;;  %s219_s10 = scalar_lea.vmem %s452_s0, %s362_s7  ;;  %vm293_vm11 = vcmask 519168   ;;  %vm291_vm12 = vmor %vm290_vm9, %vm289_vm8 }
   0xe   : > { %s437_s29 = scalar_lea.vmem %s457_s5, %s364_s26  ;;  %v256_v5 = vld [vmem:[%s456_s4] sm:$0x3]  ;;  %v227_v12 = vld [vmem:[%s219_s10 + $0x8] sm:$0xff] }
   0xf   : > { %260 = vst.msk [vmem:[%s437_s29] sm:$0xff] %vm259_vm2, %v385_v2  ;;  %vm261_vm3 = vcmp.gt.f32.partialorder %v256_v5, 0.0  ;;  %v265_v7 = vsub.s32 0, %v264_v6  ;;  %v269_v8 = vsub.s32 1, %v264_v6  ;;  %v226_v11 = vld [vmem:[%s219_s10] sm:$0xff] }
  0x10   : > { %v262_v9 = vsel %vm261_vm3, 1, %v385_v2 }
  0x11   : > { %240 = vperm.xlu0 %375, %v229_v3   ;;  %v266_v13 = vrot.slane %v262_v9, %v265_v7  ;;  %v270_v14 = vrot.slane %v262_v9, %v269_v8 }
  0x13   : > { %vm271_vm4 = vcmp.eq.s32.totalorder %v266_v13, 1  ;;  %vm272_vm5 = vcmp.eq.s32.totalorder %v270_v14, 1 }
  0x88   : > { %v234_v10 = vpop.permute.xlu0 %233  ;;  %v250_v18 = vpop.permute.xlu1 %249 }
  0x89   : > { %v236_v15 = vmul.f32 %v234_v10, %v226_v11  ;;  %v237_v16 = vmul.f32 %v234_v10, %v227_v12 }
  0x8c   : > { %v241_v17 = vpop.permute.xlu0 %240 }
  0x8d   : > { %v243_v19 = vadd.f32 %v241_v17, %v236_v15  ;;  %v244_v20 = vadd.f32 %v241_v17, %v237_v16 }
  0x8f   : > { %vm245_vm6 = vcmp.gt.f32.partialorder %v243_v19, 0.0  ;;  %vm246_vm7 = vcmp.gt.f32.partialorder %v244_v20, 0.0  ;;  %v252_v21 = vmul.f32 %v250_v18, %v243_v19  ;;  %v253_v22 = vmul.f32 %v250_v18, %v244_v20 }
  0x91   : > { %v254_v23 = vsel %vm245_vm6, %v243_v19, %v252_v21  ;;  %v255_v24 = vsel %vm246_vm7, %v244_v20, %v253_v22 }
  0x92   : > { %v273_v25 = vsel %vm271_vm4, %v254_v23, 0.0  ;;  %v274_v26 = vsel %vm272_vm5, %v255_v24, 0.0 }
  0x93   : > { %v363_v27 = vpack.c.bf16 %v274_v26, %v273_v25 }
  0x95   : > { %282 = vrot.lane.b32.xlu1 %v363_v27, %s386_s11 }
 0x107   : > { %v283_v28 = vpop.permute.xlu1 %282 }
 0x108   : > { %v284_v29 = vrot.slane %v283_v28, 4 }
 0x10a   : > { %v286_v30 = vsel %vm285_vm10, %v284_v29, %v283_v28  ;;  %294 = vst.msk [vmem:[%s437_s29 + $0xc] sm:$0xf] %vm293_vm11, %v284_v29 }
 0x10b   : > { %292 = vst.msk [vmem:[%s437_s29 + $0x4] sm:$0xff] %vm291_vm12, %v286_v30  ;;  %295 = vst.msk [vmem:[%s437_s29 + $0xc] sm:$0xff] %vm291_vm12, %v385_v2 }
 0x10c PF: > { %s15_s18 = sadd.s32 1, %s383_s18  }
 0x10d   : > { %p12_p4 = scmp.ge.s32.totalorder %s15_s18, 4  }
 0x10f   :  { %14 = sbr.rel (!%p12_p4) target bundleno = 1 (0x1), region = 70 }

// kernel: down_transition_forward.11
= control target key start
LH: loop header
LB: loop body
LE: loop exit
PB: predicated region body
PF: predicated region fallthrough
CT: control target
= control target key end

     0   :  { %s458_s21 = smov 0   ;;  %s490_s0 = inlined_call_operand.vmem [shape: f32[2,8,256], index: 0, kind: input, shape index: {}]   ;;  %s491_s1 = inlined_call_operand.vmem [shape: f32[2,8,256], index: 1, kind: input, shape index: {}]   ;;  %s492_s2 = inlined_call_operand.vmem [shape: f32[8,1], index: 2, kind: input, shape index: {}]   ;;  %s493_s3 = inlined_call_operand.vmem [shape: f32[8,1], index: 3, kind: input, shape index: {}]   ;;  %s494_s4 = inlined_call_operand.vmem [shape: f32[8,1], index: 4, kind: input, shape index: {}]   ;;  %s495_s5 = inlined_call_operand.vmem [shape: f32[8,1], index: 5, kind: input, shape index: {}]   ;;  %s496_s6 = inlined_call_operand.vmem [shape: f32[2,8,256], index: 6, kind: output, shape index: {}]  }
   0x1 LB: > { %s387_s22 = sadd.s32 4294967295, %s420_s21   ;;  %p391_p0 = scmp.ge.s32.totalorder %s420_s21, 1  ;;  %s420_s21 = sphi %s458_s21, %s16_s21  }
   0x2   : > { %p222_p1 = scmp.lt.s32.totalorder %s420_s21, 3 }
   0x4   : > { %p223_p2 = pnand %p391_p0, %p222_p1 }
   0x5   : > { %p257_p3 = scmp.lt.s32.totalorder (!%p223_p2), %s387_s22, 1 }
   0x6   : > { %226 = sbr.rel (%p223_p2) target bundleno = 152 (0x98), region = 44 }
   0xb   : > { %v274_v0 = vld [vmem:[%s492_s2] sm:$0xff]  ;;  %v422_v2 = vmov 0   ;;  %s498_s22 = smov (!%p257_p3, %s387_s22), 1 }
   0xc   : > { %v276_v1 = vld [vmem:[%s494_s4] sm:$0xff]  ;;  %412 = vset.pattern.permute.xlu0 %v422_v2  ;;  %413 = vset.pattern.permute.xlu1 %v422_v2  ;;  %s400_s7 = sshll.u32 %s498_s22, 4 }
   0xd   : > { %279 = vperm.xlu0 %412, %v274_v0   ;;  %295 = vperm.xlu1 %413, %v276_v1   ;;  %v275_v3 = vld [vmem:[%s493_s3] sm:$0xff]  ;;  %s261_s10 = scalar_lea.vmem %s490_s0, %s400_s7  ;;  %s266_s13 = scalar_lea.vmem %s491_s1, %s400_s7 }
   0xe   : > { %v308_v4 = vld [vmem:[%s495_s5] sm:$0xff]  ;;  %v273_v7 = vld [vmem:[%s261_s10 + $0x8] sm:$0xff]  ;;  %s271_s16 = scalar_lea.vmem %s496_s6, %s400_s7 }
   0xf   : > { %v272_v6 = vld [vmem:[%s261_s10] sm:$0xff]  ;;  %v303_v17 = vld [vmem:[%s266_s13 + $0x8] sm:$0xff] }
  0x10   : > { %v302_v16 = vld [vmem:[%s266_s13] sm:$0xff] }
  0x11   : > { %286 = vperm.xlu0 %412, %v275_v3   ;;  %311 = vperm.xlu1 %413, %v308_v4  }
  0x88   : > { %v280_v5 = vpop.permute.xlu0 %279  ;;  %v296_v11 = vpop.permute.xlu1 %295 }
  0x89   : > { %v282_v8 = vmul.f32 %v280_v5, %v272_v6  ;;  %v283_v9 = vmul.f32 %v280_v5, %v273_v7 }
  0x8c   : > { %v287_v10 = vpop.permute.xlu0 %286  ;;  %v312_v22 = vpop.permute.xlu1 %311 }
  0x8d   : > { %v289_v12 = vadd.f32 %v287_v10, %v282_v8  ;;  %v290_v13 = vadd.f32 %v287_v10, %v283_v9 }
  0x8f   : > { %vm291_vm0 = vcmp.gt.f32.partialorder %v289_v12, 0.0  ;;  %vm292_vm1 = vcmp.gt.f32.partialorder %v290_v13, 0.0  ;;  %v298_v14 = vmul.f32 %v296_v11, %v289_v12  ;;  %v299_v15 = vmul.f32 %v296_v11, %v290_v13 }
  0x91   : > { %v300_v18 = vsel %vm291_vm0, %v289_v12, %v298_v14  ;;  %v301_v19 = vsel %vm292_vm1, %v290_v13, %v299_v15 }
  0x92   : > { %v304_v20 = vadd.f32 %v302_v16, %v300_v18  ;;  %v305_v21 = vadd.f32 %v303_v17, %v301_v19 }
  0x94   : > { %vm306_vm2 = vcmp.gt.f32.partialorder %v304_v20, 0.0  ;;  %vm307_vm3 = vcmp.gt.f32.partialorder %v305_v21, 0.0  ;;  %v314_v23 = vmul.f32 %v312_v22, %v304_v20  ;;  %v315_v24 = vmul.f32 %v312_v22, %v305_v21 }
  0x96   : > { %v316_v25 = vsel %vm306_vm2, %v304_v20, %v314_v23  ;;  %v317_v26 = vsel %vm307_vm3, %v305_v21, %v315_v24 }
  0x97   : > { %318 = vst [vmem:[%s271_s16] sm:$0xff] %v316_v25  ;;  %319 = vst [vmem:[%s271_s16 + $0x8] sm:$0xff] %v317_v26 }
  0x98 PF: > { %s16_s21 = sadd.s32 1, %s420_s21  }
  0x99   : > { %p13_p4 = scmp.ge.s32.totalorder %s16_s21, 4  }
  0x9b   :  { %15 = sbr.rel (!%p13_p4) target bundleno = 1 (0x1), region = 77 }

// kernel: down_transition_forward.8
= control target key start
LH: loop header
LB: loop body
LE: loop exit
PB: predicated region body
PF: predicated region fallthrough
CT: control target
= control target key end

     0   :  { %s2366_s15 = smov 0   ;;  %s3977_s0 = inlined_call_operand.vmem [shape: bf16[2,8,640], index: 0, kind: input, shape index: {}]   ;;  %s3978_s1 = inlined_call_operand.vmem [shape: bf16[5,8,200], index: 1, kind: input, shape index: {}]   ;;  %s3979_s2 = inlined_call_operand.vmem [shape: f32[1,256], index: 2, kind: input, shape index: {}]   ;;  %s3980_s3 = inlined_call_operand.vmem [shape: f32[2,8,256], index: 3, kind: output, shape index: {0}]   ;;  %s3981_s4 = inlined_call_operand.vmem [shape: f32[2,8,2], index: 4, kind: output, shape index: {1}]  }
   0x1 LB: > { %s2154_s16 = sadd.s32 4294967295, %s2282_s15   ;;  %p2158_p0 = scmp.ge.s32.totalorder %s2282_s15, 1  ;;  %s2282_s15 = sphi %s2366_s15, %s15_s15  }
   0x2   : > { %p165_p1 = scmp.lt.s32.totalorder %s2282_s15, 3 }
   0x4   : > { %p166_p2 = pnand %p2158_p0, %p165_p1 }
   0x6   : > { %169 = sbr.rel (%p166_p2) target bundleno = 1474 (0x5c2), region = 32 }
   0xb   : > { %p195_p3 = scmp.lt.s32.totalorder %s2154_s16, 1  ;;  %s2284_s21 = smov 127   ;;  %vm356_vm0 = vcmask 1043456   ;;  %vm290_vm1 = vcmask 957440   ;;  %vm227_vm2 = vcmask 1039360   ;;  %vm245_vm3 = vcmask 1022976  }
   0xc   : > { %s2285_s22 = smov 126   ;;  %s2286_s23 = smov 125   ;;  %vm236_vm4 = vcmask 1031168   ;;  %vm435_vm5 = vcmask 990208   ;;  %vm263_vm6 = vcmask 982016   ;;  %vm281_vm7 = vcmask 965632  }
   0xd   : > { %s4076_s16 = smov (!%p195_p3, %s2154_s16), 1  ;;  %s2287_s24 = smov 124   ;;  %vm272_vm8 = vcmask 973824   ;;  %vm538_vm9 = vcmask 932864   ;;  %vm547_vm10 = vcmask 924672   ;;  %vm4004_vm11 = vcmask 916480  }
   0xe   : > { %s2195_s17 = smul.u32 20, %s4076_s16  ;;  %s2288_s25 = smov 120   ;;  %vm4008_vm12 = vcmask 908288   ;;  %vm326_vm13 = vcmask 900096   ;;  %vm4000_vm14 = vcmask 1014784   ;;  %vm4003_vm15 = vcmask 949248  }
   0xf   : > { %s2289_s26 = smov 119   ;;  %s2290_s27 = smov 118  }
  0x10   : > { %s2380_s20 = scalar_lea.vmem %s3977_s0, %s2195_s17  ;;  %s2291_s28 = smov 117  }
  0x11   : > { %v2383_v0 = vld [vmem:[%s2380_s20 + $0x8] sm:$0xff]  ;;  %v210_v1 = vld [vmem:[%s2380_s20] sm:$0xff]  ;;  %s2292_s29 = smov 116   ;;  %s2293_s30 = smov 112  }
  0x12   : > { %v2388_v2 = vcombine.low %v2383_v0, %v2383_v0  ;;  %v2390_v3 = vcombine.low %v210_v1, %v210_v1  ;;  %v2394_v4 = vcombine.high %v210_v1, %v210_v1  ;;  %s2294_s5 = smov 111   ;;  %s2295_s6 = smov 110   ;;  %v2492_v5 = vcombine.high %v2383_v0, %v2383_v0 }
  0x13   : > { %s2296_s7 = smov 109   ;;  %s2297_s8 = smov 108  }
  0x14   : > { %225 = vrot.lane.b32.xlu1 %v2388_v2, %s2284_s21  ;;  %221 = vrot.lane.b32.xlu0 %v2390_v3, %s2284_s21  ;;  %s2298_s9 = smov 104   ;;  %s2299_s10 = smov 121  }
  0x15   : > { %s2300_s11 = smov 103   ;;  %s2301_s12 = smov 114  }
  0x16   : > { %s2302_s13 = smov 113   ;;  %s2303_s14 = smov 18  }
  0x17   : > { %s2304_s17 = smov 82   ;;  %s2305_s18 = smov 62  }
  0x18   : > { %230 = vrot.lane.b32.xlu1 %v2390_v3, %s2285_s22  ;;  %223 = vrot.lane.b32.xlu0 %v2394_v4, %s2284_s21  ;;  %s2324_s19 = smov 49  }
  0x1c   : > { %234 = vrot.lane.b32.xlu1 %v2388_v2, %s2285_s22  ;;  %232 = vrot.lane.b32.xlu0 %v2394_v4, %s2285_s22 }
  0x20   : > { %241 = vrot.lane.b32.xlu1 %v2394_v4, %s2286_s23  ;;  %239 = vrot.lane.b32.xlu0 %v2390_v3, %s2286_s23 }
  0x24   : > { %248 = vrot.lane.b32.xlu1 %v2390_v3, %s2287_s24  ;;  %243 = vrot.lane.b32.xlu0 %v2388_v2, %s2286_s23 }
  0x28   : > { %252 = vrot.lane.b32.xlu1 %v2388_v2, %s2287_s24  ;;  %250 = vrot.lane.b32.xlu0 %v2394_v4, %s2287_s24 }
  0x2c   : > { %259 = vrot.lane.b32.xlu1 %v2394_v4, %s2288_s25  ;;  %257 = vrot.lane.b32.xlu0 %v2390_v3, %s2288_s25 }
  0x30   : > { %266 = vrot.lane.b32.xlu1 %v2390_v3, %s2289_s26  ;;  %261 = vrot.lane.b32.xlu0 %v2388_v2, %s2288_s25 }
  0x34   : > { %270 = vrot.lane.b32.xlu1 %v2388_v2, %s2289_s26  ;;  %268 = vrot.lane.b32.xlu0 %v2394_v4, %s2289_s26 }
  0x38   : > { %277 = vrot.lane.b32.xlu1 %v2394_v4, %s2290_s27  ;;  %275 = vrot.lane.b32.xlu0 %v2390_v3, %s2290_s27 }
  0x3c   : > { %284 = vrot.lane.b32.xlu1 %v2390_v3, %s2291_s28  ;;  %279 = vrot.lane.b32.xlu0 %v2388_v2, %s2290_s27 }
  0x40   : > { %288 = vrot.lane.b32.xlu1 %v2388_v2, %s2291_s28  ;;  %286 = vrot.lane.b32.xlu0 %v2394_v4, %s2291_s28 }
  0x44   : > { %295 = vrot.lane.b32.xlu1 %v2394_v4, %s2292_s29  ;;  %293 = vrot.lane.b32.xlu0 %v2390_v3, %s2292_s29 }
  0x48   : > { %302 = vrot.lane.b32.xlu1 %v2390_v3, %s2293_s30  ;;  %297 = vrot.lane.b32.xlu0 %v2388_v2, %s2292_s29 }
  0x4c   : > { %306 = vrot.lane.b32.xlu1 %v2388_v2, %s2293_s30  ;;  %304 = vrot.lane.b32.xlu0 %v2394_v4, %s2293_s30 }
  0x50   : > { %313 = vrot.lane.b32.xlu1 %v2394_v4, %s2294_s5  ;;  %311 = vrot.lane.b32.xlu0 %v2390_v3, %s2294_s5 }
  0x54   : > { %320 = vrot.lane.b32.xlu1 %v2390_v3, %s2295_s6  ;;  %315 = vrot.lane.b32.xlu0 %v2388_v2, %s2294_s5 }
  0x58   : > { %324 = vrot.lane.b32.xlu1 %v2388_v2, %s2295_s6  ;;  %322 = vrot.lane.b32.xlu0 %v2394_v4, %s2295_s6 }
  0x5c   : > { %331 = vrot.lane.b32.xlu1 %v2394_v4, %s2296_s7  ;;  %329 = vrot.lane.b32.xlu0 %v2390_v3, %s2296_s7 }
  0x60   : > { %338 = vrot.lane.b32.xlu1 %v2390_v3, %s2297_s8  ;;  %333 = vrot.lane.b32.xlu0 %v2388_v2, %s2296_s7 }
  0x64   : > { %342 = vrot.lane.b32.xlu1 %v2388_v2, %s2297_s8  ;;  %340 = vrot.lane.b32.xlu0 %v2394_v4, %s2297_s8 }
  0x68   : > { %349 = vrot.lane.b32.xlu1 %v2394_v4, %s2298_s9  ;;  %347 = vrot.lane.b32.xlu0 %v2390_v3, %s2298_s9 }
  0x6c   : > { %429 = vrot.lane.b32.xlu1 %v2390_v3, %s2299_s10  ;;  %351 = vrot.lane.b32.xlu0 %v2388_v2, %s2298_s9 }
  0x70   : > { %433 = vrot.lane.b32.xlu1 %v2388_v2, %s2299_s10  ;;  %431 = vrot.lane.b32.xlu0 %v2394_v4, %s2299_s10 }
  0x74   : > { %500 = vrot.lane.b32.xlu1 %v2492_v5, %s2296_s7 }
  0x86   : > { %v2496_v6 = vpop.permute.xlu1 %225  ;;  %v2498_v7 = vpop.permute.xlu0 %221 }
  0x87   : > { %4015 = vst [vmem:[#allocation2_spill] sm:$0xff] %v2496_v6  ;;  %v2566_v36 = vsel %vm356_vm0, %v2388_v2, %v2496_v6 }
  0x8a   : > { %v231_v8 = vpop.permute.xlu1 %230  ;;  %v2500_v9 = vpop.permute.xlu0 %223 }
  0x8b   : > { %v229_v33 = vsel %vm227_vm2, %v2500_v9, %v2496_v6 }
  0x8c   : > { %v2572_v37 = vsel %vm356_vm0, %v2394_v4, %v229_v33 }
  0x8e   : > { %v2502_v10 = vpop.permute.xlu1 %234  ;;  %v2504_v11 = vpop.permute.xlu0 %232 }
  0x8f   : > { %4016 = vst [vmem:[#allocation3_spill] sm:$0xff] %v2502_v10  ;;  %v237_v39 = vsel %vm236_vm4, %v231_v8, %v2504_v11 }
  0x92   : > { %v2506_v12 = vpop.permute.xlu1 %241  ;;  %v240_v13 = vpop.permute.xlu0 %239 }
  0x93   : > { %v246_v38 = vsel %vm245_vm3, %v240_v13, %v2506_v12 }
  0x94   : > { %v2585_v42 = vsel %vm356_vm0, %v237_v39, %v246_v38  ;;  %v228_v39 = vsel %vm227_vm2, %v2498_v7, %v2500_v9  ;;  %v238_v9 = vsel %vm236_vm4, %v2504_v11, %v2502_v10 }
  0x96   : > { %v2508_v14 = vpop.permute.xlu1 %248  ;;  %v2510_v15 = vpop.permute.xlu0 %243 }
  0x97   : > { %4017 = vst [vmem:[#allocation4_spill] sm:$0xff] %v2510_v15  ;;  %v2515_v16 = vsel %vm356_vm0, %v2502_v10, %v2510_v15  ;;  %v247_v7 = vsel %vm245_vm3, %v2506_v12, %v2510_v15 }
  0x98   : > { %466 = vrot.lane.b32.xlu1 %v2515_v16, %s2300_s11 }
  0x9a   : > { %v2519_v17 = vpop.permute.xlu1 %252  ;;  %v2521_v18 = vpop.permute.xlu0 %250 }
  0x9b   : > { %4018 = vst [vmem:[#allocation5_spill] sm:$0xff] %v2519_v17 }
  0x9e   : > { %v2523_v19 = vpop.permute.xlu1 %259  ;;  %v2525_v20 = vpop.permute.xlu0 %257 }
  0x9f   : > { %v2682_v12 = vsel %vm263_vm6, %v2525_v20, %v2523_v19 }
  0xa2   : > { %v2527_v21 = vpop.permute.xlu1 %266  ;;  %v2529_v22 = vpop.permute.xlu0 %261 }
  0xa3   : > { %v2633_v1 = vsel %vm263_vm6, %v2523_v19, %v2529_v22 }
  0xa6   : > { %v2531_v23 = vpop.permute.xlu1 %270  ;;  %v2533_v24 = vpop.permute.xlu0 %268 }
  0xa7   : > { %v273_v33 = vsel %vm272_vm8, %v2527_v21, %v2533_v24  ;;  %v2672_v21 = vsel %vm356_vm0, %v238_v9, %v247_v7 }
  0xaa   : > { %v2535_v25 = vpop.permute.xlu1 %277  ;;  %v276_v26 = vpop.permute.xlu0 %275 }
  0xab   : > { %v282_v13 = vsel %vm281_vm7, %v276_v26, %v2535_v25  ;;  %v2659_v26 = vsel %vm356_vm0, %v2390_v3, %v228_v39 }
  0xae   : > { %v285_v27 = vpop.permute.xlu1 %284  ;;  %v2537_v28 = vpop.permute.xlu0 %279 }
  0xaf   : > { %v2542_v29 = vsel %vm356_vm0, %v2531_v23, %v2537_v28  ;;  %v283_v11 = vsel %vm281_vm7, %v2535_v25, %v2537_v28 }
  0xb0   : > { %478 = vrot.lane.b32.xlu1 %v2542_v29, %s2300_s11 }
  0xb2   : > { %v2546_v30 = vpop.permute.xlu1 %288  ;;  %v287_v31 = vpop.permute.xlu0 %286 }
  0xb3   : > { %484 = vrot.lane.b32.xlu0 %v2546_v30, %s2300_s11  ;;  %v2552_v32 = vsel %vm290_vm1, %v287_v31, %v2546_v30  ;;  %v2645_v38 = vsel %vm290_vm1, %v285_v27, %v287_v31  ;;  %v274_v31 = vsel %vm272_vm8, %v2533_v24, %v2531_v23 }
  0xb4   : > { %482 = vrot.lane.b32.xlu1 %v2552_v32, %s2300_s11 }
  0xb6   : > { %v2559_v34 = vpop.permute.xlu1 %295  ;;  %v2561_v35 = vpop.permute.xlu0 %293 }
  0xb7   : > { %460 = vrot.lane.b32.xlu0 %v2566_v36, %s2300_s11 }
  0xb8   : > { %458 = vrot.lane.b32.xlu1 %v2572_v37, %s2300_s11 }
  0xba   : > { %v2580_v40 = vpop.permute.xlu1 %302  ;;  %v2582_v41 = vpop.permute.xlu0 %297 }
  0xbb   : > { %4019 = vst [vmem:[#allocation6_spill] sm:$0xff] %v2582_v41 }
  0xbc   : > { %462 = vrot.lane.b32.xlu1 %v2585_v42, %s2300_s11 }
  0xbe   : > { %v2589_v43 = vpop.permute.xlu1 %306  ;;  %v2591_v44 = vpop.permute.xlu0 %304 }
  0xc2   : > { %v2593_v45 = vpop.permute.xlu1 %313  ;;  %v2595_v46 = vpop.permute.xlu0 %311 }
  0xc6   : > { %v2597_v47 = vpop.permute.xlu1 %320  ;;  %v2599_v48 = vpop.permute.xlu0 %315 }
  0xca   : > { %v2601_v49 = vpop.permute.xlu1 %324  ;;  %v2603_v50 = vpop.permute.xlu0 %322 }
  0xce   : > { %v2605_v51 = vpop.permute.xlu1 %331  ;;  %v2607_v52 = vpop.permute.xlu0 %329 }
  0xd2   : > { %v2609_v53 = vpop.permute.xlu1 %338  ;;  %v2611_v54 = vpop.permute.xlu0 %333 }
  0xd6   : > { %v2613_v55 = vpop.permute.xlu1 %342  ;;  %v2615_v56 = vpop.permute.xlu0 %340 }
  0xda   : > { %v2617_v57 = vpop.permute.xlu1 %349  ;;  %v2619_v58 = vpop.permute.xlu0 %347 }
  0xde   : > { %v430_v59 = vpop.permute.xlu1 %429  ;;  %v2621_v60 = vpop.permute.xlu0 %351 }
  0xe2   : > { %v2623_v61 = vpop.permute.xlu1 %433  ;;  %v432_v62 = vpop.permute.xlu0 %431 }
  0xe3   : > { %v437_v63 = vsel %vm435_vm5, %v432_v62, %v2623_v61  ;;  %v443_v0 = vsel %vm356_vm0, %v2623_v61, %v2529_v22  ;;  %v436_v3 = vsel %vm435_vm5, %v430_v59, %v432_v62  ;;  %v2696_v59 = vsel %vm356_vm0, %v274_v31, %v283_v11 }
  0xe4   : > { %472 = vrot.lane.b32.xlu0 %v443_v0, %s2300_s11  ;;  %v441_v8 = vsel %vm356_vm0, %v437_v63, %v2633_v1  ;;  %v2653_v63 = vsel %vm356_vm0, %v273_v33, %v282_v13  ;;  %v439_v27 = vsel %vm356_vm0, %v436_v3, %v2682_v12 }
  0xe5   : > { %470 = vrot.lane.b32.xlu1 %v441_v8, %s2300_s11 }
  0xe6   : > { %v2721_v19 = vpop.permute.xlu1 %500 }
  0xe8   : > { %480 = vrot.lane.b32.xlu0 %v2645_v38, %s2300_s11 }
  0xe9   : > { %474 = vrot.lane.b32.xlu1 %v2653_v63, %s2300_s11 }
  0xec   : > { %456 = vrot.lane.b32.xlu0 %v2659_v26, %s2300_s11 }
  0xed   : > { %506 = vrot.lane.b32.xlu1 %v2492_v5, %s2298_s9 }
  0xf0   : > { %464 = vrot.lane.b32.xlu0 %v2672_v21, %s2300_s11 }
  0xf1   : > { %523 = vrot.lane.b32.xlu1 %v2492_v5, %s2288_s25 }
  0xf4   : > { %468 = vrot.lane.b32.xlu0 %v439_v27, %s2300_s11 }
  0xf5   : > { %529 = vrot.lane.b32.xlu1 %v2492_v5, %s2290_s27 }
  0xf8   : > { %476 = vrot.lane.b32.xlu0 %v2696_v59, %s2300_s11 }
  0xf9   : > { %534 = vrot.lane.b32.xlu1 %v2388_v2, %s2301_s12 }
  0xfc   : > { %503 = vrot.lane.b32.xlu0 %v2492_v5, %s2297_s8 }
  0xfd   : > { %541 = vrot.lane.b32.xlu1 %v2394_v4, %s2302_s13 }
 0x100   : > { %520 = vrot.lane.b32.xlu0 %v2492_v5, %s2299_s10 }
 0x101   : > { %545 = vrot.lane.b32.xlu1 %v2492_v5, %s2302_s13 }
 0x104   : > { %526 = vrot.lane.b32.xlu0 %v2492_v5, %s2289_s26 }
 0x105   : > { %553 = vrot.lane.b32.xlu1 %v2492_v5, %s2294_s5 }
 0x108   : > { %532 = vrot.lane.b32.xlu0 %v2394_v4, %s2301_s12 }
 0x109   : > { %580 = vrot.lane.b32.xlu1 %v441_v8, %s2295_s6 }
 0x10a   : > { %v2723_v20 = vpop.permute.xlu1 %466 }
 0x10b   : > { %4020 = vst [vmem:[#allocation7_spill] sm:$0xff] %v2723_v20 }
 0x10c   : > { %536 = vrot.lane.b32.xlu0 %v2492_v5, %s2301_s12  ;;  %s2321_s12 = smov 48  }
 0x10d   : > { %584 = vrot.lane.b32.xlu1 %v2696_v59, %s2295_s6 }
 0x110   : > { %543 = vrot.lane.b32.xlu0 %v2388_v2, %s2302_s13  ;;  %s2322_s13 = smov 47  }
 0x114   : > { %550 = vrot.lane.b32.xlu0 %v2492_v5, %s2293_s30 }
 0x118   : > { %556 = vrot.lane.b32.xlu0 %v2492_v5, %s2295_s6 }
 0x122   : > { %v2725_v24 = vpop.permute.xlu1 %478 }
 0x123   : > { %4021 = vst [vmem:[#allocation8_spill] sm:$0xff] %v2725_v24 }
 0x125   : > { %v2729_v62 = vpop.permute.xlu0 %484 }
 0x126   : > { %v2727_v25 = vpop.permute.xlu1 %482 }
 0x129   : > { %v2733_v8 = vpop.permute.xlu0 %460 }
 0x12a   : > { %v2731_v0 = vpop.permute.xlu1 %458  ;;  %4023 = vst [vmem:[#allocation10_spill] sm:$0xff] %v2733_v8 }
 0x12b   : > { %4022 = vst [vmem:[#allocation9_spill] sm:$0xff] %v2731_v0 }
 0x12e   : > { %v2735_v13 = vpop.permute.xlu1 %462 }
 0x12f   : > { %4024 = vst [vmem:[#allocation11_spill] sm:$0xff] %v2735_v13 }
 0x156   : > { %v2737_v33 = vpop.permute.xlu0 %472 }
 0x157   : > { %4025 = vst [vmem:[#allocation12_spill] sm:$0xff] %v2737_v33  ;;  %v2739_v39 = vpop.permute.xlu1 %470 }
 0x158   : > { %4026 = vst [vmem:[#allocation13_spill] sm:$0xff] %v2739_v39 }
 0x15a   : > { %v2741_v7 = vpop.permute.xlu0 %480 }
 0x15b   : > { %v2743_v9 = vpop.permute.xlu1 %474 }
 0x15c   : > { %4027 = vst [vmem:[#allocation14_spill] sm:$0xff] %v2743_v9 }
 0x15e   : > { %v2745_v3 = vpop.permute.xlu0 %456 }
 0x15f   : > { %4028 = vst [vmem:[#allocation15_spill] sm:$0xff] %v2745_v3  ;;  %v2747_v27 = vpop.permute.xlu1 %506 }
 0x162   : > { %v2749_v11 = vpop.permute.xlu0 %464 }
 0x163   : > { %4029 = vst [vmem:[#allocation16_spill] sm:$0xff] %v2749_v11  ;;  %v2751_v31 = vpop.permute.xlu1 %523 }
 0x164   : > { %4030 = vst [vmem:[#allocation17_spill] sm:$0xff] %v2751_v31  ;;  %v2766_v3 = vsel %vm263_vm6, %v2529_v22, %v2751_v31 }
 0x165   : > { %4034 = vst [vmem:[#allocation21_spill] sm:$0xff] %v2766_v3 }
 0x166   : > { %v2753_v0 = vpop.permute.xlu0 %468 }
 0x167   : > { %4031 = vst [vmem:[#allocation18_spill] sm:$0xff] %v2753_v0  ;;  %v2757_v13 = vpop.permute.xlu1 %529 }
 0x168   : > { %v531_v39 = vsel %vm281_vm7, %v2537_v28, %v2757_v13 }
 0x16a   : > { %v2755_v8 = vpop.permute.xlu0 %476 }
 0x16b   : > { %4032 = vst [vmem:[#allocation19_spill] sm:$0xff] %v2755_v8  ;;  %v535_v20 = vpop.permute.xlu1 %534 }
 0x16e   : > { %v2759_v6 = vpop.permute.xlu0 %503 }
 0x16f   : > { %v542_v9 = vpop.permute.xlu1 %541 }
 0x172   : > { %v2761_v10 = vpop.permute.xlu0 %520 }
 0x173   : > { %4033 = vst [vmem:[#allocation20_spill] sm:$0xff] %v2761_v10  ;;  %v522_v11 = vsel %vm435_vm5, %v2623_v61, %v2761_v10 }
 0x174   : > { %v2773_v0 = vsel %vm356_vm0, %v522_v11, %v2766_v3  ;;  %v546_v3 = vpop.permute.xlu1 %545 }
 0x175   : > { %4035 = vst [vmem:[#allocation22_spill] sm:$0xff] %v2773_v0  ;;  %582 = vrot.lane.b32.xlu0 %v2773_v0, %s2295_s6 }
 0x176   : > { %v2777_v15 = vpop.permute.xlu0 %526 }
 0x177   : > { %v528_v33 = vsel %vm272_vm8, %v2531_v23, %v2777_v15 }
 0x178   : > { %v2786_v61 = vsel %vm356_vm0, %v528_v33, %v531_v39  ;;  %v2790_v23 = vpop.permute.xlu1 %553 }
 0x179   : > { %4036 = vst [vmem:[#allocation23_spill] sm:$0xff] %v2786_v61  ;;  %586 = vrot.lane.b32.xlu0 %v2786_v61, %s2295_s6  ;;  %v319_v61 = vsel %vm4008_vm12, %v2593_v45, %v2599_v48 }
 0x17a   : > { %v533_v11 = vpop.permute.xlu0 %532 }
 0x17b   : > { %v539_v24 = vsel %vm538_vm9, %v533_v11, %v535_v20 }
 0x17e   : > { %v537_v0 = vpop.permute.xlu0 %536 }
 0x17f   : > { %v540_v10 = vsel %vm538_vm9, %v535_v20, %v537_v0  ;;  %v310_v20 = vsel %vm4004_vm11, %v2591_v44, %v2589_v43  ;;  %vm335_vm9 = vcmask 891904  }
 0x180   : > { %v2811_v0 = vsel %vm356_vm0, %v310_v20, %v319_v61  ;;  %v255_v61 = vsel %vm4000_vm14, %v2508_v14, %v2521_v18  ;;  %v2866_v14 = vsel %vm356_vm0, %v2519_v17, %v2529_v22  ;;  %v301_v22 = vsel %vm4003_vm15, %v2559_v34, %v2582_v41 }
 0x181   : > { %v516_v20 = vsel %vm356_vm0, %v2615_v56, %v2617_v57 }
 0x182   : > { %v544_v8 = vpop.permute.xlu0 %543 }
 0x183   : > { %v548_v28 = vsel %vm547_vm10, %v542_v9, %v544_v8  ;;  %v549_v31 = vsel %vm547_vm10, %v544_v8, %v546_v3  ;;  %vm353_vm10 = vcmask 850944  }
 0x184   : > { %v570_v33 = vsel %vm356_vm0, %v540_v10, %v549_v31  ;;  %v567_v39 = vsel %vm356_vm0, %v539_v24, %v548_v28  ;;  %v555_v10 = vsel %vm4008_vm12, %v2599_v48, %v2790_v23  ;;  %v328_v31 = vsel %vm326_vm13, %v2603_v50, %v2601_v49 }
 0x185   : > { %590 = vrot.lane.b32.xlu0 %v570_v33, %s2295_s6  ;;  %588 = vrot.lane.b32.xlu1 %v567_v39, %s2295_s6  ;;  %v256_v28 = vsel %vm4000_vm14, %v2521_v18, %v2519_v17  ;;  %v2853_v33 = vsel %vm356_vm0, %v255_v61, %v2682_v12  ;;  %v300_v18 = vsel %vm4003_vm15, %v2561_v35, %v2559_v34  ;;  %vm344_vm14 = vcmask 883712  }
 0x186   : > { %v2799_v11 = vpop.permute.xlu0 %550  ;;  %v2857_v39 = vsel %vm356_vm0, %v256_v28, %v2633_v1  ;;  %v2884_v1 = vsel %vm356_vm0, %v2645_v38, %v300_v18  ;;  %v2888_v12 = vsel %vm356_vm0, %v2552_v32, %v301_v22  ;;  %v318_v35 = vsel %vm4008_vm12, %v2595_v46, %v2593_v45 }
 0x187   : > { %v552_v24 = vsel %vm4004_vm11, %v2589_v43, %v2799_v11  ;;  %v309_v34 = vsel %vm4004_vm11, %v2580_v40, %v2591_v44  ;;  %v2903_v38 = vsel %vm356_vm0, %v2546_v30, %v2582_v41  ;;  %v2915_v45 = vsel %vm356_vm0, %v2589_v43, %v2599_v48 }
 0x188   : > { %v2814_v8 = vsel %vm356_vm0, %v552_v24, %v555_v10  ;;  %v2906_v32 = vsel %vm356_vm0, %v309_v34, %v318_v35  ;;  %v337_v40 = vsel %vm335_vm9, %v2605_v51, %v2611_v54  ;;  %v511_v44 = vsel %vm356_vm0, %v2603_v50, %v2605_v51 }
 0x189   : > { %592 = vrot.lane.b32.xlu1 %v2811_v0, %s2295_s6  ;;  %594 = vrot.lane.b32.xlu0 %v2814_v8, %s2295_s6  ;;  %v2928_v46 = vsel %vm356_vm0, %v328_v31, %v337_v40  ;;  %v2933_v43 = vsel %vm335_vm9, %v2611_v54, %v2721_v19  ;;  %v505_v10 = vsel %vm344_vm14, %v2613_v55, %v2759_v6  ;;  %vm4005_vm15 = vcmask 146432  }
 0x18a   : > { %v2820_v9 = vpop.permute.xlu0 %556  ;;  %v513_v48 = vsel %vm356_vm0, %v2601_v49, %v2933_v43  ;;  %v355_v24 = vsel %vm353_vm10, %v2617_v57, %v2621_v60  ;;  %v508_v61 = vsel %vm353_vm10, %v2621_v60, %v2747_v27  ;;  %v346_v28 = vsel %vm344_vm14, %v2615_v56, %v2613_v55 }
 0x18b   : > { %v2825_v3 = vsel %vm326_vm13, %v2601_v49, %v2820_v9  ;;  %v2959_v18 = vsel %vm356_vm0, %v346_v28, %v355_v24  ;;  %v2962_v22 = vsel %vm356_vm0, %v505_v10, %v508_v61  ;;  %vm756_vm11 = vcmask 588800  }
 0x18c   : > { %vm1136_vm12 = vcmask 474112  }
 0x18d   : > { %596 = vrot.lane.b32.xlu1 %v328_v31, %s2295_s6  ;;  %598 = vrot.lane.b32.xlu0 %v2825_v3, %s2295_s6  ;;  %v581_v31 = vpop.permute.xlu1 %580 }
 0x191   : > { %627 = vrot.lane.b32.xlu1 %v2659_v26, %s2303_s14  ;;  %629 = vrot.lane.b32.xlu0 %v2572_v37, %s2303_s14  ;;  %v585_v35 = vpop.permute.xlu1 %584 }
 0x195   : > { %631 = vrot.lane.b32.xlu1 %v2566_v36, %s2303_s14  ;;  %633 = vrot.lane.b32.xlu0 %v2585_v42, %s2303_s14 }
 0x199   : > { %635 = vrot.lane.b32.xlu1 %v2672_v21, %s2303_s14  ;;  %637 = vrot.lane.b32.xlu0 %v2515_v16, %s2303_s14 }
 0x19d   : > { %639 = vrot.lane.b32.xlu1 %v2853_v33, %s2303_s14  ;;  %641 = vrot.lane.b32.xlu0 %v2857_v39, %s2303_s14 }
 0x1a1   : > { %643 = vrot.lane.b32.xlu1 %v2866_v14, %s2303_s14  ;;  %645 = vrot.lane.b32.xlu0 %v2653_v63, %s2303_s14 }
 0x1a5   : > { %647 = vrot.lane.b32.xlu1 %v2696_v59, %s2303_s14  ;;  %649 = vrot.lane.b32.xlu0 %v2542_v29, %s2303_s14 }
 0x1a9   : > { %651 = vrot.lane.b32.xlu1 %v2884_v1, %s2303_s14  ;;  %653 = vrot.lane.b32.xlu0 %v2888_v12, %s2303_s14 }
 0x1ad   : > { %655 = vrot.lane.b32.xlu1 %v2903_v38, %s2303_s14  ;;  %657 = vrot.lane.b32.xlu0 %v2906_v32, %s2303_s14 }
 0x1b1   : > { %659 = vrot.lane.b32.xlu1 %v2811_v0, %s2303_s14  ;;  %661 = vrot.lane.b32.xlu0 %v2915_v45, %s2303_s14 }
 0x1b5   : > { %663 = vrot.lane.b32.xlu1 %v511_v44, %s2303_s14  ;;  %665 = vrot.lane.b32.xlu0 %v2928_v46, %s2303_s14 }
 0x1b9   : > { %667 = vrot.lane.b32.xlu1 %v513_v48, %s2303_s14  ;;  %669 = vrot.lane.b32.xlu0 %v516_v20, %s2303_s14 }
 0x1bd   : > { %671 = vrot.lane.b32.xlu1 %v2959_v18, %s2303_s14  ;;  %673 = vrot.lane.b32.xlu0 %v2962_v22, %s2303_s14 }
 0x1c1   : > { %675 = vrot.lane.b32.xlu1 %v581_v31, %s2303_s14  ;;  %681 = vrot.lane.b32.xlu0 %v585_v35, %s2303_s14 }
 0x1e7   : > { %v583_v34 = vpop.permute.xlu0 %582 }
 0x1e8   : > { %679 = vrot.lane.b32.xlu1 %v583_v34, %s2303_s14  ;;  %v600_v44 = vsel %vm326_vm13, %v581_v31, %v583_v34 }
 0x1eb   : > { %v587_v40 = vpop.permute.xlu0 %586 }
 0x1ec   : > { %685 = vrot.lane.b32.xlu0 %v587_v40, %s2303_s14  ;;  %v601_v31 = vsel %vm326_vm13, %v585_v35, %v587_v40 }
 0x1f0   : > { %677 = vrot.lane.b32.xlu0 %v600_v44, %s2303_s14 }
 0x1f7   : > { %v589_v48 = vpop.permute.xlu1 %588  ;;  %v591_v20 = vpop.permute.xlu0 %590 }
 0x1f8   : > { %687 = vrot.lane.b32.xlu1 %v589_v48, %s2303_s14  ;;  %v602_v10 = vsel %vm326_vm13, %v589_v48, %v591_v20 }
 0x1f9   : > { %689 = vrot.lane.b32.xlu0 %v602_v10, %s2303_s14 }
 0x1fb   : > { %v593_v24 = vpop.permute.xlu1 %592  ;;  %v595_v61 = vpop.permute.xlu0 %594 }
 0x1fc   : > { %691 = vrot.lane.b32.xlu1 %v591_v20, %s2303_s14  ;;  %v603_v48 = vsel %vm326_vm13, %v593_v24, %v595_v61 }
 0x1fd   : > { %693 = vrot.lane.b32.xlu0 %v593_v24, %s2303_s14 }
 0x1ff   : > { %v597_v28 = vpop.permute.xlu1 %596  ;;  %v599_v17 = vpop.permute.xlu0 %598 }
 0x200   : > { %683 = vrot.lane.b32.xlu1 %v601_v31, %s2303_s14  ;;  %v604_v20 = vsel %vm326_vm13, %v597_v28, %v599_v17 }
 0x201   : > { %697 = vrot.lane.b32.xlu0 %v595_v61, %s2303_s14 }
 0x203   : > { %v2982_v34 = vpop.permute.xlu1 %627  ;;  %v2984_v44 = vpop.permute.xlu0 %629 }
 0x204   : > { %695 = vrot.lane.b32.xlu1 %v603_v48, %s2303_s14 }
 0x205   : > { %701 = vrot.lane.b32.xlu0 %v604_v20, %s2303_s14 }
 0x207   : > { %v2990_v10 = vpop.permute.xlu1 %631  ;;  %v2992_v41 = vpop.permute.xlu0 %633 }
 0x208   : > { %699 = vrot.lane.b32.xlu1 %v597_v28, %s2303_s14 }
 0x209   : > { %817 = vrot.lane.b32.xlu0 %v2659_v26, %s2304_s17 }
 0x20b   : > { %v2997_v35 = vpop.permute.xlu1 %635  ;;  %v2999_v40 = vpop.permute.xlu0 %637 }
 0x20c   : > { %703 = vrot.lane.b32.xlu1 %v599_v17, %s2303_s14 }
 0x20d   : > { %821 = vrot.lane.b32.xlu0 %v2566_v36, %s2304_s17 }
 0x20f   : > { %v3004_v24 = vpop.permute.xlu1 %639  ;;  %v3006_v61 = vpop.permute.xlu0 %641 }
 0x210   : > { %819 = vrot.lane.b32.xlu1 %v2572_v37, %s2304_s17 }
 0x211   : > { %825 = vrot.lane.b32.xlu0 %v2672_v21, %s2304_s17 }
 0x213   : > { %v3012_v26 = vpop.permute.xlu1 %643  ;;  %v646_v28 = vpop.permute.xlu0 %645 }
 0x214   : > { %823 = vrot.lane.b32.xlu1 %v2585_v42, %s2304_s17 }
 0x215   : > { %829 = vrot.lane.b32.xlu0 %v2853_v33, %s2304_s17 }
 0x217   : > { %v648_v17 = vpop.permute.xlu1 %647  ;;  %v650_v36 = vpop.permute.xlu0 %649 }
 0x218   : > { %827 = vrot.lane.b32.xlu1 %v2515_v16, %s2304_s17 }
 0x219   : > { %833 = vrot.lane.b32.xlu0 %v2866_v14, %s2304_s17 }
 0x21b   : > { %v652_v37 = vpop.permute.xlu1 %651  ;;  %v654_v31 = vpop.permute.xlu0 %653 }
 0x21c   : > { %831 = vrot.lane.b32.xlu1 %v2857_v39, %s2304_s17 }
 0x21d   : > { %837 = vrot.lane.b32.xlu0 %v2696_v59, %s2304_s17 }
 0x21f   : > { %v656_v42 = vpop.permute.xlu1 %655  ;;  %v658_v21 = vpop.permute.xlu0 %657 }
 0x220   : > { %835 = vrot.lane.b32.xlu1 %v2653_v63, %s2304_s17 }
 0x221   : > { %841 = vrot.lane.b32.xlu0 %v2884_v1, %s2304_s17 }
 0x223   : > { %v660_v16 = vpop.permute.xlu1 %659  ;;  %v662_v33 = vpop.permute.xlu0 %661 }
 0x224   : > { %839 = vrot.lane.b32.xlu1 %v2542_v29, %s2304_s17  ;;  %v3043_v29 = vld [vmem:[%s2380_s20 + $0x10] ss:$0 sps:$4 sm:$0xff]   ;;  %v717_v48 = vsel %vm4005_vm15, %v660_v16, %v662_v33  ;;  %v716_v20 = vsel %vm4005_vm15, %v658_v21, %v660_v16  ;;  %v714_v33 = vsel %vm4005_vm15, %v652_v37, %v654_v31  ;;  %v712_v21 = vsel %vm4005_vm15, %v646_v28, %v648_v17  ;;  %s2325_s20 = smov 55  }
 0x225   : > { %845 = vrot.lane.b32.xlu0 %v2903_v38, %s2304_s17  ;;  %v711_v37 = vsel %vm4005_vm15, %v3006_v61, %v3012_v26  ;;  %v709_v26 = vsel %vm4005_vm15, %v2997_v35, %v2999_v40  ;;  %v706_v40 = vsel %vm4005_vm15, %v2982_v34, %v2984_v44  ;;  %v3126_v34 = vld [vmem:[%s3978_s1 + $0x8] sm:$0xff] }
 0x227   : > { %v664_v39 = vpop.permute.xlu1 %663  ;;  %v666_v14 = vpop.permute.xlu0 %665 }
 0x228   : > { %843 = vrot.lane.b32.xlu1 %v2888_v12, %s2304_s17 }
 0x229   : > { %849 = vrot.lane.b32.xlu0 %v2811_v0, %s2304_s17 }
 0x22b   : > { %v668_v63 = vpop.permute.xlu1 %667  ;;  %v670_v59 = vpop.permute.xlu0 %669 }
 0x22c   : > { %847 = vrot.lane.b32.xlu1 %v2906_v32, %s2304_s17  ;;  %v719_v32 = vsel %vm4005_vm15, %v666_v14, %v668_v63  ;;  %v715_v63 = vsel %vm4005_vm15, %v654_v31, %v656_v42  ;;  %v336_v42 = vsel %vm335_vm9, %v2607_v52, %v2605_v51  ;;  %v710_v52 = vsel %vm4005_vm15, %v3004_v24, %v3006_v61 }
 0x22d   : > { %1588 = vrot.lane.b32.xlu0 %v2492_v5, %s2291_s28  ;;  %v419_v61 = vsel %vm356_vm0, %v2601_v49, %v2611_v54 }
 0x22f   : > { %v672_v1 = vpop.permute.xlu1 %671  ;;  %v674_v38 = vpop.permute.xlu0 %673 }
 0x230   : > { %851 = vrot.lane.b32.xlu1 %v2915_v45, %s2304_s17  ;;  %v721_v12 = vsel %vm4005_vm15, %v672_v1, %v674_v38  ;;  %v720_v0 = vsel %vm4005_vm15, %v670_v59, %v672_v1  ;;  %v718_v45 = vsel %vm4005_vm15, %v664_v39, %v666_v14  ;;  %v713_v39 = vsel %vm4005_vm15, %v648_v17, %v650_v36 }
 0x231   : > { %1582 = vrot.lane.b32.xlu0 %v3043_v29, %s2289_s26  ;;  %766 = vmatprep.subr.bf16.mxu0 %v721_v12  ;;  %v327_v36 = vsel %vm326_vm13, %v2597_v47, %v2603_v50  ;;  %v708_v47 = vsel %vm4005_vm15, %v2992_v41, %v2997_v35  ;;  %v707_v50 = vsel %vm4005_vm15, %v2984_v44, %v2990_v10  ;;  %s2310_s26 = smov 65  }
 0x232   : > { %767 = vmatpush1.bf16.msra.mxu0 %v720_v0  ;;  %v413_v51 = vsel %vm356_vm0, %v327_v36, %v336_v42  ;;  %v428_v41 = vsel %vm356_vm0, %v2613_v55, %v2621_v60  ;;  %v354_v10 = vsel %vm353_vm10, %v2619_v58, %v2617_v57  ;;  %v345_v55 = vsel %vm344_vm14, %v2609_v53, %v2615_v56 }
 0x233   : > { %768 = vmatprep.subr.bf16.mxu0 %v719_v32  ;;  %v2169_v60 = vcombine.high %v3126_v34, %v3126_v34  ;;  %v422_v57 = vsel %vm356_vm0, %v345_v55, %v354_v10  ;;  %v3138_v58 = vpop.permute.xlu0 %681  ;;  %v3144_v56 = vpop.permute.xlu1 %675 }
 0x234   : > { %1590 = vrot.lane.b32.xlu1 %v3043_v29, %s2291_s28  ;;  %s2312_s28 = smov 70  }
 0x235   : > { %1576 = vrot.lane.b32.xlu0 %v3043_v29, %s2299_s10  ;;  %2171 = vmatprep.mubr.msk.bf16.mxu0 %vm756_vm11, %v2169_v60 }
 0x236   : > { %769 = vmatpush1.bf16.msra.mxu0 %v718_v45 }
 0x237   : > { %770 = vmatprep.subr.bf16.mxu0 %v717_v48 }
 0x238   : > { %1585 = vrot.lane.b32.xlu1 %v3043_v29, %s2290_s27  ;;  %s2311_s27 = smov 71  }
 0x239   : > { %1492 = vrot.lane.b32.xlu0 %v2492_v5, %s2285_s22 }
 0x23a   : > { %771 = vmatpush1.bf16.msra.mxu0 %v716_v20 }
 0x23b   : > { %772 = vmatprep.subr.bf16.mxu0 %v715_v63 }
 0x23c   : > { %1579 = vrot.lane.b32.xlu1 %v3043_v29, %s2288_s25  ;;  %s2309_s25 = smov 66  }
 0x23d   : > { %1570 = vrot.lane.b32.xlu0 %v2492_v5, %s2286_s23 }
 0x23e   : > { %773 = vmatpush1.bf16.msra.mxu0 %v714_v33 }
 0x23f   : > { %774 = vmatprep.subr.bf16.mxu0 %v713_v39 }
 0x240   : > { %1494 = vrot.lane.b32.xlu1 %v3043_v29, %s2285_s22  ;;  %s2307_s22 = smov 64  }
 0x241   : > { %1486 = vrot.lane.b32.xlu0 %v2492_v5, %s2284_s21 }
 0x242   : > { %775 = vmatpush1.bf16.msra.mxu0 %v712_v21 }
 0x243   : > { %776 = vmatprep.subr.bf16.mxu0 %v711_v37 }
 0x244   : > { %1572 = vrot.lane.b32.xlu1 %v3043_v29, %s2286_s23  ;;  %s2308_s23 = smov 63  }
 0x245   : > { %853 = vrot.lane.b32.xlu0 %v413_v51, %s2304_s17 }
 0x246   : > { %777 = vmatpush1.bf16.msra.mxu0 %v710_v52 }
 0x247   : > { %778 = vmatprep.subr.bf16.mxu0 %v709_v26 }
 0x248   : > { %1488 = vrot.lane.b32.xlu1 %v3043_v29, %s2284_s21  ;;  %s2306_s21 = smov 58  }
 0x249   : > { %1761 = vrot.lane.b32.xlu0 %v3043_v29, %s2298_s9  ;;  %s2320_s9 = smov 46  }
 0x24a   : > { %779 = vmatpush1.bf16.msra.mxu0 %v708_v47 }
 0x24b   : > { %780 = vmatprep.subr.bf16.mxu0 %v707_v50 }
 0x24c   : > { %1758 = vrot.lane.b32.xlu1 %v3043_v29, %s2297_s8  ;;  %s2319_s8 = smov 81  }
 0x24d   : > { %1755 = vrot.lane.b32.xlu0 %v3043_v29, %s2296_s7  ;;  %s2318_s7 = smov 79  }
 0x24e   : > { %781 = vmatpush1.bf16.msra.mxu0 %v706_v40  ;;  %v2168_v40 = vcombine.low %v3126_v34, %v3126_v34 }
 0x250   : > { %1752 = vrot.lane.b32.xlu1 %v3043_v29, %s2295_s6  ;;  %s2317_s6 = smov 80  }
 0x251   : > { %863 = vrot.lane.b32.xlu0 %v428_v41, %s2304_s17 }
 0x254   : > { %861 = vrot.lane.b32.xlu1 %v2959_v18, %s2304_s17 }
 0x255   : > { %1123 = vrot.lane.b32.xlu0 %v2388_v2, %s2305_s18 }
 0x258   : > { %859 = vrot.lane.b32.xlu1 %v422_v57, %s2304_s17 }
 0x259   : > { %1132 = vrot.lane.b32.xlu0 %v2388_v2, %s2306_s21 }
 0x25a   : > { %v3149_v18 = vpop.permute.xlu1 %679 }
 0x25c   : > { %1125 = vrot.lane.b32.xlu1 %v2492_v5, %s2305_s18 }
 0x25d   : > { %1121 = vrot.lane.b32.xlu0 %v2394_v4, %s2305_s18  ;;  %s2323_s18 = smov 50  }
 0x25e   : > { %v686_v53 = vpop.permute.xlu0 %685 }
 0x260   : > { %1134 = vrot.lane.b32.xlu1 %v2492_v5, %s2306_s21 }
 0x261   : > { %1746 = vrot.lane.b32.xlu0 %v3043_v29, %s2293_s30  ;;  %s2314_s30 = smov 72  }
 0x262   : > { %v3151_v44 = vpop.permute.xlu0 %677 }
 0x263   : > { %v723_v52 = vsel %vm4005_vm15, %v3151_v44, %v3149_v18  ;;  %v722_v50 = vsel %vm4005_vm15, %v3144_v56, %v3151_v44 }
 0x264   : > { %1130 = vrot.lane.b32.xlu1 %v2394_v4, %s2306_s21  ;;  %s2327_s21 = smov 57  }
 0x265   : > { %855 = vrot.lane.b32.xlu0 %v2928_v46, %s2304_s17 }
 0x268   : > { %1749 = vrot.lane.b32.xlu1 %v3043_v29, %s2294_s5  ;;  %s2315_s5 = smov 78  }
 0x269   : > { %1105 = vrot.lane.b32.xlu0 %v2388_v2, %s2307_s22 }
 0x26a   : > { %v688_v35 = vpop.permute.xlu1 %687 }
 0x26b   : > { %v690_v24 = vpop.permute.xlu0 %689 }
 0x26c   : > { %857 = vrot.lane.b32.xlu1 %v419_v61, %s2304_s17  ;;  %v726_v42 = vsel %vm4005_vm15, %v688_v35, %v690_v24 }
 0x26d   : > { %1114 = vrot.lane.b32.xlu0 %v2388_v2, %s2308_s23 }
 0x26e   : > { %v692_v46 = vpop.permute.xlu1 %691 }
 0x26f   : > { %v694_v28 = vpop.permute.xlu0 %693  ;;  %v727_v63 = vsel %vm4005_vm15, %v690_v24, %v692_v46 }
 0x270   : > { %1107 = vrot.lane.b32.xlu1 %v2492_v5, %s2307_s22 }
 0x271   : > { %1103 = vrot.lane.b32.xlu0 %v2394_v4, %s2307_s22  ;;  %s2328_s22 = smov 56  }
 0x272   : > { %v684_v17 = vpop.permute.xlu1 %683 }
 0x273   : > { %v698_v31 = vpop.permute.xlu0 %697  ;;  %v725_v21 = vsel %vm4005_vm15, %v684_v17, %v686_v53  ;;  %v724_v51 = vsel %vm4005_vm15, %v3138_v58, %v684_v17 }
 0x274   : > { %1116 = vrot.lane.b32.xlu1 %v2492_v5, %s2308_s23 }
 0x275   : > { %1740 = vrot.lane.b32.xlu0 %v2492_v5, %s2292_s29 }
 0x276   : > { %v696_v16 = vpop.permute.xlu1 %695 }
 0x277   : > { %v702_v49 = vpop.permute.xlu0 %701  ;;  %v729_v32 = vsel %vm4005_vm15, %v696_v16, %v698_v31  ;;  %v728_v20 = vsel %vm4005_vm15, %v694_v28, %v696_v16 }
 0x278   : > { %1112 = vrot.lane.b32.xlu1 %v2394_v4, %s2308_s23 }
 0x279   : > { %1087 = vrot.lane.b32.xlu0 %v2388_v2, %s2309_s25 }
 0x27a   : > { %v700_v54 = vpop.permute.xlu1 %699 }
 0x27b   : > { %v3168_v14 = vpop.permute.xlu0 %817  ;;  %v730_v59 = vsel %vm4005_vm15, %v700_v54, %v702_v49 }
 0x27c   : > { %1742 = vrot.lane.b32.xlu1 %v3043_v29, %s2292_s29  ;;  %v761_v0 = vsel %vm356_vm0, %v730_v59, 0  ;;  %s2313_s29 = smov 73  }
 0x27d   : > { %1096 = vrot.lane.b32.xlu0 %v2388_v2, %s2310_s26 }
 0x27e   : > { %v704_v1 = vpop.permute.xlu1 %703 }
 0x27f   : > { %v731_v38 = vsel %vm4005_vm15, %v702_v49, %v704_v1  ;;  %v3175_v12 = vpop.permute.xlu0 %821  ;;  %vm895_vm15 = vcmask 670720  }
 0x280   : > { %1089 = vrot.lane.b32.xlu1 %v2492_v5, %s2309_s25  ;;  %2170 = vmatprep.subr.msk.bf16.mxu0 %vm356_vm0, %v731_v38 }
 0x281   : > { %1085 = vrot.lane.b32.xlu0 %v2394_v4, %s2309_s25  ;;  %789 = vmatpush2.bf16.msra.mxu0 %v761_v0 }
 0x282   : > { %v3182_v45 = vpop.permute.xlu1 %819  ;;  %790 = vmatprep.subr.bf16.mxu0 %v729_v32 }
 0x283   : > { %v3184_v48 = vpop.permute.xlu0 %825 }
 0x284   : > { %1098 = vrot.lane.b32.xlu1 %v2492_v5, %s2310_s26 }
 0x285   : > { %1069 = vrot.lane.b32.xlu0 %v2388_v2, %s2311_s27  ;;  %791 = vmatpush2.bf16.msra.mxu0 %v728_v20 }
 0x286   : > { %v3190_v33 = vpop.permute.xlu1 %823  ;;  %792 = vmatprep.subr.bf16.mxu0 %v727_v63 }
 0x287   : > { %v3192_v39 = vpop.permute.xlu0 %829 }
 0x288   : > { %1094 = vrot.lane.b32.xlu1 %v2394_v4, %s2310_s26  ;;  %s2162_s26 = sshll.u32 %s4076_s16, 3 }
 0x289   : > { %1078 = vrot.lane.b32.xlu0 %v2388_v2, %s2312_s28  ;;  %793 = vmatpush2.bf16.msra.mxu0 %v726_v42 }
 0x28a   : > { %v3198_v37 = vpop.permute.xlu1 %827  ;;  %794 = vmatprep.subr.bf16.mxu0 %v725_v21 }
 0x28b   : > { %v3200_v36 = vpop.permute.xlu0 %833 }
 0x28c   : > { %1071 = vrot.lane.b32.xlu1 %v2492_v5, %s2311_s27 }
 0x28d   : > { %1067 = vrot.lane.b32.xlu0 %v2394_v4, %s2311_s27  ;;  %795 = vmatpush2.bf16.msra.mxu0 %v724_v51 }
 0x28e   : > { %v3209_v26 = vpop.permute.xlu1 %831  ;;  %796 = vmatprep.subr.bf16.mxu0 %v723_v52 }
 0x28f   : > { %v3211_v47 = vpop.permute.xlu0 %837 }
 0x290   : > { %1080 = vrot.lane.b32.xlu1 %v2492_v5, %s2312_s28 }
 0x291   : > { %1734 = vrot.lane.b32.xlu0 %v2492_v5, %s2287_s24  ;;  %797 = vmatpush2.bf16.msra.mxu0 %v722_v50 }
 0x292   : > { %v3221_v41 = vpop.permute.xlu1 %835 }
 0x293   : > { %v3223_v10 = vpop.permute.xlu0 %841 }
 0x294   : > { %1076 = vrot.lane.b32.xlu1 %v2394_v4, %s2312_s28  ;;  %799 = vmatmul.mubr.bf16.vlgmr.msra.gmra.mxu0 %v2168_v40  ;;  %s2329_s28 = smov 122  }
 0x295   : > { %1051 = vrot.lane.b32.xlu0 %v2388_v2, %s2313_s29 }
 0x296   : > { %v3227_v55 = vpop.permute.xlu1 %839 }
 0x297   : > { %v3229_v60 = vpop.permute.xlu0 %845 }
 0x298   : > { %1736 = vrot.lane.b32.xlu1 %v3043_v29, %s2287_s24  ;;  %s2316_s24 = smov 74  }
 0x299   : > { %1060 = vrot.lane.b32.xlu0 %v2388_v2, %s2314_s30 }
 0x29a   : > { %v3234_v34 = vpop.permute.xlu1 %843 }
 0x29b   : > { %v3236_v57 = vpop.permute.xlu0 %849 }
 0x29c   : > { %1053 = vrot.lane.b32.xlu1 %v2492_v5, %s2313_s29 }
 0x29d   : > { %1049 = vrot.lane.b32.xlu0 %v2394_v4, %s2313_s29  ;;  %s2330_s29 = smov 2  }
 0x29e   : > { %v3240_v58 = vpop.permute.xlu1 %847 }
 0x29f   : > { %v1589_v53 = vpop.permute.xlu0 %1588 }
 0x2a0   : > { %1062 = vrot.lane.b32.xlu1 %v2492_v5, %s2314_s30  ;;  %v3277_v54 = vsel %vm290_vm1, %v2546_v30, %v1589_v53 }
 0x2a1   : > { %1033 = vrot.lane.b32.xlu0 %v2388_v2, %s2315_s5  ;;  %4037 = vst [vmem:[#allocation24_spill] sm:$0xff] %v3277_v54 }
 0x2a2   : > { %v3244_v56 = vpop.permute.xlu1 %851 }
 0x2a3   : > { %v1583_v18 = vpop.permute.xlu0 %1582 }
 0x2a4   : > { %1058 = vrot.lane.b32.xlu1 %v2394_v4, %s2314_s30  ;;  %s2331_s30 = smov 1  }
 0x2a5   : > { %1042 = vrot.lane.b32.xlu0 %v2388_v2, %s2316_s24 }
 0x2a6   : > { %v3248_v44 = vpop.permute.xlu1 %1590 }
 0x2a7   : > { %v3250_v35 = vpop.permute.xlu0 %1576  ;;  %v3294_v30 = vsel %vm290_vm1, %v1589_v53, %v3248_v44  ;;  %vm486_vm1 = vcmask 842752  }
 0x2a8   : > { %1035 = vrot.lane.b32.xlu1 %v2492_v5, %s2315_s5  ;;  %4038 = vst [vmem:[#allocation25_spill] sm:$0xff] %v3294_v30 }
 0x2a9   : > { %1031 = vrot.lane.b32.xlu0 %v2394_v4, %s2315_s5  ;;  %s2332_s5 = smov 7  }
 0x2aa   : > { %v1586_v24 = vpop.permute.xlu1 %1585 }
 0x2ab   : > { %v3254_v61 = vpop.permute.xlu0 %1492  ;;  %v1587_v40 = vsel %vm281_vm7, %v2757_v13, %v1586_v24  ;;  %v3314_v53 = vsel %vm356_vm0, %v1583_v18, %v1586_v24  ;;  %vm1127_vm7 = vcmask 506880   ;;  %v496_v13 = vsel %vm486_vm1, %v2727_v25, %v2729_v62 }
 0x2ac   : > { %1044 = vrot.lane.b32.xlu1 %v2492_v5, %s2316_s24  ;;  %4039 = vst [vmem:[#allocation26_spill] sm:$0xff] %v3314_v53 }
 0x2ad   : > { %1015 = vrot.lane.b32.xlu0 %v2388_v2, %s2317_s6 }
 0x2ae   : > { %v3258_v46 = vpop.permute.xlu1 %1579 }
 0x2af   : > { %v3260_v28 = vpop.permute.xlu0 %1570 }
 0x2b0   : > { %1040 = vrot.lane.b32.xlu1 %v2394_v4, %s2316_s24  ;;  %s2333_s24 = smov 6  }
 0x2b1   : > { %1024 = vrot.lane.b32.xlu0 %v2388_v2, %s2318_s7 }
 0x2b2   : > { %v3264_v17 = vpop.permute.xlu1 %1494 }
 0x2b3   : > { %v3266_v31 = vpop.permute.xlu0 %1486 }
 0x2b4   : > { %1017 = vrot.lane.b32.xlu1 %v2492_v5, %s2317_s6 }
 0x2b5   : > { %1013 = vrot.lane.b32.xlu0 %v2394_v4, %s2317_s6  ;;  %s2334_s6 = smov 9  }
 0x2b6   : > { %v3270_v16 = vpop.permute.xlu1 %1572 }
 0x2b7   : > { %v3272_v49 = vpop.permute.xlu0 %853 }
 0x2b8   : > { %1026 = vrot.lane.b32.xlu1 %v2492_v5, %s2318_s7 }
 0x2b9   : > { %1823 = vrot.lane.b32.xlu0 %v3277_v54, %s2300_s11 }
 0x2ba   : > { %v3281_v59 = vpop.permute.xlu1 %1488 }
 0x2bb   : > { %v3283_v1 = vpop.permute.xlu0 %1761 }
 0x2bc   : > { %1022 = vrot.lane.b32.xlu1 %v2394_v4, %s2318_s7  ;;  %s2335_s7 = smov 8  }
 0x2bd   : > { %1827 = vrot.lane.b32.xlu0 %v3248_v44, %s2300_s11 }
 0x2be   : > { %v3288_v38 = vpop.permute.xlu1 %1758 }
 0x2bf   : > { %v3290_v0 = vpop.permute.xlu0 %1755 }
 0x2c0   : > { %1825 = vrot.lane.b32.xlu1 %v3294_v30, %s2300_s11 }
 0x2c1   : > { %1000 = vrot.lane.b32.xlu0 %v2492_v5, %s2304_s17 }
 0x2c2   : > { %v3300_v32 = vpop.permute.xlu1 %1752 }
 0x2c3   : > { %v864_v20 = vpop.permute.xlu0 %863 }
 0x2c4   : > { %998 = vrot.lane.b32.xlu1 %v2388_v2, %s2304_s17 }
 0x2c5   : > { %1008 = vrot.lane.b32.xlu0 %v2492_v5, %s2319_s8 }
 0x2c6   : > { %v862_v63 = vpop.permute.xlu1 %861 }
 0x2c7   : > { %v1124_v42 = vpop.permute.xlu0 %1123  ;;  %v911_v21 = vsel %vm895_vm15, %v862_v63, %v864_v20  ;;  %v1584_v20 = vsel %vm272_vm8, %v2777_v15, %v1583_v18  ;;  %v495_v15 = vsel %vm486_vm1, %v2741_v7, %v2727_v25  ;;  %v4042_v7 = vld [vmem:[#allocation17_spill] sm:$0xff]  ;;  %vm1118_vm8 = vcmask 515072  }
 0x2c8   : > { %1006 = vrot.lane.b32.xlu1 %v2388_v2, %s2319_s8  ;;  %955 = vmatprep.subr.bf16.mxu1 %v911_v21 }
 0x2c9   : > { %1004 = vrot.lane.b32.xlu0 %v2394_v4, %s2319_s8  ;;  %s2336_s8 = smov 14  }
 0x2ca   : > { %v860_v51 = vpop.permute.xlu1 %859 }
 0x2cb   : > { %v1133_v52 = vpop.permute.xlu0 %1132  ;;  %v910_v50 = vsel %vm895_vm15, %v860_v51, %v862_v63  ;;  %v3321_v63 = vsel %vm356_vm0, %v1584_v20, %v1587_v40  ;;  %v4041_v20 = vld [vmem:[#allocation23_spill] sm:$0xff] }
 0x2cc   : > { %996 = vrot.lane.b32.xlu1 %v2394_v4, %s2304_s17  ;;  %956 = vmatpush1.bf16.msra.mxu1 %v910_v50  ;;  %4040 = vst [vmem:[#allocation27_spill] sm:$0xff] %v3321_v63 }
 0x2cd   : > { %1821 = vrot.lane.b32.xlu0 %v3314_v53, %s2300_s11 }
 0x2ce   : > { %v1126_v21 = vpop.permute.xlu1 %1125 }
 0x2cf   : > { %v1122_v54 = vpop.permute.xlu0 %1121  ;;  %v1129_v18 = vsel %vm1127_vm7, %v1124_v42, %v1126_v21  ;;  %v3345_v21 = vsel %vm263_vm6, %v4042_v7, %v3258_v46  ;;  %vm1109_vm6 = vcmask 523264  }
 0x2d0   : > { %1819 = vrot.lane.b32.xlu1 %v3321_v63, %s2300_s11  ;;  %v1128_v63 = vsel %vm1127_vm7, %v1122_v54, %v1124_v42  ;;  %v4043_v54 = vld [vmem:[#allocation20_spill] sm:$0xff]  ;;  %vm1100_vm7 = vcmask 531456  }
 0x2d1   : > { %891 = vrot.lane.b32.xlu0 %v496_v13, %s2304_s17  ;;  %v1578_v42 = vsel %vm435_vm5, %v4043_v54, %v3250_v35 }
 0x2d2   : > { %v1135_v24 = vpop.permute.xlu1 %1134 }
 0x2d3   : > { %v1138_v51 = vsel %vm1136_vm12, %v1133_v52, %v1135_v24  ;;  %v3332_v50 = vpop.permute.xlu0 %1746 }
 0x2d4   : > { %889 = vrot.lane.b32.xlu1 %v495_v15, %s2304_s17  ;;  %v1201_v40 = vsel %vm356_vm0, %v1129_v18, %v1138_v51  ;;  %v4044_v18 = vld [vmem:[#allocation8_spill] sm:$0xff]  ;;  %v4045_v51 = vld [vmem:[#allocation19_spill] sm:$0xff] }
 0x2d5   : > { %1817 = vrot.lane.b32.xlu0 %v4041_v20, %s2300_s11  ;;  %1333 = vmatprep.subr.bf16.mxu0 %v1201_v40  ;;  %v494_v40 = vsel %vm486_vm1, %v4045_v51, %v4044_v18 }
 0x2d6   : > { %v1131_v53 = vpop.permute.xlu1 %1130 }
 0x2d7   : > { %v1137_v13 = vsel %vm1136_vm12, %v1131_v53, %v1133_v52  ;;  %v856_v30 = vpop.permute.xlu0 %855  ;;  %vm1091_vm12 = vcmask 539648  }
 0x2d8   : > { %893 = vrot.lane.b32.xlu1 %v2729_v62, %s2304_s17  ;;  %v1197_v25 = vsel %vm356_vm0, %v1128_v63, %v1137_v13  ;;  %v3355_v62 = vsel %vm356_vm0, %v1578_v42, %v3345_v21  ;;  %v908_v13 = vsel %vm895_vm15, %v3272_v49, %v856_v30  ;;  %v3373_v42 = vsel %vm356_vm0, %v3250_v35, %v3258_v46 }
 0x2d9   : > { %1277 = vrot.lane.b32.xlu0 %v2388_v2, %s2320_s9  ;;  %1334 = vmatpush1.bf16.msra.mxu0 %v1197_v25  ;;  %v907_v25 = vsel %vm895_vm15, %v3236_v57, %v3244_v56  ;;  %v906_v49 = vsel %vm895_vm15, %v3240_v58, %v3236_v57  ;;  %v905_v56 = vsel %vm895_vm15, %v3234_v34, %v3229_v60 }
 0x2da   : > { %v3347_v24 = vpop.permute.xlu1 %1749  ;;  %v904_v57 = vsel %vm895_vm15, %v3223_v10, %v3234_v34  ;;  %v903_v60 = vsel %vm895_vm15, %v3211_v47, %v3227_v55  ;;  %v4047_v10 = vld [vmem:[#allocation14_spill] sm:$0xff] }
 0x2db   : > { %v1106_v52 = vpop.permute.xlu0 %1105  ;;  %v493_v34 = vsel %vm486_vm1, %v4047_v10, %v4045_v51 }
 0x2dc   : > { %1275 = vrot.lane.b32.xlu1 %v2394_v4, %s2320_s9 }
 0x2dd   : > { %1813 = vrot.lane.b32.xlu0 %v3355_v62, %s2300_s11 }
 0x2de   : > { %v858_v53 = vpop.permute.xlu1 %857 }
 0x2df   : > { %v1115_v63 = vpop.permute.xlu0 %1114  ;;  %v909_v15 = vsel %vm895_vm15, %v856_v30, %v858_v53  ;;  %v4046_v30 = vld [vmem:[#allocation22_spill] sm:$0xff] }
 0x2e0   : > { %1279 = vrot.lane.b32.xlu1 %v2492_v5, %s2320_s9  ;;  %957 = vmatprep.subr.bf16.mxu1 %v909_v15  ;;  %s2337_s9 = smov 10  }
 0x2e1   : > { %885 = vrot.lane.b32.xlu0 %v494_v40, %s2304_s17  ;;  %958 = vmatpush1.bf16.msra.mxu1 %v908_v13 }
 0x2e2   : > { %v1108_v7 = vpop.permute.xlu1 %1107  ;;  %959 = vmatprep.subr.bf16.mxu1 %v907_v25 }
 0x2e3   : > { %v1104_v54 = vpop.permute.xlu0 %1103  ;;  %v1111_v35 = vsel %vm1109_vm6, %v1106_v52, %v1108_v7 }
 0x2e4   : > { %1815 = vrot.lane.b32.xlu1 %v3373_v42, %s2300_s11  ;;  %v1110_v25 = vsel %vm1109_vm6, %v1104_v54, %v1106_v52  ;;  %v901_v52 = vsel %vm895_vm15, %v3209_v26, %v3200_v36  ;;  %v899_v36 = vsel %vm895_vm15, %v3184_v48, %v3198_v37  ;;  %v898_v37 = vsel %vm895_vm15, %v3190_v33, %v3184_v48  ;;  %v4048_v48 = vld [vmem:[#allocation12_spill] sm:$0xff]  ;;  %v4049_v33 = vld [vmem:[#allocation13_spill] sm:$0xff] }
 0x2e5   : > { %1811 = vrot.lane.b32.xlu0 %v4046_v30, %s2300_s11  ;;  %960 = vmatpush1.bf16.msra.mxu1 %v906_v49  ;;  %v902_v49 = vsel %vm895_vm15, %v3221_v41, %v3211_v47  ;;  %v900_v47 = vsel %vm895_vm15, %v3192_v39, %v3209_v26  ;;  %v1575_v41 = vsel %vm245_vm3, %v3260_v28, %v3270_v16  ;;  %vm1055_vm6 = vcmask 596992  }
 0x2e6   : > { %v1117_v53 = vpop.permute.xlu1 %1116  ;;  %961 = vmatprep.subr.bf16.mxu1 %v905_v56  ;;  %v3430_v56 = vsel %vm236_vm4, %v3254_v61, %v3264_v17  ;;  %v897_v26 = vsel %vm895_vm15, %v3182_v45, %v3175_v12 }
 0x2e7   : > { %v1120_v15 = vsel %vm1118_vm8, %v1115_v63, %v1117_v53  ;;  %v3387_v40 = vpop.permute.xlu0 %1740  ;;  %v3436_v39 = vsel %vm356_vm0, %v3430_v56, %v1575_v41 }
 0x2e8   : > { %887 = vrot.lane.b32.xlu1 %v4044_v18, %s2304_s17  ;;  %v1193_v58 = vsel %vm356_vm0, %v1111_v35, %v1120_v15 }
 0x2e9   : > { %1259 = vrot.lane.b32.xlu0 %v2388_v2, %s2321_s12  ;;  %962 = vmatpush1.bf16.msra.mxu1 %v904_v57 }
 0x2ea   : > { %1335 = vmatprep.subr.bf16.mxu0 %v1193_v58  ;;  %v1113_v13 = vpop.permute.xlu1 %1112  ;;  %963 = vmatprep.subr.bf16.mxu1 %v903_v60  ;;  %v492_v60 = vsel %vm486_vm1, %v4049_v33, %v4048_v48 }
 0x2eb   : > { %v1119_v18 = vsel %vm1118_vm8, %v1113_v13, %v1115_v63  ;;  %v1088_v7 = vpop.permute.xlu0 %1087  ;;  %v896_v13 = vsel %vm895_vm15, %v3168_v14, %v3182_v45  ;;  %vm1046_vm8 = vcmask 605184  }
 0x2ec   : > { %883 = vrot.lane.b32.xlu1 %v493_v34, %s2304_s17  ;;  %v1189_v55 = vsel %vm356_vm0, %v1110_v25, %v1119_v18  ;;  %v4050_v25 = vld [vmem:[#allocation4_spill] sm:$0xff]  ;;  %v4051_v34 = vld [vmem:[#allocation3_spill] sm:$0xff] }
 0x2ed   : > { %1268 = vrot.lane.b32.xlu0 %v2388_v2, %s2322_s13  ;;  %964 = vmatpush1.bf16.msra.mxu1 %v902_v49  ;;  %v1574_v18 = vsel %vm245_vm3, %v4050_v25, %v3260_v28  ;;  %v3464_v49 = vsel %vm236_vm4, %v4051_v34, %v3254_v61  ;;  %vm1073_vm3 = vcmask 580608   ;;  %vm1082_vm4 = vcmask 572416   ;;  %v4053_v25 = vld [vmem:[#allocation7_spill] sm:$0xff]  ;;  %v4055_v34 = vld [vmem:[#allocation2_spill] sm:$0xff] }
 0x2ee   : > { %1336 = vmatpush1.bf16.msra.mxu0 %v1189_v55  ;;  %v3414_v63 = vpop.permute.xlu1 %1742  ;;  %965 = vmatprep.subr.bf16.mxu1 %v901_v52  ;;  %v3471_v52 = vsel %vm356_vm0, %v3264_v17, %v3270_v16  ;;  %v3477_v28 = vsel %vm356_vm0, %v3464_v49, %v1574_v18  ;;  %v4052_v16 = vld [vmem:[#allocation18_spill] sm:$0xff]  ;;  %v4054_v18 = vld [vmem:[#allocation16_spill] sm:$0xff] }
 0x2ef   : > { %v1097_v51 = vpop.permute.xlu0 %1096 }
 0x2f0   : > { %1261 = vrot.lane.b32.xlu1 %v2492_v5, %s2321_s12 }
 0x2f1   : > { %1257 = vrot.lane.b32.xlu0 %v2394_v4, %s2321_s12  ;;  %966 = vmatpush1.bf16.msra.mxu1 %v900_v47  ;;  %v491_v47 = vsel %vm486_vm1, %v4052_v16, %v4049_v33  ;;  %s2338_s12 = smov 16  }
 0x2f2   : > { %v1090_v54 = vpop.permute.xlu1 %1089  ;;  %967 = vmatprep.subr.bf16.mxu1 %v899_v36 }
 0x2f3   : > { %v1086_v53 = vpop.permute.xlu0 %1085  ;;  %v1093_v15 = vsel %vm1091_vm12, %v1088_v7, %v1090_v54 }
 0x2f4   : > { %1270 = vrot.lane.b32.xlu1 %v2492_v5, %s2322_s13  ;;  %v1092_v55 = vsel %vm1091_vm12, %v1086_v53, %v1088_v7  ;;  %vm1019_vm12 = vcmask 654336  }
 0x2f5   : > { %1807 = vrot.lane.b32.xlu0 %v3436_v39, %s2300_s11  ;;  %968 = vmatpush1.bf16.msra.mxu1 %v898_v37 }
 0x2f6   : > { %v1099_v35 = vpop.permute.xlu1 %1098  ;;  %969 = vmatprep.subr.bf16.mxu1 %v897_v26 }
 0x2f7   : > { %v1102_v57 = vsel %vm1100_vm7, %v1097_v51, %v1099_v35  ;;  %v1070_v58 = vpop.permute.xlu0 %1069 }
 0x2f8   : > { %1266 = vrot.lane.b32.xlu1 %v2394_v4, %s2322_s13  ;;  %v1185_v12 = vsel %vm356_vm0, %v1093_v15, %v1102_v57  ;;  %s2339_s13 = smov 15  }
 0x2f9   : > { %879 = vrot.lane.b32.xlu0 %v492_v60, %s2304_s17  ;;  %970 = vmatpush1.bf16.msra.mxu1 %v896_v13 }
 0x2fa   : > { %1337 = vmatprep.subr.bf16.mxu0 %v1185_v12  ;;  %v1095_v10 = vpop.permute.xlu1 %1094 }
 0x2fb   : > { %v1101_v14 = vsel %vm1100_vm7, %v1095_v10, %v1097_v51  ;;  %v1079_v45 = vpop.permute.xlu0 %1078  ;;  %v490_v10 = vsel %vm486_vm1, %v4054_v18, %v4053_v25  ;;  %vm1028_vm7 = vcmask 646144  }
 0x2fc   : > { %1809 = vrot.lane.b32.xlu1 %v3471_v52, %s2300_s11  ;;  %v1181_v61 = vsel %vm356_vm0, %v1092_v55, %v1101_v14  ;;  %v1490_v55 = vsel %vm227_vm2, %v4055_v34, %v3266_v31  ;;  %v4057_v34 = vld [vmem:[#allocation10_spill] sm:$0xff] }
 0x2fd   : > { %1805 = vrot.lane.b32.xlu0 %v3477_v28, %s2300_s11  ;;  %1338 = vmatpush1.bf16.msra.mxu0 %v1181_v61 }
 0x2fe   : > { %v1072_v7 = vpop.permute.xlu1 %1071 }
 0x2ff   : > { %v1068_v51 = vpop.permute.xlu0 %1067  ;;  %v1075_v41 = vsel %vm1073_vm3, %v1070_v58, %v1072_v7 }
 0x300   : > { %881 = vrot.lane.b32.xlu1 %v4048_v48, %s2304_s17  ;;  %v1074_v26 = vsel %vm1073_vm3, %v1068_v51, %v1070_v58  ;;  %v1491_v48 = vsel %vm227_vm2, %v3266_v31, %v3281_v59  ;;  %v3523_v51 = vsel %vm356_vm0, %v3043_v29, %v3281_v59  ;;  %vm1037_vm2 = vcmask 637952  }
 0x301   : > { %1241 = vrot.lane.b32.xlu0 %v2388_v2, %s2323_s18  ;;  %v3506_v58 = vsel %vm356_vm0, %v2492_v5, %v1491_v48  ;;  %vm1010_vm3 = vcmask 662528  }
 0x302   : > { %v1081_v17 = vpop.permute.xlu1 %1080 }
 0x303   : > { %v1084_v36 = vsel %vm1082_vm4, %v1079_v45, %v1081_v17  ;;  %v3489_v54 = vpop.permute.xlu0 %1734  ;;  %v3529_v17 = vsel %vm356_vm0, %v2388_v2, %v1490_v55  ;;  %v4058_v55 = vld [vmem:[#allocation9_spill] sm:$0xff] }
 0x304   : > { %877 = vrot.lane.b32.xlu1 %v491_v47, %s2304_s17  ;;  %v1177_v53 = vsel %vm356_vm0, %v1075_v41, %v1084_v36 }
 0x305   : > { %1250 = vrot.lane.b32.xlu0 %v2388_v2, %s2324_s19  ;;  %1339 = vmatprep.subr.bf16.mxu0 %v1177_v53 }
 0x306   : > { %v1077_v37 = vpop.permute.xlu1 %1076 }
 0x307   : > { %v1083_v35 = vsel %vm1082_vm4, %v1077_v37, %v1079_v45  ;;  %v1052_v15 = vpop.permute.xlu0 %1051  ;;  %vm1272_vm4 = vcmask 384000  }
 0x308   : > { %1243 = vrot.lane.b32.xlu1 %v2492_v5, %s2323_s18  ;;  %v1173_v57 = vsel %vm356_vm0, %v1074_v26, %v1083_v35  ;;  %v4056_v26 = vld [vmem:[#allocation11_spill] sm:$0xff] }
 0x309   : > { %1239 = vrot.lane.b32.xlu0 %v2394_v4, %s2323_s18  ;;  %1340 = vmatpush1.bf16.msra.mxu0 %v1173_v57  ;;  %v489_v35 = vsel %vm486_vm1, %v4056_v26, %v4054_v18  ;;  %s2340_s18 = smov 17  }
 0x30a   : > { %v3501_v33 = vpop.permute.xlu1 %1736 }
 0x30b   : > { %v1061_v60 = vpop.permute.xlu0 %1060 }
 0x30c   : > { %1252 = vrot.lane.b32.xlu1 %v2492_v5, %s2324_s19 }
 0x30d   : > { %1801 = vrot.lane.b32.xlu0 %v3506_v58, %s2300_s11 }
 0x30e   : > { %v1054_v13 = vpop.permute.xlu1 %1053 }
 0x30f   : > { %v1050_v12 = vpop.permute.xlu0 %1049  ;;  %v1057_v45 = vsel %vm1055_vm6, %v1052_v15, %v1054_v13 }
 0x310   : > { %1248 = vrot.lane.b32.xlu1 %v2394_v4, %s2324_s19  ;;  %v1056_v47 = vsel %vm1055_vm6, %v1050_v12, %v1052_v15  ;;  %vm4062_vm6 = vcmask 949248  }
 0x311   : > { %873 = vrot.lane.b32.xlu0 %v490_v10, %s2304_s17 }
 0x312   : > { %v1063_v14 = vpop.permute.xlu1 %1062 }
 0x313   : > { %v1066_v61 = vsel %vm756_vm11, %v1061_v60, %v1063_v14  ;;  %v1034_v7 = vpop.permute.xlu0 %1033  ;;  %v488_v14 = vsel %vm486_vm1, %v4058_v55, %v4057_v34 }
 0x314   : > { %1803 = vrot.lane.b32.xlu1 %v3523_v51, %s2300_s11  ;;  %v1169_v31 = vsel %vm356_vm0, %v1057_v45, %v1066_v61 }
 0x315   : > { %1799 = vrot.lane.b32.xlu0 %v3529_v17, %s2300_s11  ;;  %1341 = vmatprep.subr.bf16.mxu0 %v1169_v31  ;;  %s2326_s11 = smov 54  }
 0x316   : > { %v1059_v16 = vpop.permute.xlu1 %1058 }
 0x317   : > { %v1065_v41 = vsel %vm756_vm11, %v1059_v16, %v1061_v60  ;;  %v1043_v59 = vpop.permute.xlu0 %1042  ;;  %v4059_v16 = vld [vmem:[#allocation15_spill] sm:$0xff] }
 0x318   : > { %875 = vrot.lane.b32.xlu1 %v4053_v25, %s2304_s17  ;;  %v1165_v36 = vsel %vm356_vm0, %v1056_v47, %v1065_v41  ;;  %v487_v47 = vsel %vm486_vm1, %v4059_v16, %v4058_v55  ;;  %v1760_v55 = vsel %vm344_vm14, %v2759_v6, %v3288_v38  ;;  %vm4060_vm14 = vcmask 908288  }
 0x319   : > { %1223 = vrot.lane.b32.xlu0 %v2388_v2, %s2325_s20  ;;  %1342 = vmatpush1.bf16.msra.mxu0 %v1165_v36 }
 0x31a   : > { %v1036_v53 = vpop.permute.xlu1 %1035 }
 0x31b   : > { %v1032_v37 = vpop.permute.xlu0 %1031  ;;  %v1039_v57 = vsel %vm1037_vm2, %v1034_v7, %v1036_v53 }
 0x31c   : > { %871 = vrot.lane.b32.xlu1 %v489_v35, %s2304_s17  ;;  %v1038_v25 = vsel %vm1037_vm2, %v1032_v37, %v1034_v7  ;;  %vm4065_vm2 = vmmov %vm4062_vm6 }
 0x31d   : > { %1232 = vrot.lane.b32.xlu0 %v2388_v2, %s2326_s11 }
 0x31e   : > { %v1045_v15 = vpop.permute.xlu1 %1044 }
 0x31f   : > { %v1048_v48 = vsel %vm1046_vm8, %v1043_v59, %v1045_v15  ;;  %v1016_v60 = vpop.permute.xlu0 %1015 }
 0x320   : > { %1225 = vrot.lane.b32.xlu1 %v2492_v5, %s2325_s20  ;;  %v1161_v13 = vsel %vm356_vm0, %v1039_v57, %v1048_v48 }
 0x321   : > { %1221 = vrot.lane.b32.xlu0 %v2394_v4, %s2325_s20  ;;  %1343 = vmatprep.subr.bf16.mxu0 %v1161_v13  ;;  %v3575_v13 = vld [vmem:[%s3978_s1] sm:$0xff] }
 0x322   : > { %v1041_v12 = vpop.permute.xlu1 %1040 }
 0x323   : > { %v1047_v18 = vsel %vm1046_vm8, %v1041_v12, %v1043_v59  ;;  %v1025_v10 = vpop.permute.xlu0 %1024  ;;  %vm1245_vm8 = vcmask 408576  }
 0x324   : > { %1234 = vrot.lane.b32.xlu1 %v2492_v5, %s2326_s11  ;;  %v1157_v45 = vsel %vm356_vm0, %v1038_v25, %v1047_v18  ;;  %v3585_v18 = vld [vmem:[%s3978_s1 + $0x10] sm:$0xff] }
 0x325   : > { %867 = vrot.lane.b32.xlu0 %v488_v14, %s2304_s17  ;;  %1344 = vmatpush1.bf16.msra.mxu0 %v1157_v45  ;;  %v1763_v45 = vsel %vm353_vm10, %v2747_v27, %v3283_v1  ;;  %vm1263_vm10 = vcmask 392192  }
 0x326   : > { %v1018_v61 = vpop.permute.xlu1 %1017 }
 0x327   : > { %v1014_v31 = vpop.permute.xlu0 %1013  ;;  %v1021_v41 = vsel %vm1019_vm12, %v1016_v60, %v1018_v61 }
 0x328   : > { %1230 = vrot.lane.b32.xlu1 %v2394_v4, %s2326_s11  ;;  %v1020_v26 = vsel %vm1019_vm12, %v1014_v31, %v1016_v60  ;;  %v2173_v60 = vcombine.high %v3575_v13, %v3575_v13  ;;  %vm1254_vm12 = vcmask 400384  }
 0x329   : > { %865 = vrot.lane.b32.xlu0 %v487_v47, %s2304_s17  ;;  %v1795_v47 = vsel %vm356_vm0, %v1760_v55, %v1763_v45 }
 0x32a   : > { %v1027_v7 = vpop.permute.xlu1 %1026  ;;  %2175 = vmatprep.mubr.msk.bf16.mxu1 %vm756_vm11, %v2173_v60 }
 0x32b   : > { %v1030_v59 = vsel %vm1028_vm7, %v1025_v10, %v1027_v7  ;;  %v3559_v36 = vpop.permute.xlu0 %1823 }
 0x32c   : > { %869 = vrot.lane.b32.xlu1 %v4057_v34, %s2304_s17  ;;  %v1153_v53 = vsel %vm356_vm0, %v1021_v41, %v1030_v59  ;;  %v2178_v34 = vcombine.high %v3585_v18, %v3585_v18 }
 0x32d   : > { %1207 = vrot.lane.b32.xlu0 %v2492_v5, %s2327_s21  ;;  %1345 = vmatprep.subr.bf16.mxu0 %v1153_v53 }
 0x32e   : > { %v1023_v37 = vpop.permute.xlu1 %1022  ;;  %2180 = vmatprep.mubr.msk.bf16.mxu0 %vm756_vm11, %v2178_v34  ;;  %v1751_v34 = vsel %vm4060_vm14, %v2790_v23, %v3347_v24 }
 0x32f   : > { %v1029_v35 = vsel %vm1028_vm7, %v1023_v37, %v1025_v10  ;;  %v3565_v15 = vpop.permute.xlu0 %1827  ;;  %vm4069_vm7 = vcmask 1014784  }
 0x330   : > { %1205 = vrot.lane.b32.xlu1 %v2388_v2, %s2327_s21  ;;  %v1149_v57 = vsel %vm356_vm0, %v1020_v26, %v1029_v35  ;;  %v1798_v26 = vsel %vm356_vm0, %v3288_v38, %v3283_v1  ;;  %v1754_v35 = vsel %vm326_vm13, %v2820_v9, %v3300_v32  ;;  %vm1281_vm13 = vcmask 375808   ;;  %vm4071_vm14 = vmmov %vm4069_vm7 }
 0x331   : > { %1216 = vrot.lane.b32.xlu0 %v2492_v5, %s2328_s22  ;;  %1346 = vmatpush1.bf16.msra.mxu0 %v1149_v57  ;;  %v1792_v57 = vsel %vm356_vm0, %v3300_v32, %v3290_v0 }
 0x332   : > { %v3570_v48 = vpop.permute.xlu1 %1825 }
 0x333   : > { %v1001_v12 = vpop.permute.xlu0 %1000 }
 0x334   : > { %1214 = vrot.lane.b32.xlu1 %v2388_v2, %s2328_s22 }
 0x335   : > { %1212 = vrot.lane.b32.xlu0 %v2394_v4, %s2328_s22 }
 0x336   : > { %v999_v25 = vpop.permute.xlu1 %998 }
 0x337   : > { %v1009_v10 = vpop.permute.xlu0 %1008  ;;  %v1003_v61 = vsel %vm895_vm15, %v999_v25, %v1001_v12 }
 0x338   : > { %1203 = vrot.lane.b32.xlu1 %v2394_v4, %s2327_s21  ;;  %s2194_s21 = sshll.u32 %s4076_s16, 4 }
 0x339   : > { %1502 = vrot.lane.b32.xlu0 %v3043_v29, %s2329_s28  ;;  %s204_s25 = scalar_lea.vmem %s3980_s3, %s2194_s21 }
 0x33a   : > { %v1007_v14 = vpop.permute.xlu1 %1006 }
 0x33b   : > { %v1012_v31 = vsel %vm1010_vm3, %v1007_v14, %v1009_v10  ;;  %v1005_v16 = vpop.permute.xlu0 %1004 }
 0x33c   : > { %1500 = vrot.lane.b32.xlu1 %v2492_v5, %s2329_s28  ;;  %v1145_v6 = vsel %vm356_vm0, %v1003_v61, %v1012_v31  ;;  %v1011_v7 = vsel %vm1010_vm3, %v1005_v16, %v1007_v14  ;;  %v1786_v16 = vsel %vm356_vm0, %v2825_v3, %v2933_v43  ;;  %vm1227_vm3 = vcmask 449536  }
 0x33d   : > { %1904 = vrot.lane.b32.xlu0 %v1795_v47, %s2304_s17  ;;  %1347 = vmatprep.subr.bf16.mxu0 %v1145_v6 }
 0x33e   : > { %v997_v29 = vpop.permute.xlu1 %996 }
 0x33f   : > { %v1002_v41 = vsel %vm895_vm15, %v997_v29, %v999_v25  ;;  %v3606_v27 = vpop.permute.xlu0 %1821  ;;  %v1784_v29 = vsel %vm356_vm0, %v3332_v50, %v3347_v24 }
 0x340   : > { %1498 = vrot.lane.b32.xlu1 %v2388_v2, %s2329_s28  ;;  %v1141_v59 = vsel %vm356_vm0, %v1002_v41, %v1011_v7 }
 0x341   : > { %1902 = vrot.lane.b32.xlu0 %v2962_v22, %s2304_s17  ;;  %1348 = vmatpush1.bf16.msra.mxu0 %v1141_v59  ;;  %v1757_v22 = vsel %vm335_vm9, %v2721_v19, %v3290_v0  ;;  %vm4061_vm9 = vcmask 916480  }
 0x342   : > { %v3612_v53 = vpop.permute.xlu1 %1819  ;;  %v1789_v1 = vsel %vm356_vm0, %v1754_v35, %v1757_v22  ;;  %v1748_v45 = vsel %vm4061_vm9, %v2799_v11, %v3332_v50  ;;  %vm1209_vm9 = vcmask 465920  }
 0x343   : > { %v892_v37 = vpop.permute.xlu0 %891  ;;  %v1781_v23 = vsel %vm356_vm0, %v1748_v45, %v1751_v34 }
 0x344   : > { %1906 = vrot.lane.b32.xlu1 %v1798_v26, %s2304_s17 }
 0x345   : > { %1900 = vrot.lane.b32.xlu0 %v1792_v57, %s2304_s17 }
 0x346   : > { %v890_v12 = vpop.permute.xlu1 %889 }
 0x347   : > { %v3628_v60 = vpop.permute.xlu0 %1817  ;;  %v920_v9 = vsel %vm895_vm15, %v890_v12, %v892_v37  ;;  %v1745_v12 = vsel %vm4062_vm6, %v3387_v40, %v3414_v63  ;;  %vm1471_vm6 = vcmask 15360  }
 0x348   : > { %1898 = vrot.lane.b32.xlu1 %v1789_v1, %s2304_s17  ;;  %v950_v19 = vsel %vm356_vm0, %v920_v9, 0 }
 0x349   : > { %1469 = vrot.lane.b32.xlu0 %v2492_v5, %s2330_s29 }
 0x34a   : > { %v894_v38 = vpop.permute.xlu1 %893 }
 0x34b   : > { %v921_v32 = vsel %vm895_vm15, %v892_v37, %v894_v38  ;;  %v1278_v25 = vpop.permute.xlu0 %1277 }
 0x34c   : > { %1467 = vrot.lane.b32.xlu1 %v2388_v2, %s2330_s29  ;;  %2174 = vmatprep.subr.msk.bf16.mxu1 %vm356_vm0, %v921_v32 }
 0x34d   : > { %1478 = vrot.lane.b32.xlu0 %v2492_v5, %s2331_s30  ;;  %978 = vmatpush2.bf16.msra.mxu1 %v950_v19  ;;  %v4063_v19 = vld [vmem:[#allocation25_spill] sm:$0xff] }
 0x34e   : > { %v1276_v0 = vpop.permute.xlu1 %1275 }
 0x34f   : > { %v3639_v10 = vpop.permute.xlu0 %1813  ;;  %v1282_v55 = vsel %vm1281_vm13, %v1276_v0, %v1278_v25  ;;  %v1775_v0 = vsel %vm356_vm0, %v4063_v19, %v1745_v12 }
 0x350   : > { %1476 = vrot.lane.b32.xlu1 %v2388_v2, %s2331_s30  ;;  %v1328_v47 = vsel %vm356_vm0, %v1282_v55, 0 }
 0x351   : > { %1465 = vrot.lane.b32.xlu0 %v2394_v4, %s2330_s29  ;;  %s208_s29 = scalar_lea.vmem %s3981_s4, %s2162_s26 }
 0x352   : > { %v1280_v14 = vpop.permute.xlu1 %1279 }
 0x353   : > { %v1283_v61 = vsel %vm1281_vm13, %v1278_v25, %v1280_v14  ;;  %v886_v31 = vpop.permute.xlu0 %885  ;;  %vm1236_vm13 = vcmask 441344  }
 0x354   : > { %1896 = vrot.lane.b32.xlu1 %v1786_v16, %s2304_s17  ;;  %2179 = vmatprep.subr.msk.bf16.mxu0 %vm356_vm0, %v1283_v61 }
 0x355   : > { %1892 = vrot.lane.b32.xlu0 %v1781_v23, %s2304_s17  ;;  %1356 = vmatpush2.bf16.msra.mxu0 %v1328_v47 }
 0x356   : > { %v3657_v6 = vpop.permute.xlu1 %1815 }
 0x357   : > { %v3659_v11 = vpop.permute.xlu0 %1811 }
 0x358   : > { %1474 = vrot.lane.b32.xlu1 %v2394_v4, %s2331_s30 }
 0x359   : > { %1449 = vrot.lane.b32.xlu0 %v2388_v2, %s2332_s5 }
 0x35a   : > { %v888_v3 = vpop.permute.xlu1 %887 }
 0x35b   : > { %v1260_v43 = vpop.permute.xlu0 %1259  ;;  %v919_v7 = vsel %vm895_vm15, %v886_v31, %v888_v3  ;;  %v4066_v3 = vld [vmem:[#allocation24_spill] sm:$0xff] }
 0x35c   : > { %1894 = vrot.lane.b32.xlu1 %v1784_v29, %s2304_s17  ;;  %979 = vmatprep.subr.bf16.mxu1 %v919_v7  ;;  %v4067_v7 = vld [vmem:[#allocation27_spill] sm:$0xff] }
 0x35d   : > { %1458 = vrot.lane.b32.xlu0 %v2388_v2, %s2333_s24 }
 0x35e   : > { %v884_v41 = vpop.permute.xlu1 %883 }
 0x35f   : > { %v1269_v59 = vpop.permute.xlu0 %1268  ;;  %v918_v37 = vsel %vm895_vm15, %v884_v41, %v886_v31  ;;  %v4064_v31 = vld [vmem:[#allocation6_spill] sm:$0xff] }
 0x360   : > { %1451 = vrot.lane.b32.xlu1 %v2492_v5, %s2332_s5  ;;  %980 = vmatpush2.bf16.msra.mxu1 %v918_v37  ;;  %v1744_v16 = vsel %vm4065_vm2, %v4064_v31, %v3387_v40  ;;  %vm1480_vm2 = vcmask 7168  }
 0x361   : > { %1890 = vrot.lane.b32.xlu0 %v2814_v8, %s2304_s17  ;;  %v1778_v8 = vsel %vm356_vm0, %v3248_v44, %v3414_v63 }
 0x362   : > { %v1262_v26 = vpop.permute.xlu1 %1261 }
 0x363   : > { %v1258_v50 = vpop.permute.xlu0 %1257  ;;  %v1265_v35 = vsel %vm1263_vm10, %v1260_v43, %v1262_v26 }
 0x364   : > { %1460 = vrot.lane.b32.xlu1 %v2492_v5, %s2333_s24  ;;  %v1264_v38 = vsel %vm1263_vm10, %v1258_v50, %v1260_v43  ;;  %v1772_v43 = vsel %vm356_vm0, %v4066_v3, %v1744_v16  ;;  %vm1218_vm10 = vcmask 457728  }
 0x365   : > { %1456 = vrot.lane.b32.xlu0 %v2394_v4, %s2333_s24 }
 0x366   : > { %v1271_v24 = vpop.permute.xlu1 %1270 }
 0x367   : > { %v1274_v57 = vsel %vm1272_vm4, %v1269_v59, %v1271_v24  ;;  %v3675_v22 = vpop.permute.xlu0 %1807  ;;  %v4068_v24 = vld [vmem:[#allocation26_spill] sm:$0xff] }
 0x368   : > { %1447 = vrot.lane.b32.xlu1 %v2394_v4, %s2332_s5  ;;  %v1314_v1 = vsel %vm356_vm0, %v1265_v35, %v1274_v57 }
 0x369   : > { %1888 = vrot.lane.b32.xlu0 %v1778_v8, %s2304_s17  ;;  %1357 = vmatprep.subr.bf16.mxu0 %v1314_v1 }
 0x36a   : > { %v1267_v9 = vpop.permute.xlu1 %1266 }
 0x36b   : > { %v1273_v32 = vsel %vm1272_vm4, %v1267_v9, %v1269_v59  ;;  %v880_v25 = vpop.permute.xlu0 %879  ;;  %vm1504_vm4 = vcmask 998400  }
 0x36c   : > { %1886 = vrot.lane.b32.xlu1 %v1775_v0, %s2304_s17  ;;  %v1310_v34 = vsel %vm356_vm0, %v1264_v38, %v1273_v32 }
 0x36d   : > { %1433 = vrot.lane.b32.xlu0 %v2492_v5, %s2334_s6  ;;  %1358 = vmatpush2.bf16.msra.mxu0 %v1310_v34 }
 0x36e   : > { %v3691_v63 = vpop.permute.xlu1 %1809 }
 0x36f   : > { %v3693_v55 = vpop.permute.xlu0 %1805 }
 0x370   : > { %1431 = vrot.lane.b32.xlu1 %v2388_v2, %s2334_s6 }
 0x371   : > { %1442 = vrot.lane.b32.xlu0 %v2492_v5, %s2335_s7 }
 0x372   : > { %v882_v14 = vpop.permute.xlu1 %881 }
 0x373   : > { %v1242_v45 = vpop.permute.xlu0 %1241  ;;  %v917_v61 = vsel %vm895_vm15, %v880_v25, %v882_v14  ;;  %v1739_v14 = vsel %vm4069_vm7, %v3489_v54, %v3501_v33  ;;  %vm1435_vm7 = vcmask 72704  }
 0x374   : > { %1440 = vrot.lane.b32.xlu1 %v2388_v2, %s2335_s7  ;;  %981 = vmatprep.subr.bf16.mxu1 %v917_v61  ;;  %v1767_v16 = vsel %vm356_vm0, %v1739_v14, %v3345_v21 }
 0x375   : > { %1429 = vrot.lane.b32.xlu0 %v2394_v4, %s2334_s6 }
 0x376   : > { %v878_v47 = vpop.permute.xlu1 %877 }
 0x377   : > { %v1251_v23 = vpop.permute.xlu0 %1250  ;;  %v916_v29 = vsel %vm895_vm15, %v878_v47, %v880_v25 }
 0x378   : > { %1884 = vrot.lane.b32.xlu1 %v1772_v43, %s2304_s17  ;;  %982 = vmatpush2.bf16.msra.mxu1 %v916_v29 }
 0x379   : > { %1880 = vrot.lane.b32.xlu0 %v4067_v7, %s2304_s17 }
 0x37a   : > { %v1244_v41 = vpop.permute.xlu1 %1243 }
 0x37b   : > { %v1240_v40 = vpop.permute.xlu0 %1239  ;;  %v1247_v37 = vsel %vm1245_vm8, %v1242_v45, %v1244_v41  ;;  %v4070_v41 = vld [vmem:[#allocation5_spill] sm:$0xff] }
 0x37c   : > { %1438 = vrot.lane.b32.xlu1 %v2394_v4, %s2335_s7  ;;  %v1246_v12 = vsel %vm1245_vm8, %v1240_v40, %v1242_v45  ;;  %v1769_v45 = vsel %vm356_vm0, %v3501_v33, %v3258_v46  ;;  %v1738_v40 = vsel %vm4071_vm14, %v4070_v41, %v3489_v54  ;;  %vm1453_vm8 = vcmask 56320  }
 0x37d   : > { %1413 = vrot.lane.b32.xlu0 %v2388_v2, %s2336_s8  ;;  %vm1408_vm14 = vcmask 121856  }
 0x37e   : > { %v1253_v59 = vpop.permute.xlu1 %1252 }
 0x37f   : > { %v1256_v26 = vsel %vm1254_vm12, %v1251_v23, %v1253_v59  ;;  %v3711_v50 = vpop.permute.xlu0 %1801 }
 0x380   : > { %1882 = vrot.lane.b32.xlu1 %v4068_v24, %s2304_s17  ;;  %v1306_v35 = vsel %vm356_vm0, %v1247_v37, %v1256_v26 }
 0x381   : > { %1422 = vrot.lane.b32.xlu0 %v2388_v2, %s2337_s9  ;;  %1359 = vmatprep.subr.bf16.mxu0 %v1306_v35 }
 0x382   : > { %v1249_v57 = vpop.permute.xlu1 %1248 }
 0x383   : > { %v1255_v8 = vsel %vm1254_vm12, %v1249_v57, %v1251_v23  ;;  %v874_v1 = vpop.permute.xlu0 %873  ;;  %vm1462_vm12 = vcmask 48128  }
 0x384   : > { %1415 = vrot.lane.b32.xlu1 %v2492_v5, %s2336_s8  ;;  %v1302_v9 = vsel %vm356_vm0, %v1246_v12, %v1255_v8  ;;  %v4072_v12 = vld [vmem:[#allocation21_spill] sm:$0xff] }
 0x385   : > { %1878 = vrot.lane.b32.xlu0 %v4041_v20, %s2304_s17  ;;  %1360 = vmatpush2.bf16.msra.mxu0 %v1302_v9  ;;  %v1765_v8 = vsel %vm356_vm0, %v1738_v40, %v4072_v12 }
 0x386   : > { %v3721_v38 = vpop.permute.xlu1 %1803 }
 0x387   : > { %v3723_v32 = vpop.permute.xlu0 %1799 }
 0x388   : > { %1424 = vrot.lane.b32.xlu1 %v2492_v5, %s2337_s9 }
 0x389   : > { %1420 = vrot.lane.b32.xlu0 %v2394_v4, %s2337_s9 }
 0x38a   : > { %v876_v25 = vpop.permute.xlu1 %875 }
 0x38b   : > { %v1224_v0 = vpop.permute.xlu0 %1223  ;;  %v915_v34 = vsel %vm895_vm15, %v874_v1, %v876_v25 }
 0x38c   : > { %1411 = vrot.lane.b32.xlu1 %v2394_v4, %s2336_s8  ;;  %983 = vmatprep.subr.bf16.mxu1 %v915_v34  ;;  %v2172_v34 = vcombine.low %v3575_v13, %v3575_v13 }
 0x38d   : > { %1876 = vrot.lane.b32.xlu0 %v1769_v45, %s2304_s17 }
 0x38e   : > { %v872_v61 = vpop.permute.xlu1 %871 }
 0x38f   : > { %v1233_v31 = vpop.permute.xlu0 %1232  ;;  %v914_v47 = vsel %vm895_vm15, %v872_v61, %v874_v1 }
 0x390   : > { %1874 = vrot.lane.b32.xlu1 %v1767_v16, %s2304_s17  ;;  %984 = vmatpush2.bf16.msra.mxu1 %v914_v47 }
 0x391   : > { %1397 = vrot.lane.b32.xlu0 %v2492_v5, %s2338_s12 }
 0x392   : > { %v1226_v23 = vpop.permute.xlu1 %1225 }
 0x393   : > { %v1222_v43 = vpop.permute.xlu0 %1221  ;;  %v1229_v33 = vsel %vm1227_vm3, %v1224_v0, %v1226_v23 }
 0x394   : > { %1395 = vrot.lane.b32.xlu1 %v2388_v2, %s2338_s12  ;;  %v1228_v26 = vsel %vm1227_vm3, %v1222_v43, %v1224_v0  ;;  %vm1444_vm3 = vcmask 64512  }
 0x395   : > { %1406 = vrot.lane.b32.xlu0 %v2492_v5, %s2339_s13 }
 0x396   : > { %v1235_v46 = vpop.permute.xlu1 %1234 }
 0x397   : > { %v1238_v21 = vsel %vm1236_vm13, %v1233_v31, %v1235_v46  ;;  %v868_v29 = vpop.permute.xlu0 %867 }
 0x398   : > { %1404 = vrot.lane.b32.xlu1 %v2388_v2, %s2339_s13  ;;  %v1298_v59 = vsel %vm356_vm0, %v1229_v33, %v1238_v21  ;;  %v2177_v21 = vcombine.low %v3585_v18, %v3585_v18 }
 0x399   : > { %1393 = vrot.lane.b32.xlu0 %v2394_v4, %s2338_s12  ;;  %1361 = vmatprep.subr.bf16.mxu0 %v1298_v59 }
 0x39a   : > { %v1231_v37 = vpop.permute.xlu1 %1230 }
 0x39b   : > { %v1237_v35 = vsel %vm1236_vm13, %v1231_v37, %v1233_v31  ;;  %v866_v57 = vpop.permute.xlu0 %865  ;;  %vm1426_vm13 = vcmask 80896  }
 0x39c   : > { %1872 = vrot.lane.b32.xlu1 %v1765_v8, %s2304_s17  ;;  %v1294_v1 = vsel %vm356_vm0, %v1228_v26, %v1237_v35  ;;  %v912_v0 = vsel %vm895_vm15, %v866_v57, %v868_v29  ;;  %v1838_v8 = vsel %vm486_vm1, %v3570_v48, %v3565_v15 }
 0x39d   : > { %1868 = vrot.lane.b32.xlu0 %v3436_v39, %s2304_s17  ;;  %1362 = vmatpush2.bf16.msra.mxu0 %v1294_v1 }
 0x39e   : > { %v870_v54 = vpop.permute.xlu1 %869 }
 0x39f   : > { %v1208_v9 = vpop.permute.xlu0 %1207  ;;  %v913_v25 = vsel %vm895_vm15, %v868_v29, %v870_v54 }
 0x3a0   : > { %1402 = vrot.lane.b32.xlu1 %v2394_v4, %s2339_s13  ;;  %985 = vmatprep.subr.bf16.mxu1 %v913_v25 }
 0x3a1   : > { %1378 = vrot.lane.b32.xlu0 %v2388_v2, %s2303_s14  ;;  %986 = vmatpush2.bf16.msra.mxu1 %v912_v0 }
 0x3a2   : > { %v1206_v14 = vpop.permute.xlu1 %1205 }
 0x3a3   : > { %v1217_v45 = vpop.permute.xlu0 %1216  ;;  %v1211_v31 = vsel %vm1209_vm9, %v1206_v14, %v1208_v9 }
 0x3a4   : > { %1870 = vrot.lane.b32.xlu1 %v3471_v52, %s2304_s17  ;;  %988 = vmatmul.mubr.bf16.vlgmr.msra.gmra.mxu1 %v2172_v34 }
 0x3a5   : > { %1386 = vrot.lane.b32.xlu0 %v2388_v2, %s2340_s18 }
 0x3a6   : > { %v1215_v61 = vpop.permute.xlu1 %1214 }
 0x3a7   : > { %v1220_v16 = vsel %vm1218_vm10, %v1215_v61, %v1217_v45  ;;  %v1213_v13 = vpop.permute.xlu0 %1212 }
 0x3a8   : > { %1380 = vrot.lane.b32.xlu1 %v2492_v5, %s2303_s14  ;;  %v1290_v47 = vsel %vm356_vm0, %v1211_v31, %v1220_v16  ;;  %v1219_v43 = vsel %vm1218_vm10, %v1213_v13, %v1215_v61  ;;  %v1835_v16 = vsel %vm486_vm1, %v3628_v60, %v3612_v53  ;;  %vm4073_vm10 = vcmask 146432  }
 0x3a9   : > { %1866 = vrot.lane.b32.xlu0 %v3477_v28, %s2304_s17  ;;  %1363 = vmatprep.subr.bf16.mxu0 %v1290_v47 }
 0x3aa   : > { %v1204_v23 = vpop.permute.xlu1 %1203 }
 0x3ab   : > { %v1210_v46 = vsel %vm1209_vm9, %v1204_v23, %v1206_v14  ;;  %v1503_v33 = vpop.permute.xlu0 %1502  ;;  %vm1390_vm9 = vcmask 138240  }
 0x3ac   : > { %1388 = vrot.lane.b32.xlu1 %v2492_v5, %s2340_s18  ;;  %v1286_v2 = vsel %vm356_vm0, %v1210_v46, %v1219_v43 }
 0x3ad   : > { %1384 = vrot.lane.b32.xlu0 %v2394_v4, %s2340_s18  ;;  %1364 = vmatpush2.bf16.msra.mxu0 %v1286_v2  ;;  %v1833_v2 = vsel %vm486_vm1, %v3659_v11, %v3639_v10 }
 0x3ae   : > { %v1501_v29 = vpop.permute.xlu1 %1500 }
 0x3af   : > { %v1506_v41 = vsel %vm1504_vm4, %v1501_v29, %v1503_v33  ;;  %v1905_v40 = vpop.permute.xlu0 %1904 }
 0x3b0   : > { %1376 = vrot.lane.b32.xlu1 %v2394_v4, %s2303_s14  ;;  %v1568_v59 = vsel %vm356_vm0, %v3430_v56, %v1506_v41  ;;  %1366 = vmatmul.mubr.bf16.vlgmr.msra.gmra.mxu0 %v2177_v21 }
 0x3b1   : > { %1864 = vrot.lane.b32.xlu0 %v3523_v51, %s2304_s17  ;;  %1691 = vmatprep.subr.bf16.mxu1 %v1568_v59 }
 0x3b2   : > { %v1499_v5 = vpop.permute.xlu1 %1498 }
 0x3b3   : > { %v1505_v37 = vsel %vm1504_vm4, %v1499_v5, %v1501_v29  ;;  %v1903_v18 = vpop.permute.xlu0 %1902  ;;  %vm4074_vm4 = vmmov %vm4073_vm10 }
 0x3b4   : > { %1862 = vrot.lane.b32.xlu1 %v3506_v58, %s2304_s17  ;;  %v1564_v26 = vsel %vm356_vm0, %v3464_v49, %v1505_v37  ;;  %v1952_v57 = vsel %vm895_vm15, %v1903_v18, %v1905_v40  ;;  %v1832_v37 = vsel %vm486_vm1, %v3675_v22, %v3691_v63  ;;  %v1831_v18 = vsel %vm486_vm1, %v3693_v55, %v3675_v22 }
 0x3b5   : > { %1650 = vrot.lane.b32.xlu0 %v4066_v3, %s2299_s10  ;;  %1692 = vmatpush1.bf16.msra.mxu1 %v1564_v26 }
 0x3b6   : > { %v1907_v4 = vpop.permute.xlu1 %1906  ;;  %1693 = vmatprep.subr.bf16.mxu1 %v3506_v58 }
 0x3b7   : > { %v1901_v56 = vpop.permute.xlu0 %1900  ;;  %v1953_v35 = vsel %vm895_vm15, %v1905_v40, %v1907_v4 }
 0x3b8   : > { %1860 = vrot.lane.b32.xlu1 %v3529_v17, %s2304_s17  ;;  %1997 = vmatprep.subr.bf16.mxu0 %v1953_v35  ;;  %v3888_v35 = vld [vmem:[%s3978_s1 + $0x20] sm:$0xff] }
 0x3b9   : > { %1654 = vrot.lane.b32.xlu0 %v3248_v44, %s2299_s10  ;;  %1694 = vmatpush1.bf16.msra.mxu1 %v3529_v17  ;;  %v1837_v44 = vsel %vm486_vm1, %v3559_v36, %v3570_v48 }
 0x3ba   : > { %1998 = vmatpush1.bf16.msra.mxu0 %v1952_v57  ;;  %v1899_v49 = vpop.permute.xlu1 %1898 }
 0x3bb   : > { %v1470_v3 = vpop.permute.xlu0 %1469  ;;  %v1951_v12 = vsel %vm895_vm15, %v1899_v49, %v1901_v56 }
 0x3bc   : > { %1652 = vrot.lane.b32.xlu1 %v4063_v19, %s2299_s10  ;;  %1999 = vmatprep.subr.bf16.mxu0 %v1951_v12 }
 0x3bd   : > { %1934 = vrot.lane.b32.xlu0 %v1838_v8, %s2304_s17 }
 0x3be   : > { %v1468_v1 = vpop.permute.xlu1 %1467 }
 0x3bf   : > { %v1479_v54 = vpop.permute.xlu0 %1478  ;;  %v1473_v9 = vsel %vm1471_vm6, %v1468_v1, %v1470_v3 }
 0x3c0   : > { %1932 = vrot.lane.b32.xlu1 %v1837_v44, %s2304_s17 }
 0x3c1   : > { %1646 = vrot.lane.b32.xlu0 %v4067_v7, %s2299_s10 }
 0x3c2   : > { %v1477_v19 = vpop.permute.xlu1 %1476 }
 0x3c3   : > { %v1482_v25 = vsel %vm1480_vm2, %v1477_v19, %v1479_v54  ;;  %v1466_v0 = vpop.permute.xlu0 %1465  ;;  %v1830_v54 = vsel %vm486_vm1, %v3711_v50, %v3721_v38 }
 0x3c4   : > { %1936 = vrot.lane.b32.xlu1 %v3565_v15, %s2304_s17  ;;  %v1553_v34 = vsel %vm356_vm0, %v1473_v9, %v1482_v25  ;;  %v1472_v15 = vsel %vm1471_vm6, %v1466_v0, %v1468_v1  ;;  %v1829_v25 = vsel %vm486_vm1, %v3723_v32, %v3711_v50 }
 0x3c5   : > { %1644 = vrot.lane.b32.xlu0 %v4041_v20, %s2299_s10  ;;  %1695 = vmatprep.subr.bf16.mxu1 %v1553_v34  ;;  %v1836_v20 = vsel %vm486_vm1, %v3612_v53, %v3606_v27 }
 0x3c6   : > { %v1897_v36 = vpop.permute.xlu1 %1896 }
 0x3c7   : > { %v1950_v48 = vsel %vm895_vm15, %v1897_v36, %v1899_v49  ;;  %v1893_v14 = vpop.permute.xlu0 %1892  ;;  %v3896_v49 = vpop.f32.mrf.mxu0 }
 0x3c8   : > { %1648 = vrot.lane.b32.xlu1 %v4068_v24, %s2299_s10  ;;  %2000 = vmatpush1.bf16.msra.mxu0 %v1950_v48 }
 0x3c9   : > { %1930 = vrot.lane.b32.xlu0 %v3606_v27, %s2304_s17 }
 0x3ca   : > { %v1475_v7 = vpop.permute.xlu1 %1474 }
 0x3cb   : > { %v1481_v45 = vsel %vm1480_vm2, %v1475_v7, %v1477_v19  ;;  %v1450_v61 = vpop.permute.xlu0 %1449 }
 0x3cc   : > { %1928 = vrot.lane.b32.xlu1 %v1836_v20, %s2304_s17  ;;  %v1549_v31 = vsel %vm356_vm0, %v1472_v15, %v1481_v45 }
 0x3cd   : > { %1640 = vrot.lane.b32.xlu0 %v3355_v62, %s2299_s10  ;;  %1696 = vmatpush1.bf16.msra.mxu1 %v1549_v31 }
 0x3ce   : > { %v1895_v24 = vpop.permute.xlu1 %1894 }
 0x3cf   : > { %v1459_v13 = vpop.permute.xlu0 %1458  ;;  %v1949_v47 = vsel %vm895_vm15, %v1893_v14, %v1895_v24 }
 0x3d0   : > { %1926 = vrot.lane.b32.xlu1 %v1835_v16, %s2304_s17  ;;  %2001 = vmatprep.subr.bf16.mxu0 %v1949_v47 }
 0x3d1   : > { %1638 = vrot.lane.b32.xlu0 %v4046_v30, %s2299_s10  ;;  %v1834_v30 = vsel %vm486_vm1, %v3639_v10, %v3657_v6  ;;  %v3867_v10 = vld [vmem:[%s3978_s1 + $0x18] sm:$0xff]  ;;  %vm1399_vm1 = vcmask 130048  }
 0x3d2   : > { %v1452_v27 = vpop.permute.xlu1 %1451 }
 0x3d3   : > { %v1891_v23 = vpop.permute.xlu0 %1890  ;;  %v1455_v60 = vsel %vm1453_vm8, %v1450_v61, %v1452_v27 }
 0x3d4   : > { %v1948_v62 = vsel %vm895_vm15, %v1891_v23, %v1893_v14  ;;  %1642 = vrot.lane.b32.xlu1 %v3373_v42, %s2299_s10 }
 0x3d5   : > { %1924 = vrot.lane.b32.xlu0 %v3657_v6, %s2304_s17  ;;  %2002 = vmatpush1.bf16.msra.mxu0 %v1948_v62 }
 0x3d6   : > { %v1461_v53 = vpop.permute.xlu1 %1460 }
 0x3d7   : > { %v1464_v43 = vsel %vm1462_vm12, %v1459_v13, %v1461_v53  ;;  %v1457_v46 = vpop.permute.xlu0 %1456 }
 0x3d8   : > { %1922 = vrot.lane.b32.xlu1 %v1834_v30, %s2304_s17  ;;  %v1545_v33 = vsel %vm356_vm0, %v1455_v60, %v1464_v43  ;;  %v1463_v21 = vsel %vm1462_vm12, %v1457_v46, %v1459_v13 }
 0x3d9   : > { %1634 = vrot.lane.b32.xlu0 %v3436_v39, %s2299_s10  ;;  %1697 = vmatprep.subr.bf16.mxu1 %v1545_v33 }
 0x3da   : > { %v1448_v42 = vpop.permute.xlu1 %1447 }
 0x3db   : > { %v1454_v29 = vsel %vm1453_vm8, %v1448_v42, %v1450_v61  ;;  %v1889_v41 = vpop.permute.xlu0 %1888 }
 0x3dc   : > { %1920 = vrot.lane.b32.xlu1 %v1833_v2, %s2304_s17  ;;  %v1541_v6 = vsel %vm356_vm0, %v1454_v29, %v1463_v21 }
 0x3dd   : > { %1632 = vrot.lane.b32.xlu0 %v3477_v28, %s2299_s10  ;;  %1698 = vmatpush1.bf16.msra.mxu1 %v1541_v6  ;;  %v2184_v28 = vcombine.high %v3867_v10, %v3867_v10 }
 0x3de   : > { %v1887_v40 = vpop.permute.xlu1 %1886 }
 0x3df   : > { %v1434_v39 = vpop.permute.xlu0 %1433  ;;  %v1947_v59 = vsel %vm895_vm15, %v1887_v40, %v1889_v41  ;;  %2186 = vmatprep.mubr.msk.bf16.mxu1 %vm756_vm11, %v2184_v28 }
 0x3e0   : > { %1636 = vrot.lane.b32.xlu1 %v3471_v52, %s2299_s10  ;;  %2003 = vmatprep.subr.bf16.mxu0 %v1947_v59 }
 0x3e1   : > { %1918 = vrot.lane.b32.xlu0 %v3691_v63, %s2304_s17 }
 0x3e2   : > { %v1432_v11 = vpop.permute.xlu1 %1431 }
 0x3e3   : > { %v1443_v5 = vpop.permute.xlu0 %1442  ;;  %v1437_v26 = vsel %vm1435_vm7, %v1432_v11, %v1434_v39 }
 0x3e4   : > { %1916 = vrot.lane.b32.xlu1 %v1832_v37, %s2304_s17 }
 0x3e5   : > { %1628 = vrot.lane.b32.xlu0 %v3506_v58, %s2299_s10  ;;  %v2189_v58 = vcombine.high %v3888_v35, %v3888_v35 }
 0x3e6   : > { %v1441_v52 = vpop.permute.xlu1 %1440 }
 0x3e7   : > { %v1446_v4 = vsel %vm1444_vm3, %v1441_v52, %v1443_v5  ;;  %v1430_v56 = vpop.permute.xlu0 %1429  ;;  %2191 = vmatprep.mubr.msk.bf16.mxu0 %vm756_vm11, %v2189_v58  ;;  %vm1417_vm11 = vcmask 113664  }
 0x3e8   : > { %1914 = vrot.lane.b32.xlu1 %v1831_v18, %s2304_s17  ;;  %v1537_v63 = vsel %vm356_vm0, %v1437_v26, %v1446_v4  ;;  %v1436_v12 = vsel %vm1435_vm7, %v1430_v56, %v1432_v11 }
 0x3e9   : > { %1626 = vrot.lane.b32.xlu0 %v3529_v17, %s2299_s10  ;;  %1699 = vmatprep.subr.bf16.mxu1 %v1537_v63  ;;  %v3902_v17 = vpop.f32.mrf.mxu0 }
 0x3ea   : > { %v1885_v22 = vpop.permute.xlu1 %1884 }
 0x3eb   : > { %v1946_v55 = vsel %vm895_vm15, %v1885_v22, %v1887_v40  ;;  %v1881_v57 = vpop.permute.xlu0 %1880  ;;  %v804_v44 = vpop.f32.mrf.mxu0 }
 0x3ec   : > { %1630 = vrot.lane.b32.xlu1 %v3523_v51, %s2299_s10  ;;  %2004 = vmatpush1.bf16.msra.mxu0 %v1946_v55 }
 0x3ed   : > { %1912 = vrot.lane.b32.xlu0 %v3721_v38, %s2304_s17  ;;  %v805_v19 = vpop.f32.mrf.mxu0 }
 0x3ee   : > { %v1439_v3 = vpop.permute.xlu1 %1438 }
 0x3ef   : > { %v1445_v8 = vsel %vm1444_vm3, %v1439_v3, %v1441_v52  ;;  %v1414_v1 = vpop.permute.xlu0 %1413 }
 0x3f0   : > { %1910 = vrot.lane.b32.xlu1 %v1830_v54, %s2304_s17  ;;  %v1533_v51 = vsel %vm356_vm0, %v1436_v12, %v1445_v8 }
 0x3f1   : > { %1700 = vmatpush1.bf16.msra.mxu1 %v1533_v51 }
 0x3f2   : > { %v1883_v9 = vpop.permute.xlu1 %1882 }
 0x3f3   : > { %v1423_v0 = vpop.permute.xlu0 %1422  ;;  %v1945_v34 = vsel %vm895_vm15, %v1881_v57, %v1883_v9 }
 0x3f4   : > { %1908 = vrot.lane.b32.xlu1 %v1829_v25, %s2304_s17  ;;  %2005 = vmatprep.subr.bf16.mxu0 %v1945_v34 }
 0x3f6   : > { %v1416_v36 = vpop.permute.xlu1 %1415 }
 0x3f7   : > { %v1879_v38 = vpop.permute.xlu0 %1878  ;;  %v1419_v7 = vsel %vm1417_vm11, %v1414_v1, %v1416_v36 }
 0x3f8   : > { %v1944_v48 = vsel %vm895_vm15, %v1879_v38, %v1881_v57 }
 0x3f9   : > { %2006 = vmatpush1.bf16.msra.mxu0 %v1944_v48 }
 0x3fa   : > { %v1425_v14 = vpop.permute.xlu1 %1424 }
 0x3fb   : > { %v1428_v15 = vsel %vm1426_vm13, %v1423_v0, %v1425_v14  ;;  %v1421_v45 = vpop.permute.xlu0 %1420 }
 0x3fc   : > { %v1529_v61 = vsel %vm356_vm0, %v1419_v7, %v1428_v15  ;;  %v1427_v32 = vsel %vm1426_vm13, %v1421_v45, %v1423_v0 }
 0x3fd   : > { %1701 = vmatprep.subr.bf16.mxu1 %v1529_v61 }
 0x3fe   : > { %v1412_v50 = vpop.permute.xlu1 %1411 }
 0x3ff   : > { %v1418_v20 = vsel %vm1417_vm11, %v1412_v50, %v1414_v1  ;;  %v1877_v31 = vpop.permute.xlu0 %1876 }
 0x400   : > { %v1525_v24 = vsel %vm356_vm0, %v1418_v20, %v1427_v32 }
 0x401   : > { %1702 = vmatpush1.bf16.msra.mxu1 %v1525_v24 }
 0x402   : > { %v1875_v16 = vpop.permute.xlu1 %1874 }
 0x403   : > { %v1398_v13 = vpop.permute.xlu0 %1397  ;;  %v1943_v47 = vsel %vm895_vm15, %v1875_v16, %v1877_v31 }
 0x404   : > { %2007 = vmatprep.subr.bf16.mxu0 %v1943_v47 }
 0x406   : > { %v1396_v27 = vpop.permute.xlu1 %1395 }
 0x407   : > { %v1407_v23 = vpop.permute.xlu0 %1406  ;;  %v1401_v53 = vsel %vm1399_vm1, %v1396_v27, %v1398_v13 }
 0x40a   : > { %v1405_v62 = vpop.permute.xlu1 %1404 }
 0x40b   : > { %v1410_v60 = vsel %vm1408_vm14, %v1405_v62, %v1407_v23  ;;  %v1394_v43 = vpop.permute.xlu0 %1393 }
 0x40c   : > { %v1521_v46 = vsel %vm356_vm0, %v1401_v53, %v1410_v60  ;;  %v1400_v21 = vsel %vm1399_vm1, %v1394_v43, %v1396_v27 }
 0x40d   : > { %1703 = vmatprep.subr.bf16.mxu1 %v1521_v46 }
 0x40e   : > { %v1873_v30 = vpop.permute.xlu1 %1872 }
 0x40f   : > { %v1942_v33 = vsel %vm895_vm15, %v1873_v30, %v1875_v16  ;;  %v1869_v42 = vpop.permute.xlu0 %1868 }
 0x410   : > { %2008 = vmatpush1.bf16.msra.mxu0 %v1942_v33 }
 0x412   : > { %v1403_v2 = vpop.permute.xlu1 %1402 }
 0x413   : > { %v1409_v29 = vsel %vm1408_vm14, %v1403_v2, %v1405_v62  ;;  %v1379_v41 = vpop.permute.xlu0 %1378 }
 0x414   : > { %v1517_v6 = vsel %vm356_vm0, %v1400_v21, %v1409_v29 }
 0x415   : > { %1704 = vmatpush1.bf16.msra.mxu1 %v1517_v6 }
 0x416   : > { %v1871_v40 = vpop.permute.xlu1 %1870 }
 0x417   : > { %v1387_v39 = vpop.permute.xlu0 %1386  ;;  %v1941_v59 = vsel %vm895_vm15, %v1869_v42, %v1871_v40 }
 0x418   : > { %2009 = vmatprep.subr.bf16.mxu0 %v1941_v59 }
 0x41a   : > { %v1381_v11 = vpop.permute.xlu1 %1380 }
 0x41b   : > { %v1867_v28 = vpop.permute.xlu0 %1866  ;;  %v1383_v52 = vsel %vm4073_vm10, %v1379_v41, %v1381_v11 }
 0x41c   : > { %v1940_v5 = vsel %vm895_vm15, %v1867_v28, %v1869_v42 }
 0x41d   : > { %2010 = vmatpush1.bf16.msra.mxu0 %v1940_v5 }
 0x41e   : > { %v1389_v37 = vpop.permute.xlu1 %1388 }
 0x41f   : > { %v1392_v18 = vsel %vm1390_vm9, %v1387_v39, %v1389_v37  ;;  %v1385_v26 = vpop.permute.xlu0 %1384 }
 0x420   : > { %v1513_v4 = vsel %vm356_vm0, %v1383_v52, %v1392_v18  ;;  %v1391_v63 = vsel %vm1390_vm9, %v1385_v26, %v1387_v39  ;;  %v2183_v52 = vcombine.low %v3867_v10, %v3867_v10 }
 0x421   : > { %1705 = vmatprep.subr.bf16.mxu1 %v1513_v4 }
 0x422   : > { %v1377_v56 = vpop.permute.xlu1 %1376 }
 0x423   : > { %v1382_v58 = vsel %vm4074_vm4, %v1377_v56, %v1379_v41  ;;  %v1865_v22 = vpop.permute.xlu0 %1864 }
 0x424   : > { %v1509_v55 = vsel %vm356_vm0, %v1382_v58, %v1391_v63 }
 0x425   : > { %1706 = vmatpush1.bf16.msra.mxu1 %v1509_v55  ;;  %v2188_v55 = vcombine.low %v3888_v35, %v3888_v35 }
 0x426   : > { %v1863_v57 = vpop.permute.xlu1 %1862 }
 0x427   : > { %v1651_v3 = vpop.permute.xlu0 %1650  ;;  %v1939_v12 = vsel %vm895_vm15, %v1863_v57, %v1865_v22 }
 0x428   : > { %2011 = vmatprep.subr.bf16.mxu0 %v1939_v12 }
 0x42a   : > { %v1861_v8 = vpop.permute.xlu1 %1860 }
 0x42b   : > { %v1938_v1 = vsel %vm895_vm15, %v1861_v8, %v1863_v57  ;;  %v1655_v54 = vpop.permute.xlu0 %1654 }
 0x42c   : > { %2012 = vmatpush1.bf16.msra.mxu0 %v1938_v1 }
 0x42e   : > { %v1653_v44 = vpop.permute.xlu1 %1652 }
 0x42f   : > { %v1664_v51 = vsel %vm435_vm5, %v1651_v3, %v1653_v44  ;;  %v1665_v19 = vsel %vm435_vm5, %v1653_v44, %v1655_v54  ;;  %v1935_v9 = vpop.permute.xlu0 %1934 }
 0x430   : > { %v1686_v25 = vsel %vm356_vm0, %v1664_v51, 0  ;;  %2185 = vmatprep.subr.msk.bf16.mxu1 %vm356_vm0, %v1665_v19 }
 0x431   : > { %1714 = vmatpush2.bf16.msra.mxu1 %v1686_v25 }
 0x432   : > { %v1933_v0 = vpop.permute.xlu1 %1932 }
 0x433   : > { %v1647_v34 = vpop.permute.xlu0 %1646  ;;  %v1962_v36 = vsel %vm895_vm15, %v1933_v0, %v1935_v9 }
 0x434   : > { %v1992_v7 = vsel %vm356_vm0, %v1962_v36, 0  ;;  %v2042_v36 = vld [vmem:[%s3979_s2] sm:$0x3] }
 0x436   : > { %v1937_v38 = vpop.permute.xlu1 %1936 }
 0x437   : > { %v1963_v48 = vsel %vm895_vm15, %v1935_v9, %v1937_v38  ;;  %v1645_v14 = vpop.permute.xlu0 %1644  ;;  %v2044_v9 = vlaneseq }
 0x438   : > { %2190 = vmatprep.subr.msk.bf16.mxu0 %vm356_vm0, %v1963_v48  ;;  %v1662_v50 = vsel %vm435_vm5, %v1645_v14, %v1647_v34 }
 0x439   : > { %2020 = vmatpush2.bf16.msra.mxu0 %v1992_v7  ;;  %v2045_v25 = vshrl.u32 %v2044_v9, 7 }
 0x43a   : > { %v1649_v15 = vpop.permute.xlu1 %1648 }
 0x43b   : > { %v1931_v45 = vpop.permute.xlu0 %1930  ;;  %v1663_v61 = vsel %vm435_vm5, %v1647_v34, %v1649_v15  ;;  %v2046_v35 = vsub.s32 0, %v2045_v25 }
 0x43c   : > { %1715 = vmatprep.subr.bf16.mxu1 %v1663_v61 }
 0x43d   : > { %1716 = vmatpush2.bf16.msra.mxu1 %v1662_v50  ;;  %v2047_v14 = vrot.slane %v2042_v36, %v2046_v35 }
 0x43e   : > { %v1929_v32 = vpop.permute.xlu1 %1928 }
 0x43f   : > { %v1641_v20 = vpop.permute.xlu0 %1640  ;;  %v1961_v31 = vsel %vm895_vm15, %v1929_v32, %v1931_v45 }
 0x440   : > { %2021 = vmatprep.subr.bf16.mxu0 %v1961_v31 }
 0x442   : > { %v1927_v24 = vpop.permute.xlu1 %1926 }
 0x443   : > { %v1960_v16 = vsel %vm895_vm15, %v1927_v24, %v1929_v32  ;;  %v1639_v13 = vpop.permute.xlu0 %1638 }
 0x444   : > { %2022 = vmatpush2.bf16.msra.mxu0 %v1960_v16  ;;  %v1660_v62 = vsel %vm435_vm5, %v1639_v13, %v1641_v20 }
 0x446   : > { %v1643_v47 = vpop.permute.xlu1 %1642 }
 0x447   : > { %v1925_v27 = vpop.permute.xlu0 %1924  ;;  %v1661_v23 = vsel %vm435_vm5, %v1641_v20, %v1643_v47 }
 0x448   : > { %1717 = vmatprep.subr.bf16.mxu1 %v1661_v23 }
 0x449   : > { %1718 = vmatpush2.bf16.msra.mxu1 %v1660_v62 }
 0x44a   : > { %v1923_v53 = vpop.permute.xlu1 %1922 }
 0x44b   : > { %v1635_v60 = vpop.permute.xlu0 %1634  ;;  %v1959_v43 = vsel %vm895_vm15, %v1923_v53, %v1925_v27 }
 0x44c   : > { %2023 = vmatprep.subr.bf16.mxu0 %v1959_v43 }
 0x44e   : > { %v1921_v46 = vpop.permute.xlu1 %1920 }
 0x44f   : > { %v1958_v30 = vsel %vm895_vm15, %v1921_v46, %v1923_v53  ;;  %v1633_v33 = vpop.permute.xlu0 %1632 }
 0x450   : > { %2024 = vmatpush2.bf16.msra.mxu0 %v1958_v30  ;;  %v1658_v29 = vsel %vm435_vm5, %v1633_v33, %v1635_v60 }
 0x452   : > { %v1637_v42 = vpop.permute.xlu1 %1636 }
 0x453   : > { %v1919_v2 = vpop.permute.xlu0 %1918  ;;  %v1659_v21 = vsel %vm435_vm5, %v1635_v60, %v1637_v42 }
 0x454   : > { %1719 = vmatprep.subr.bf16.mxu1 %v1659_v21 }
 0x455   : > { %1720 = vmatpush2.bf16.msra.mxu1 %v1658_v29 }
 0x456   : > { %v1917_v41 = vpop.permute.xlu1 %1916 }
 0x457   : > { %v1629_v6 = vpop.permute.xlu0 %1628  ;;  %v1957_v40 = vsel %vm895_vm15, %v1917_v41, %v1919_v2 }
 0x458   : > { %2025 = vmatprep.subr.bf16.mxu0 %v1957_v40 }
 0x45a   : > { %v1915_v39 = vpop.permute.xlu1 %1914 }
 0x45b   : > { %v1956_v59 = vsel %vm895_vm15, %v1915_v39, %v1917_v41  ;;  %v1627_v11 = vpop.permute.xlu0 %1626 }
 0x45c   : > { %2026 = vmatpush2.bf16.msra.mxu0 %v1956_v59  ;;  %v1656_v37 = vsel %vm435_vm5, %v1627_v11, %v1629_v6 }
 0x45e   : > { %v1631_v28 = vpop.permute.xlu1 %1630 }
 0x45f   : > { %v1657_v5 = vsel %vm435_vm5, %v1629_v6, %v1631_v28  ;;  %v1913_v18 = vpop.permute.xlu0 %1912 }
 0x460   : > { %1721 = vmatprep.subr.bf16.mxu1 %v1657_v5 }
 0x461   : > { %1722 = vmatpush2.bf16.msra.mxu1 %v1656_v37 }
 0x462   : > { %v1911_v26 = vpop.permute.xlu1 %1910 }
 0x463   : > { %v1955_v4 = vsel %vm895_vm15, %v1911_v26, %v1913_v18 }
 0x464   : > { %1724 = vmatmul.mubr.bf16.vlgmr.msra.gmra.mxu1 %v2183_v52  ;;  %2027 = vmatprep.subr.bf16.mxu0 %v1955_v4  ;;  %v989_v56 = vpop.f32.mrf.mxu1 }
 0x465   : > { %v990_v10 = vadd.f32 %v989_v56, %v3896_v49  ;;  %v2050_v49 = vsub.s32 1, %v2045_v25 }
 0x466   : > { %v1909_v63 = vpop.permute.xlu1 %1908  ;;  %v991_v58 = vpop.f32.mrf.mxu1 }
 0x467   : > { %v1954_v22 = vsel %vm895_vm15, %v1909_v63, %v1911_v26  ;;  %v992_v12 = vadd.f32 %v991_v58, %v3902_v17  ;;  %v2051_v61 = vrot.slane %v2042_v36, %v2050_v49 }
 0x468   : > { %2028 = vmatpush2.bf16.msra.mxu0 %v1954_v22  ;;  %v993_v57 = vpop.f32.mrf.mxu1 }
 0x46a   : > { %v994_v3 = vpop.f32.mrf.mxu1 }
 0x46b   : > { %2030 = vmatmul.mubr.bf16.vlgmr.msra.gmra.mxu0 %v2188_v55 }
 0x470   : > { %v1367_v8 = vpop.f32.mrf.mxu0 }
 0x471   : > { %v1374_v1 = vadd.f32 %v1367_v8, %v990_v10 }
 0x472   : > { %v1369_v54 = vpop.f32.mrf.mxu0 }
 0x473   : > { %v1375_v44 = vadd.f32 %v1369_v54, %v992_v12 }
 0x474   : > { %v1371_v51 = vpop.f32.mrf.mxu0 }
 0x476   : > { %v1372_v19 = vpop.f32.mrf.mxu0 }
 0x524   : > { %v1725_v0 = vpop.f32.mrf.mxu1 }
 0x525   : > { %v1732_v48 = vadd.f32 %v1725_v0, %v1374_v1 }
 0x526   : > { %v1727_v34 = vpop.f32.mrf.mxu1 }
 0x527   : > { %v1733_v15 = vadd.f32 %v1727_v34, %v1375_v44 }
 0x528   : > { %v1729_v38 = vpop.f32.mrf.mxu1 }
 0x52a   : > { %v1730_v17 = vpop.f32.mrf.mxu1 }
 0x52b   : > { %v2031_v7 = vpop.f32.mrf.mxu0 }
 0x52c   : > { %v2038_v45 = vadd.f32 %v2031_v7, %v1732_v48 }
 0x52d   : > { %v2033_v50 = vpop.f32.mrf.mxu0 }
 0x52e   : > { %2040 = vst [vmem:[%s204_s25] sm:$0xff] %v2038_v45  ;;  %v2054_v32 = vmul.f32 %v2047_v14, %v2038_v45  ;;  %v2039_v20 = vadd.f32 %v2033_v50, %v1733_v15 }
 0x52f   : > { %v2035_v31 = vpop.f32.mrf.mxu0 }
 0x530   : > { %2041 = vst [vmem:[%s204_s25 + $0x8] sm:$0xff] %v2039_v20  ;;  %v2055_v24 = vmul.f32 %v2051_v61, %v2039_v20  ;;  %v2059_v13 = vmul.f32 %v2054_v32, %v2054_v32 }
 0x531   : > { %v2036_v16 = vpop.f32.mrf.mxu0 }
 0x532   : > { %v2060_v47 = vmul.f32 %v2055_v24, %v2055_v24  ;;  %v2056_v27 = vadd.f32 %v2055_v24, %v2054_v32 }
 0x534   : > { %2057 = vadd.xlane.f32.xlu0 %v2056_v27  ;;  %v2061_v23 = vadd.f32 %v2060_v47, %v2059_v13 }
 0x536   : > { %2062 = vadd.xlane.f32.xlu1 %v2061_v23 }
 0x5bd   : > { %v2058_v62 = vpop.xlane.xlu0 %2057 }
 0x5bf   : > { %v2063_v53 = vpop.xlane.xlu1 %2062 }
 0x5c0   : > { %v2065_v60 = vsel %vm1480_vm2, %v2058_v62, %v2063_v53 }
 0x5c1   : > { %2067 = vst.msk [vmem:[%s208_s29] sm:$0xff] %vm1471_vm6, %v2065_v60 }
 0x5c2 PF: > { %s15_s15 = sadd.s32 1, %s2282_s15  }
 0x5c3   : > { %p12_p4 = scmp.ge.s32.totalorder %s15_s15, 4  }
 0x5c5   :  { %14 = sbr.rel (!%p12_p4) target bundleno = 1 (0x1), region = 78 }

</bundles_post_ra>
